<compile_context>
chip_gen: v5e
topology: v5e:2x2
jax: 0.10.0
libtpu: 0.0.40
codegen_flags: <defaults>
</compile_context>

<pallas_src>
import jax
import jax.numpy as jnp
from jax import lax
from jax.experimental import pallas as pl
from jax.experimental.pallas import tpu as pltpu


def _round_up(x, m):
    return (x + m - 1) // m * m


# ----------------------------- fused kernel ---------------------------------
def _make_fused_kernel(n_layers, Tc, Bt, Hp, unroll):
    H3 = 3 * Hp

    def kernel(x_ref, *refs):
        layer_refs = refs[:3 * n_layers]
        fcw_ref, fcb_ref, out_ref, gi_scr, act_scr, h_carry = refs[3 * n_layers:]

        # Zero the recurrent carry at the first time-chunk of every batch tile.
        # (time is the innermost "arbitrary" grid axis, so all time chunks of a
        #  batch tile run consecutively on the same core.)
        @pl.when(pl.program_id(1) == 0)
        def _():
            h_carry[...] = jnp.zeros_like(h_carry)

        def run_layer(layer, inp2d_bf16, wih_ref, whh_ref, b_ref):
            # -- hoisted input projection: ONE big GEMM for all Tc steps ------
            # b_ref row 0 = b_ih + [b_hr, b_hz, 0]  (r/z hidden biases folded)
            gi = jnp.dot(inp2d_bf16, wih_ref[...],
                         preferred_element_type=jnp.float32)
            gi = gi + b_ref[0:1, :]
            gi_scr[...] = gi.reshape(Tc, Bt, H3)

            whh = whh_ref[...]                                  # (Hp, 3Hp) bf16
            # b_ref row 1 = full padded b_hh; only the n slice stays per-step.
            b_hn = jnp.broadcast_to(b_ref[1:2, 2 * Hp:H3], (Bt, Hp))  # hoisted

            def step(t, h_prev):
                gh = jnp.dot(h_prev.astype(jnp.bfloat16), whh,
                             preferred_element_type=jnp.float32)
                gi_t = gi_scr[t]                                # (Bt, 3Hp) f32
                r = jax.nn.sigmoid(gi_t[:, 0:Hp] + gh[:, 0:Hp])
                z = jax.nn.sigmoid(gi_t[:, Hp:2 * Hp] + gh[:, Hp:2 * Hp])
                n = jnp.tanh(gi_t[:, 2 * Hp:H3] + r * (gh[:, 2 * Hp:H3] + b_hn))
                h_new = n + z * (h_prev - n)                    # (1-z)n + z h
                act_scr[t] = h_new
                return h_new

            h_last = lax.fori_loop(0, Tc, step, h_carry[layer], unroll=unroll)
            h_carry[layer] = h_last

        # Layer 0 consumes the padded (already bf16) input block.
        x2d = x_ref[...].reshape(Tc * Bt, x_ref.shape[-1])
        run_layer(0, x2d, layer_refs[0], layer_refs[1], layer_refs[2])
        # TODO(synk): dropout between layers is identity at inference time.
        for l in range(1, n_layers):
            inp2d = act_scr[...].reshape(Tc * Bt, Hp).astype(jnp.bfloat16)
            run_layer(l, inp2d,
                      layer_refs[3 * l], layer_refs[3 * l + 1],
                      layer_refs[3 * l + 2])

        # -- fused output projection (fc): one GEMM per block ----------------
        feats = act_scr[...].reshape(Tc * Bt, Hp).astype(jnp.bfloat16)
        y = jnp.dot(feats, fcw_ref[...], preferred_element_type=jnp.float32)
        y = y + fcb_ref[...]
        out_ref[...] = y.reshape(Tc, Bt, out_ref.shape[-1]).astype(out_ref.dtype)

    return kernel


# --------------------------- weight re-layout helpers ------------------------
def _pad_gates_2d(w_t, in_pad, Hp):
    """w_t: (Din, 3H) -> (in_pad, 3*Hp); gates at Hp-aligned columns, zero pad."""
    din, h3 = w_t.shape
    h = h3 // 3
    cols = []
    for g in range(3):
        blk = w_t[:, g * h:(g + 1) * h]
        cols.append(jnp.pad(blk, ((0, in_pad - din), (0, Hp - h))))
    return jnp.concatenate(cols, axis=1)


def _pad_gates_1d(b, Hp):
    h = b.shape[0] // 3
    return jnp.concatenate(
        [jnp.pad(b[g * h:(g + 1) * h], (0, Hp - h)) for g in range(3)])


# --------------------------- tile-size selection ------------------------------
_VMEM_BUDGET = 44 * 1024 * 1024          # fits v7x 64 MiB with headroom


def _vmem_usage(Tc, Bt, Dp, Hp, Fp, n_layers, weight_bytes):
    inp = 2 * Tc * Bt * Dp * 2           # bf16 input, double-buffered
    out = 2 * Tc * Bt * Fp * 2           # bf16 output, double-buffered
    gi = Tc * Bt * 3 * Hp * 4            # f32 hoisted preactivations
    act = Tc * Bt * Hp * 4               # f32 inter-layer activations
    carry = n_layers * Bt * Hp * 4       # f32 recurrent carry
    return inp + out + gi + act + carry + 2 * weight_bytes


def _select_tiles(B, T, Dp, Hp, Fp, n_layers, weight_bytes):
    Bp8 = _round_up(B, 8)
    # Fill MXU rows (up to 256 on v6e/v7x; v5e's 128-wide MXU is a subset).
    Bt = min(Bp8, 256)
    # Guarantee >= 2 batch tiles when batch allows, so the "parallel" axis can
    # be sharded across both v7x TensorCores / megacore.
    if Bp8 >= 16 and Bp8 // Bt < 2:
        Bt = max(8, _round_up((Bp8 + 1) // 2, 8))
    Tc = T if T <= 256 else 256
    # Shrink to fit the VMEM budget: time chunk first, then batch tile.
    while _vmem_usage(Tc, Bt, Dp, Hp, Fp, n_layers, weight_bytes) > _VMEM_BUDGET \
            and Tc > 16:
        Tc = max(16, Tc // 2)
    while _vmem_usage(Tc, Bt, Dp, Hp, Fp, n_layers, weight_bytes) > _VMEM_BUDGET \
            and Bt > 8:
        Bt = max(8, Bt // 2)
    usage = _vmem_usage(Tc, Bt, Dp, Hp, Fp, n_layers, weight_bytes)
    return Tc, Bt, usage


# --------------------------------- wrapper -----------------------------------
@jax.jit
def net_forward(params, x):
    """x: (B, T, 2*n_skill) batch-first (like PyTorch). Returns (B, T, n_skill)."""
    B, T, Din = x.shape
    H = params["gru"][0]["w_hh"].shape[1]
    F = params["fc"]["w"].shape[0]
    n_layers = len(params["gru"])

    Hp = _round_up(H, 128)
    Dp = _round_up(Din, 128)
    Fp = _round_up(F, 128)

    # ----- weights: lane-dense [r|z|n] layout, bf16 for MXU ------------------
    weight_args = []
    weight_specs = []
    for l, lp in enumerate(params["gru"]):
        in_pad = Dp if l == 0 else Hp
        wih = _pad_gates_2d(lp["w_ih"].T.astype(jnp.float32),
                            in_pad, Hp).astype(jnp.bfloat16)
        whh = _pad_gates_2d(lp["w_hh"].T.astype(jnp.float32),
                            Hp, Hp).astype(jnp.bfloat16)
        b_ih_p = _pad_gates_1d(lp["b_ih"].astype(jnp.float32), Hp)
        b_hh_p = _pad_gates_1d(lp["b_hh"].astype(jnp.float32), Hp)
        # Fold b_hh's r/z slices into the hoisted GEMM bias; keep full b_hh in
        # row 1 so the kernel can slice b_hn for the in-step add.
        gi_bias = b_ih_p + jnp.concatenate(
            [b_hh_p[:2 * Hp], jnp.zeros((Hp,), jnp.float32)])
        bias = jnp.stack([gi_bias, b_hh_p], 0)                      # (2, 3Hp) f32
        weight_args += [wih, whh, bias]
        weight_specs += [pl.BlockSpec((in_pad, 3 * Hp), lambda b, t: (0, 0)),
                         pl.BlockSpec((Hp, 3 * Hp), lambda b, t: (0, 0)),
                         pl.BlockSpec((2, 3 * Hp), lambda b, t: (0, 0))]

    fcw = jnp.pad(params["fc"]["w"].T.astype(jnp.float32),
                  ((0, Hp - H), (0, Fp - F))).astype(jnp.bfloat16)
    fcb = jnp.pad(params["fc"]["b"].astype(jnp.float32),
                  (0, Fp - F)).reshape(1, Fp)
    weight_args += [fcw, fcb]
    weight_specs += [pl.BlockSpec((Hp, Fp), lambda b, t: (0, 0)),
                     pl.BlockSpec((1, Fp), lambda b, t: (0, 0))]

    weight_bytes = sum(int(w.size) * w.dtype.itemsize for w in weight_args)

    # ----- tiles from explicit VMEM budget -----------------------------------
    Tc, Bt, usage = _select_tiles(B, T, Dp, Hp, Fp, n_layers, weight_bytes)
    Bp = _round_up(B, Bt)
    Tp = _round_up(T, Tc)
    vmem_limit = min(56 * 1024 * 1024,
                     max(32 * 1024 * 1024, int(usage * 1.25)))

    # time-major, zero-padded, pre-cast bf16 input block (halves input DMA)
    x_tm = jnp.transpose(x, (1, 0, 2)).astype(jnp.bfloat16)
    x_tm = jnp.pad(x_tm, ((0, Tp - T), (0, Bp - B), (0, Dp - Din)))

    in_specs = [pl.BlockSpec((Tc, Bt, Dp), lambda b, t: (t, b, 0))] + weight_specs

    # unroll vs vreg pressure: large Bt keeps big gate tiles live -> unroll=2
    if Tc <= 32:
        unroll = True
    elif Bt >= 32:
        unroll = 2
    else:
        unroll = 4
    kernel = _make_fused_kernel(n_layers, Tc, Bt, Hp, unroll)

    out = pl.pallas_call(
        kernel,
        out_shape=jax.ShapeDtypeStruct((Tp, Bp, Fp), jnp.bfloat16),
        grid=(Bp // Bt, Tp // Tc),
        in_specs=in_specs,
        out_specs=pl.BlockSpec((Tc, Bt, Fp), lambda b, t: (t, b, 0)),
        scratch_shapes=[
            pltpu.VMEM((Tc, Bt, 3 * Hp), jnp.float32),    # hoisted gi per layer
            pltpu.VMEM((Tc, Bt, Hp), jnp.float32),        # inter-layer activations
            pltpu.VMEM((n_layers, Bt, Hp), jnp.float32),  # recurrent carry
        ],
        compiler_params=pltpu.CompilerParams(
            dimension_semantics=("parallel", "arbitrary"),
            vmem_limit_bytes=vmem_limit),
    )(x_tm, *weight_args)

    # (Tp, Bp, Fp) bf16 -> (B, T, n_skill) f32
    return out[:T, :B, :F].astype(jnp.float32).transpose(1, 0, 2)


# ----------------------------- pure-JAX reference -----------------------------
def net_reference(params, x):
    B, T, _ = x.shape
    h_all = x.astype(jnp.float32)
    for lp in params["gru"]:
        H = lp["w_hh"].shape[1]
        h = jnp.zeros((B, H), jnp.float32)
        outs = []
        for t in range(T):
            xt = h_all[:, t, :]
            gi = xt @ lp["w_ih"].T + lp["b_ih"]
            gh = h @ lp["w_hh"].T + lp["b_hh"]
            r = jax.nn.sigmoid(gi[:, :H] + gh[:, :H])
            z = jax.nn.sigmoid(gi[:, H:2 * H] + gh[:, H:2 * H])
            n = jnp.tanh(gi[:, 2 * H:] + r * gh[:, 2 * H:])
            h = (1.0 - z) * n + z * h
            outs.append(h)
        h_all = jnp.stack(outs, axis=1)
    return h_all @ params["fc"]["w"].T + params["fc"]["b"]


# -------------------------------- params -------------------------------------
def init_params(key, n_skill, hidden, n_layers):
    params = {"gru": [], "fc": None}
    bound = 1.0 / jnp.sqrt(hidden)
    for layer in range(n_layers):
        in_dim = 2 * n_skill if layer == 0 else hidden
        key, k1, k2, k3, k4 = jax.random.split(key, 5)
        params["gru"].append({
            "w_ih": jax.random.uniform(k1, (3 * hidden, in_dim), jnp.float32,
                                       -bound, bound),
            "w_hh": jax.random.uniform(k2, (3 * hidden, hidden), jnp.float32,
                                       -bound, bound),
            "b_ih": jax.random.uniform(k3, (3 * hidden,), jnp.float32,
                                       -bound, bound),
            "b_hh": jax.random.uniform(k4, (3 * hidden,), jnp.float32,
                                       -bound, bound),
        })
    key, k1, k2 = jax.random.split(key, 3)
    params["fc"] = {
        "w": jax.random.uniform(k1, (n_skill, hidden), jnp.float32,
                                -bound, bound),
        "b": jax.random.uniform(k2, (n_skill,), jnp.float32, -bound, bound),
    }
    return params


if __name__ == "__main__":
    n_skill, hidden, n_layers, dropout = 16, 32, 2, 0.2
    B, T = 2, 8

    key = jax.random.PRNGKey(0)
    key, pkey, xkey = jax.random.split(key, 3)
    params = init_params(pkey, n_skill, hidden, n_layers)
    x = jax.random.normal(xkey, (B, T, 2 * n_skill), jnp.float32)

    out = net_forward(params, x)
    jax.block_until_ready(out)
    assert out.shape == (B, T, n_skill), out.shape
    assert jnp.all(jnp.isfinite(out))

    ref = net_reference(params, x)
    max_err = float(jnp.max(jnp.abs(out - ref)))
    assert max_err < 5e-2, f"max abs diff vs reference: {max_err}"
    print("KERNEL_OK")
</pallas_src>

<mosaic_0001>
module attributes {stable_mosaic.version = 11 : i64} {
  func.func @kernel(%arg0: i32, %arg1: i32, %arg2: memref<8x8x128xbf16, #tpu.memory_space<vmem>>, %arg3: memref<128x384xbf16, #tpu.memory_space<vmem>>, %arg4: memref<128x384xbf16, #tpu.memory_space<vmem>>, %arg5: memref<2x384xf32, #tpu.memory_space<vmem>>, %arg6: memref<128x384xbf16, #tpu.memory_space<vmem>>, %arg7: memref<128x384xbf16, #tpu.memory_space<vmem>>, %arg8: memref<2x384xf32, #tpu.memory_space<vmem>>, %arg9: memref<128x128xbf16, #tpu.memory_space<vmem>>, %arg10: memref<1x128xf32, #tpu.memory_space<vmem>>, %arg11: memref<8x8x128xbf16, #tpu.memory_space<vmem>>, %arg12: memref<8x8x384xf32, #tpu.memory_space<vmem>>, %arg13: memref<8x8x128xf32, #tpu.memory_space<vmem>>, %arg14: memref<2x8x128xf32, #tpu.memory_space<vmem>>) attributes {dimension_semantics = [#tpu.dimension_semantics<parallel>, #tpu.dimension_semantics<arbitrary>], iteration_bounds = array<i64: 1, 1>, scalar_prefetch = 0 : i64, scratch_operands = 3 : i64, tpu.core_type = #tpu.core_type<tc>, window_params = [{transform_indices = @transform_0, window_bounds = array<i64: 8, 8, 128>}, {pipeline_mode = #tpu.pipeline_mode<synchronous>, transform_indices = @transform_1, window_bounds = array<i64: 128, 384>}, {pipeline_mode = #tpu.pipeline_mode<synchronous>, transform_indices = @transform_2, window_bounds = array<i64: 128, 384>}, {pipeline_mode = #tpu.pipeline_mode<synchronous>, transform_indices = @transform_3, window_bounds = array<i64: 2, 384>}, {pipeline_mode = #tpu.pipeline_mode<synchronous>, transform_indices = @transform_4, window_bounds = array<i64: 128, 384>}, {pipeline_mode = #tpu.pipeline_mode<synchronous>, transform_indices = @transform_5, window_bounds = array<i64: 128, 384>}, {pipeline_mode = #tpu.pipeline_mode<synchronous>, transform_indices = @transform_6, window_bounds = array<i64: 2, 384>}, {pipeline_mode = #tpu.pipeline_mode<synchronous>, transform_indices = @transform_7, window_bounds = array<i64: 128, 128>}, {pipeline_mode = #tpu.pipeline_mode<synchronous>, transform_indices = @transform_8, window_bounds = array<i64: 1, 128>}, {transform_indices = @transform_9, window_bounds = array<i64: 8, 8, 128>}]} {
    %c0_i32 = arith.constant 0 : i32
    %0 = arith.cmpi eq, %arg1, %c0_i32 : i32
    %1 = arith.extui %0 : i1 to i32
    %c0_i32_0 = arith.constant 0 : i32
    %2 = arith.cmpi ne, %1, %c0_i32_0 : i32
    scf.if %2 {
      %cst_172 = arith.constant 0.000000e+00 : f32
      %595 = vector.broadcast %cst_172 : f32 to vector<2x8x128xf32>
      %c0_173 = arith.constant 0 : index
      %c0_174 = arith.constant 0 : index
      %c0_175 = arith.constant 0 : index
      %596 = vector.load %arg14[%c0_173, %c0_174, %c0_175] : memref<2x8x128xf32, #tpu.memory_space<vmem>>, vector<2x8x128xf32>
      tpu.vector_store %arg14[%c0_173, %c0_174, %c0_175], %595 {strides = array<i32>} : memref<2x8x128xf32, #tpu.memory_space<vmem>>, vector<2x8x128xf32>,
    } else {
    }
    %c0 = arith.constant 0 : index
    %c0_1 = arith.constant 0 : index
    %c0_2 = arith.constant 0 : index
    %3 = vector.load %arg2[%c0, %c0_1, %c0_2] : memref<8x8x128xbf16, #tpu.memory_space<vmem>>, vector<8x8x128xbf16>
    %4 = vector.shape_cast %3 : vector<8x8x128xbf16> to vector<64x128xbf16>
    %c0_3 = arith.constant 0 : index
    %c0_4 = arith.constant 0 : index
    %5 = vector.load %arg3[%c0_3, %c0_4] : memref<128x384xbf16, #tpu.memory_space<vmem>>, vector<128x384xbf16>
    %cst = arith.constant dense<0.000000e+00> : vector<64x384xf32>
    %6 = tpu.matmul %4, %5, %cst {dimension_numbers = #tpu.dot_dimension_numbers<[1], [0], [0], [1], [0, 0, 1, 1], [], []>} : vector<64x128xbf16>, vector<128x384xbf16>, vector<64x384xf32> -> vector<64x384xf32>
    %c0_5 = arith.constant 0 : index
    %c0_6 = arith.constant 0 : index
    %7 = vector.load %arg5[%c0_5, %c0_6] : memref<2x384xf32, #tpu.memory_space<vmem>>, vector<1x384xf32>
    %8 = vector.broadcast %7 : vector<1x384xf32> to vector<64x384xf32>
    %9 = arith.addf %6, %8 : vector<64x384xf32>
    %10 = vector.shape_cast %9 : vector<64x384xf32> to vector<8x8x384xf32>
    %c0_7 = arith.constant 0 : index
    %c0_8 = arith.constant 0 : index
    %c0_9 = arith.constant 0 : index
    %11 = vector.load %arg12[%c0_7, %c0_8, %c0_9] : memref<8x8x384xf32, #tpu.memory_space<vmem>>, vector<8x8x384xf32>
    tpu.vector_store %arg12[%c0_7, %c0_8, %c0_9], %10 {strides = array<i32>} : memref<8x8x384xf32, #tpu.memory_space<vmem>>, vector<8x8x384xf32>,
    %c0_10 = arith.constant 0 : index
    %c0_11 = arith.constant 0 : index
    %12 = vector.load %arg4[%c0_10, %c0_11] : memref<128x384xbf16, #tpu.memory_space<vmem>>, vector<128x384xbf16>
    %c1 = arith.constant 1 : index
    %c256 = arith.constant 256 : index
    %13 = vector.load %arg5[%c1, %c256] : memref<2x384xf32, #tpu.memory_space<vmem>>, vector<1x128xf32>
    %14 = vector.shape_cast %13 : vector<1x128xf32> to vector<1x128xf32>
    %15 = vector.broadcast %14 : vector<1x128xf32> to vector<8x128xf32>
    %c0_12 = arith.constant 0 : index
    %c0_13 = arith.constant 0 : index
    %c0_14 = arith.constant 0 : index
    %16 = vector.load %arg14[%c0_12, %c0_13, %c0_14] : memref<2x8x128xf32, #tpu.memory_space<vmem>>, vector<1x8x128xf32>
    %17 = vector.shape_cast %16 : vector<1x8x128xf32> to vector<8x128xf32>
    %c0_i32_15 = arith.constant 0 : i32
    %18 = arith.truncf %17 : vector<8x128xf32> to vector<8x128xbf16>
    %cst_16 = arith.constant dense<0.000000e+00> : vector<8x384xf32>
    %19 = tpu.matmul %18, %12, %cst_16 {dimension_numbers = #tpu.dot_dimension_numbers<[1], [0], [0], [1], [0, 0, 1, 1], [], []>} : vector<8x128xbf16>, vector<128x384xbf16>, vector<8x384xf32> -> vector<8x384xf32>
    %20 = arith.index_cast %c0_i32_15 : i32 to index
    %c0_17 = arith.constant 0 : index
    %c0_18 = arith.constant 0 : index
    %21 = vector.load %arg12[%20, %c0_17, %c0_18] : memref<8x8x384xf32, #tpu.memory_space<vmem>>, vector<1x8x384xf32>
    %22 = vector.shape_cast %21 : vector<1x8x384xf32> to vector<8x384xf32>
    %23 = vector.extract_strided_slice %22 {offsets = [0, 0], sizes = [8, 128], strides = [1, 1]} : vector<8x384xf32> to vector<8x128xf32>
    %24 = vector.extract_strided_slice %19 {offsets = [0, 0], sizes = [8, 128], strides = [1, 1]} : vector<8x384xf32> to vector<8x128xf32>
    %25 = arith.addf %23, %24 : vector<8x128xf32>
    %26 = arith.negf %25 : vector<8x128xf32>
    %27 = math.exp %26 : vector<8x128xf32>
    %cst_19 = arith.constant 1.000000e+00 : f32
    %28 = vector.broadcast %cst_19 : f32 to vector<8x128xf32>
    %29 = arith.addf %28, %27 : vector<8x128xf32>
    %30 = arith.divf %28, %29 : vector<8x128xf32>
    %31 = vector.extract_strided_slice %22 {offsets = [0, 128], sizes = [8, 128], strides = [1, 1]} : vector<8x384xf32> to vector<8x128xf32>
    %32 = vector.extract_strided_slice %19 {offsets = [0, 128], sizes = [8, 128], strides = [1, 1]} : vector<8x384xf32> to vector<8x128xf32>
    %33 = arith.addf %31, %32 : vector<8x128xf32>
    %34 = arith.negf %33 : vector<8x128xf32>
    %35 = math.exp %34 : vector<8x128xf32>
    %cst_20 = arith.constant 1.000000e+00 : f32
    %36 = vector.broadcast %cst_20 : f32 to vector<8x128xf32>
    %37 = arith.addf %36, %35 : vector<8x128xf32>
    %38 = arith.divf %36, %37 : vector<8x128xf32>
    %39 = vector.extract_strided_slice %22 {offsets = [0, 256], sizes = [8, 128], strides = [1, 1]} : vector<8x384xf32> to vector<8x128xf32>
    %40 = vector.extract_strided_slice %19 {offsets = [0, 256], sizes = [8, 128], strides = [1, 1]} : vector<8x384xf32> to vector<8x128xf32>
    %41 = arith.addf %40, %15 : vector<8x128xf32>
    %42 = arith.mulf %30, %41 : vector<8x128xf32>
    %43 = arith.addf %39, %42 : vector<8x128xf32>
    %44 = math.tanh %43 : vector<8x128xf32>
    %45 = arith.subf %17, %44 : vector<8x128xf32>
    %46 = arith.mulf %38, %45 : vector<8x128xf32>
    %47 = arith.addf %44, %46 : vector<8x128xf32>
    %48 = arith.index_cast %c0_i32_15 : i32 to index
    %c0_21 = arith.constant 0 : index
    %c0_22 = arith.constant 0 : index
    %49 = vector.load %arg13[%48, %c0_21, %c0_22] : memref<8x8x128xf32, #tpu.memory_space<vmem>>, vector<1x8x128xf32>
    %50 = vector.shape_cast %49 : vector<1x8x128xf32> to vector<8x128xf32>
    %51 = vector.shape_cast %47 : vector<8x128xf32> to vector<1x8x128xf32>
    tpu.vector_store %arg13[%48, %c0_21, %c0_22], %51 {strides = array<i32>} : memref<8x8x128xf32, #tpu.memory_space<vmem>>, vector<1x8x128xf32>,
    %c1_i32 = arith.constant 1 : i32
    %52 = arith.truncf %47 : vector<8x128xf32> to vector<8x128xbf16>
    %cst_23 = arith.constant dense<0.000000e+00> : vector<8x384xf32>
    %53 = tpu.matmul %52, %12, %cst_23 {dimension_numbers = #tpu.dot_dimension_numbers<[1], [0], [0], [1], [0, 0, 1, 1], [], []>} : vector<8x128xbf16>, vector<128x384xbf16>, vector<8x384xf32> -> vector<8x384xf32>
    %54 = arith.index_cast %c1_i32 : i32 to index
    %c0_24 = arith.constant 0 : index
    %c0_25 = arith.constant 0 : index
    %55 = vector.load %arg12[%54, %c0_24, %c0_25] : memref<8x8x384xf32, #tpu.memory_space<vmem>>, vector<1x8x384xf32>
    %56 = vector.shape_cast %55 : vector<1x8x384xf32> to vector<8x384xf32>
    %57 = vector.extract_strided_slice %56 {offsets = [0, 0], sizes = [8, 128], strides = [1, 1]} : vector<8x384xf32> to vector<8x128xf32>
    %58 = vector.extract_strided_slice %53 {offsets = [0, 0], sizes = [8, 128], strides = [1, 1]} : vector<8x384xf32> to vector<8x128xf32>
    %59 = arith.addf %57, %58 : vector<8x128xf32>
    %60 = arith.negf %59 : vector<8x128xf32>
    %61 = math.exp %60 : vector<8x128xf32>
    %cst_26 = arith.constant 1.000000e+00 : f32
    %62 = vector.broadcast %cst_26 : f32 to vector<8x128xf32>
    %63 = arith.addf %62, %61 : vector<8x128xf32>
    %64 = arith.divf %62, %63 : vector<8x128xf32>
    %65 = vector.extract_strided_slice %56 {offsets = [0, 128], sizes = [8, 128], strides = [1, 1]} : vector<8x384xf32> to vector<8x128xf32>
    %66 = vector.extract_strided_slice %53 {offsets = [0, 128], sizes = [8, 128], strides = [1, 1]} : vector<8x384xf32> to vector<8x128xf32>
    %67 = arith.addf %65, %66 : vector<8x128xf32>
    %68 = arith.negf %67 : vector<8x128xf32>
    %69 = math.exp %68 : vector<8x128xf32>
    %cst_27 = arith.constant 1.000000e+00 : f32
    %70 = vector.broadcast %cst_27 : f32 to vector<8x128xf32>
    %71 = arith.addf %70, %69 : vector<8x128xf32>
    %72 = arith.divf %70, %71 : vector<8x128xf32>
    %73 = vector.extract_strided_slice %56 {offsets = [0, 256], sizes = [8, 128], strides = [1, 1]} : vector<8x384xf32> to vector<8x128xf32>
    %74 = vector.extract_strided_slice %53 {offsets = [0, 256], sizes = [8, 128], strides = [1, 1]} : vector<8x384xf32> to vector<8x128xf32>
    %75 = arith.addf %74, %15 : vector<8x128xf32>
    %76 = arith.mulf %64, %75 : vector<8x128xf32>
    %77 = arith.addf %73, %76 : vector<8x128xf32>
    %78 = math.tanh %77 : vector<8x128xf32>
    %79 = arith.subf %47, %78 : vector<8x128xf32>
    %80 = arith.mulf %72, %79 : vector<8x128xf32>
    %81 = arith.addf %78, %80 : vector<8x128xf32>
    %82 = arith.index_cast %c1_i32 : i32 to index
    %c0_28 = arith.constant 0 : index
    %c0_29 = arith.constant 0 : index
    %83 = vector.load %arg13[%82, %c0_28, %c0_29] : memref<8x8x128xf32, #tpu.memory_space<vmem>>, vector<1x8x128xf32>
    %84 = vector.shape_cast %83 : vector<1x8x128xf32> to vector<8x128xf32>
    %85 = vector.shape_cast %81 : vector<8x128xf32> to vector<1x8x128xf32>
    tpu.vector_store %arg13[%82, %c0_28, %c0_29], %85 {strides = array<i32>} : memref<8x8x128xf32, #tpu.memory_space<vmem>>, vector<1x8x128xf32>,
    %c2_i32 = arith.constant 2 : i32
    %86 = arith.truncf %81 : vector<8x128xf32> to vector<8x128xbf16>
    %cst_30 = arith.constant dense<0.000000e+00> : vector<8x384xf32>
    %87 = tpu.matmul %86, %12, %cst_30 {dimension_numbers = #tpu.dot_dimension_numbers<[1], [0], [0], [1], [0, 0, 1, 1], [], []>} : vector<8x128xbf16>, vector<128x384xbf16>, vector<8x384xf32> -> vector<8x384xf32>
    %88 = arith.index_cast %c2_i32 : i32 to index
    %c0_31 = arith.constant 0 : index
    %c0_32 = arith.constant 0 : index
    %89 = vector.load %arg12[%88, %c0_31, %c0_32] : memref<8x8x384xf32, #tpu.memory_space<vmem>>, vector<1x8x384xf32>
    %90 = vector.shape_cast %89 : vector<1x8x384xf32> to vector<8x384xf32>
    %91 = vector.extract_strided_slice %90 {offsets = [0, 0], sizes = [8, 128], strides = [1, 1]} : vector<8x384xf32> to vector<8x128xf32>
    %92 = vector.extract_strided_slice %87 {offsets = [0, 0], sizes = [8, 128], strides = [1, 1]} : vector<8x384xf32> to vector<8x128xf32>
    %93 = arith.addf %91, %92 : vector<8x128xf32>
    %94 = arith.negf %93 : vector<8x128xf32>
    %95 = math.exp %94 : vector<8x128xf32>
    %cst_33 = arith.constant 1.000000e+00 : f32
    %96 = vector.broadcast %cst_33 : f32 to vector<8x128xf32>
    %97 = arith.addf %96, %95 : vector<8x128xf32>
    %98 = arith.divf %96, %97 : vector<8x128xf32>
    %99 = vector.extract_strided_slice %90 {offsets = [0, 128], sizes = [8, 128], strides = [1, 1]} : vector<8x384xf32> to vector<8x128xf32>
    %100 = vector.extract_strided_slice %87 {offsets = [0, 128], sizes = [8, 128], strides = [1, 1]} : vector<8x384xf32> to vector<8x128xf32>
    %101 = arith.addf %99, %100 : vector<8x128xf32>
    %102 = arith.negf %101 : vector<8x128xf32>
    %103 = math.exp %102 : vector<8x128xf32>
    %cst_34 = arith.constant 1.000000e+00 : f32
    %104 = vector.broadcast %cst_34 : f32 to vector<8x128xf32>
    %105 = arith.addf %104, %103 : vector<8x128xf32>
    %106 = arith.divf %104, %105 : vector<8x128xf32>
    %107 = vector.extract_strided_slice %90 {offsets = [0, 256], sizes = [8, 128], strides = [1, 1]} : vector<8x384xf32> to vector<8x128xf32>
    %108 = vector.extract_strided_slice %87 {offsets = [0, 256], sizes = [8, 128], strides = [1, 1]} : vector<8x384xf32> to vector<8x128xf32>
    %109 = arith.addf %108, %15 : vector<8x128xf32>
    %110 = arith.mulf %98, %109 : vector<8x128xf32>
    %111 = arith.addf %107, %110 : vector<8x128xf32>
    %112 = math.tanh %111 : vector<8x128xf32>
    %113 = arith.subf %81, %112 : vector<8x128xf32>
    %114 = arith.mulf %106, %113 : vector<8x128xf32>
    %115 = arith.addf %112, %114 : vector<8x128xf32>
    %116 = arith.index_cast %c2_i32 : i32 to index
    %c0_35 = arith.constant 0 : index
    %c0_36 = arith.constant 0 : index
    %117 = vector.load %arg13[%116, %c0_35, %c0_36] : memref<8x8x128xf32, #tpu.memory_space<vmem>>, vector<1x8x128xf32>
    %118 = vector.shape_cast %117 : vector<1x8x128xf32> to vector<8x128xf32>
    %119 = vector.shape_cast %115 : vector<8x128xf32> to vector<1x8x128xf32>
    tpu.vector_store %arg13[%116, %c0_35, %c0_36], %119 {strides = array<i32>} : memref<8x8x128xf32, #tpu.memory_space<vmem>>, vector<1x8x128xf32>,
    %c3_i32 = arith.constant 3 : i32
    %120 = arith.truncf %115 : vector<8x128xf32> to vector<8x128xbf16>
    %cst_37 = arith.constant dense<0.000000e+00> : vector<8x384xf32>
    %121 = tpu.matmul %120, %12, %cst_37 {dimension_numbers = #tpu.dot_dimension_numbers<[1], [0], [0], [1], [0, 0, 1, 1], [], []>} : vector<8x128xbf16>, vector<128x384xbf16>, vector<8x384xf32> -> vector<8x384xf32>
    %122 = arith.index_cast %c3_i32 : i32 to index
    %c0_38 = arith.constant 0 : index
    %c0_39 = arith.constant 0 : index
    %123 = vector.load %arg12[%122, %c0_38, %c0_39] : memref<8x8x384xf32, #tpu.memory_space<vmem>>, vector<1x8x384xf32>
    %124 = vector.shape_cast %123 : vector<1x8x384xf32> to vector<8x384xf32>
    %125 = vector.extract_strided_slice %124 {offsets = [0, 0], sizes = [8, 128], strides = [1, 1]} : vector<8x384xf32> to vector<8x128xf32>
    %126 = vector.extract_strided_slice %121 {offsets = [0, 0], sizes = [8, 128], strides = [1, 1]} : vector<8x384xf32> to vector<8x128xf32>
    %127 = arith.addf %125, %126 : vector<8x128xf32>
    %128 = arith.negf %127 : vector<8x128xf32>
    %129 = math.exp %128 : vector<8x128xf32>
    %cst_40 = arith.constant 1.000000e+00 : f32
    %130 = vector.broadcast %cst_40 : f32 to vector<8x128xf32>
    %131 = arith.addf %130, %129 : vector<8x128xf32>
    %132 = arith.divf %130, %131 : vector<8x128xf32>
    %133 = vector.extract_strided_slice %124 {offsets = [0, 128], sizes = [8, 128], strides = [1, 1]} : vector<8x384xf32> to vector<8x128xf32>
    %134 = vector.extract_strided_slice %121 {offsets = [0, 128], sizes = [8, 128], strides = [1, 1]} : vector<8x384xf32> to vector<8x128xf32>
    %135 = arith.addf %133, %134 : vector<8x128xf32>
    %136 = arith.negf %135 : vector<8x128xf32>
    %137 = math.exp %136 : vector<8x128xf32>
    %cst_41 = arith.constant 1.000000e+00 : f32
    %138 = vector.broadcast %cst_41 : f32 to vector<8x128xf32>
    %139 = arith.addf %138, %137 : vector<8x128xf32>
    %140 = arith.divf %138, %139 : vector<8x128xf32>
    %141 = vector.extract_strided_slice %124 {offsets = [0, 256], sizes = [8, 128], strides = [1, 1]} : vector<8x384xf32> to vector<8x128xf32>
    %142 = vector.extract_strided_slice %121 {offsets = [0, 256], sizes = [8, 128], strides = [1, 1]} : vector<8x384xf32> to vector<8x128xf32>
    %143 = arith.addf %142, %15 : vector<8x128xf32>
    %144 = arith.mulf %132, %143 : vector<8x128xf32>
    %145 = arith.addf %141, %144 : vector<8x128xf32>
    %146 = math.tanh %145 : vector<8x128xf32>
    %147 = arith.subf %115, %146 : vector<8x128xf32>
    %148 = arith.mulf %140, %147 : vector<8x128xf32>
    %149 = arith.addf %146, %148 : vector<8x128xf32>
    %150 = arith.index_cast %c3_i32 : i32 to index
    %c0_42 = arith.constant 0 : index
    %c0_43 = arith.constant 0 : index
    %151 = vector.load %arg13[%150, %c0_42, %c0_43] : memref<8x8x128xf32, #tpu.memory_space<vmem>>, vector<1x8x128xf32>
    %152 = vector.shape_cast %151 : vector<1x8x128xf32> to vector<8x128xf32>
    %153 = vector.shape_cast %149 : vector<8x128xf32> to vector<1x8x128xf32>
    tpu.vector_store %arg13[%150, %c0_42, %c0_43], %153 {strides = array<i32>} : memref<8x8x128xf32, #tpu.memory_space<vmem>>, vector<1x8x128xf32>,
    %c4_i32 = arith.constant 4 : i32
    %154 = arith.truncf %149 : vector<8x128xf32> to vector<8x128xbf16>
    %cst_44 = arith.constant dense<0.000000e+00> : vector<8x384xf32>
    %155 = tpu.matmul %154, %12, %cst_44 {dimension_numbers = #tpu.dot_dimension_numbers<[1], [0], [0], [1], [0, 0, 1, 1], [], []>} : vector<8x128xbf16>, vector<128x384xbf16>, vector<8x384xf32> -> vector<8x384xf32>
    %156 = arith.index_cast %c4_i32 : i32 to index
    %c0_45 = arith.constant 0 : index
    %c0_46 = arith.constant 0 : index
    %157 = vector.load %arg12[%156, %c0_45, %c0_46] : memref<8x8x384xf32, #tpu.memory_space<vmem>>, vector<1x8x384xf32>
    %158 = vector.shape_cast %157 : vector<1x8x384xf32> to vector<8x384xf32>
    %159 = vector.extract_strided_slice %158 {offsets = [0, 0], sizes = [8, 128], strides = [1, 1]} : vector<8x384xf32> to vector<8x128xf32>
    %160 = vector.extract_strided_slice %155 {offsets = [0, 0], sizes = [8, 128], strides = [1, 1]} : vector<8x384xf32> to vector<8x128xf32>
    %161 = arith.addf %159, %160 : vector<8x128xf32>
    %162 = arith.negf %161 : vector<8x128xf32>
    %163 = math.exp %162 : vector<8x128xf32>
    %cst_47 = arith.constant 1.000000e+00 : f32
    %164 = vector.broadcast %cst_47 : f32 to vector<8x128xf32>
    %165 = arith.addf %164, %163 : vector<8x128xf32>
    %166 = arith.divf %164, %165 : vector<8x128xf32>
    %167 = vector.extract_strided_slice %158 {offsets = [0, 128], sizes = [8, 128], strides = [1, 1]} : vector<8x384xf32> to vector<8x128xf32>
    %168 = vector.extract_strided_slice %155 {offsets = [0, 128], sizes = [8, 128], strides = [1, 1]} : vector<8x384xf32> to vector<8x128xf32>
    %169 = arith.addf %167, %168 : vector<8x128xf32>
    %170 = arith.negf %169 : vector<8x128xf32>
    %171 = math.exp %170 : vector<8x128xf32>
    %cst_48 = arith.constant 1.000000e+00 : f32
    %172 = vector.broadcast %cst_48 : f32 to vector<8x128xf32>
    %173 = arith.addf %172, %171 : vector<8x128xf32>
    %174 = arith.divf %172, %173 : vector<8x128xf32>
    %175 = vector.extract_strided_slice %158 {offsets = [0, 256], sizes = [8, 128], strides = [1, 1]} : vector<8x384xf32> to vector<8x128xf32>
    %176 = vector.extract_strided_slice %155 {offsets = [0, 256], sizes = [8, 128], strides = [1, 1]} : vector<8x384xf32> to vector<8x128xf32>
    %177 = arith.addf %176, %15 : vector<8x128xf32>
    %178 = arith.mulf %166, %177 : vector<8x128xf32>
    %179 = arith.addf %175, %178 : vector<8x128xf32>
    %180 = math.tanh %179 : vector<8x128xf32>
    %181 = arith.subf %149, %180 : vector<8x128xf32>
    %182 = arith.mulf %174, %181 : vector<8x128xf32>
    %183 = arith.addf %180, %182 : vector<8x128xf32>
    %184 = arith.index_cast %c4_i32 : i32 to index
    %c0_49 = arith.constant 0 : index
    %c0_50 = arith.constant 0 : index
    %185 = vector.load %arg13[%184, %c0_49, %c0_50] : memref<8x8x128xf32, #tpu.memory_space<vmem>>, vector<1x8x128xf32>
    %186 = vector.shape_cast %185 : vector<1x8x128xf32> to vector<8x128xf32>
    %187 = vector.shape_cast %183 : vector<8x128xf32> to vector<1x8x128xf32>
    tpu.vector_store %arg13[%184, %c0_49, %c0_50], %187 {strides = array<i32>} : memref<8x8x128xf32, #tpu.memory_space<vmem>>, vector<1x8x128xf32>,
    %c5_i32 = arith.constant 5 : i32
    %188 = arith.truncf %183 : vector<8x128xf32> to vector<8x128xbf16>
    %cst_51 = arith.constant dense<0.000000e+00> : vector<8x384xf32>
    %189 = tpu.matmul %188, %12, %cst_51 {dimension_numbers = #tpu.dot_dimension_numbers<[1], [0], [0], [1], [0, 0, 1, 1], [], []>} : vector<8x128xbf16>, vector<128x384xbf16>, vector<8x384xf32> -> vector<8x384xf32>
    %190 = arith.index_cast %c5_i32 : i32 to index
    %c0_52 = arith.constant 0 : index
    %c0_53 = arith.constant 0 : index
    %191 = vector.load %arg12[%190, %c0_52, %c0_53] : memref<8x8x384xf32, #tpu.memory_space<vmem>>, vector<1x8x384xf32>
    %192 = vector.shape_cast %191 : vector<1x8x384xf32> to vector<8x384xf32>
    %193 = vector.extract_strided_slice %192 {offsets = [0, 0], sizes = [8, 128], strides = [1, 1]} : vector<8x384xf32> to vector<8x128xf32>
    %194 = vector.extract_strided_slice %189 {offsets = [0, 0], sizes = [8, 128], strides = [1, 1]} : vector<8x384xf32> to vector<8x128xf32>
    %195 = arith.addf %193, %194 : vector<8x128xf32>
    %196 = arith.negf %195 : vector<8x128xf32>
    %197 = math.exp %196 : vector<8x128xf32>
    %cst_54 = arith.constant 1.000000e+00 : f32
    %198 = vector.broadcast %cst_54 : f32 to vector<8x128xf32>
    %199 = arith.addf %198, %197 : vector<8x128xf32>
    %200 = arith.divf %198, %199 : vector<8x128xf32>
    %201 = vector.extract_strided_slice %192 {offsets = [0, 128], sizes = [8, 128], strides = [1, 1]} : vector<8x384xf32> to vector<8x128xf32>
    %202 = vector.extract_strided_slice %189 {offsets = [0, 128], sizes = [8, 128], strides = [1, 1]} : vector<8x384xf32> to vector<8x128xf32>
    %203 = arith.addf %201, %202 : vector<8x128xf32>
    %204 = arith.negf %203 : vector<8x128xf32>
    %205 = math.exp %204 : vector<8x128xf32>
    %cst_55 = arith.constant 1.000000e+00 : f32
    %206 = vector.broadcast %cst_55 : f32 to vector<8x128xf32>
    %207 = arith.addf %206, %205 : vector<8x128xf32>
    %208 = arith.divf %206, %207 : vector<8x128xf32>
    %209 = vector.extract_strided_slice %192 {offsets = [0, 256], sizes = [8, 128], strides = [1, 1]} : vector<8x384xf32> to vector<8x128xf32>
    %210 = vector.extract_strided_slice %189 {offsets = [0, 256], sizes = [8, 128], strides = [1, 1]} : vector<8x384xf32> to vector<8x128xf32>
    %211 = arith.addf %210, %15 : vector<8x128xf32>
    %212 = arith.mulf %200, %211 : vector<8x128xf32>
    %213 = arith.addf %209, %212 : vector<8x128xf32>
    %214 = math.tanh %213 : vector<8x128xf32>
    %215 = arith.subf %183, %214 : vector<8x128xf32>
    %216 = arith.mulf %208, %215 : vector<8x128xf32>
    %217 = arith.addf %214, %216 : vector<8x128xf32>
    %218 = arith.index_cast %c5_i32 : i32 to index
    %c0_56 = arith.constant 0 : index
    %c0_57 = arith.constant 0 : index
    %219 = vector.load %arg13[%218, %c0_56, %c0_57] : memref<8x8x128xf32, #tpu.memory_space<vmem>>, vector<1x8x128xf32>
    %220 = vector.shape_cast %219 : vector<1x8x128xf32> to vector<8x128xf32>
    %221 = vector.shape_cast %217 : vector<8x128xf32> to vector<1x8x128xf32>
    tpu.vector_store %arg13[%218, %c0_56, %c0_57], %221 {strides = array<i32>} : memref<8x8x128xf32, #tpu.memory_space<vmem>>, vector<1x8x128xf32>,
    %c6_i32 = arith.constant 6 : i32
    %222 = arith.truncf %217 : vector<8x128xf32> to vector<8x128xbf16>
    %cst_58 = arith.constant dense<0.000000e+00> : vector<8x384xf32>
    %223 = tpu.matmul %222, %12, %cst_58 {dimension_numbers = #tpu.dot_dimension_numbers<[1], [0], [0], [1], [0, 0, 1, 1], [], []>} : vector<8x128xbf16>, vector<128x384xbf16>, vector<8x384xf32> -> vector<8x384xf32>
    %224 = arith.index_cast %c6_i32 : i32 to index
    %c0_59 = arith.constant 0 : index
    %c0_60 = arith.constant 0 : index
    %225 = vector.load %arg12[%224, %c0_59, %c0_60] : memref<8x8x384xf32, #tpu.memory_space<vmem>>, vector<1x8x384xf32>
    %226 = vector.shape_cast %225 : vector<1x8x384xf32> to vector<8x384xf32>
    %227 = vector.extract_strided_slice %226 {offsets = [0, 0], sizes = [8, 128], strides = [1, 1]} : vector<8x384xf32> to vector<8x128xf32>
    %228 = vector.extract_strided_slice %223 {offsets = [0, 0], sizes = [8, 128], strides = [1, 1]} : vector<8x384xf32> to vector<8x128xf32>
    %229 = arith.addf %227, %228 : vector<8x128xf32>
    %230 = arith.negf %229 : vector<8x128xf32>
    %231 = math.exp %230 : vector<8x128xf32>
    %cst_61 = arith.constant 1.000000e+00 : f32
    %232 = vector.broadcast %cst_61 : f32 to vector<8x128xf32>
    %233 = arith.addf %232, %231 : vector<8x128xf32>
    %234 = arith.divf %232, %233 : vector<8x128xf32>
    %235 = vector.extract_strided_slice %226 {offsets = [0, 128], sizes = [8, 128], strides = [1, 1]} : vector<8x384xf32> to vector<8x128xf32>
    %236 = vector.extract_strided_slice %223 {offsets = [0, 128], sizes = [8, 128], strides = [1, 1]} : vector<8x384xf32> to vector<8x128xf32>
    %237 = arith.addf %235, %236 : vector<8x128xf32>
    %238 = arith.negf %237 : vector<8x128xf32>
    %239 = math.exp %238 : vector<8x128xf32>
    %cst_62 = arith.constant 1.000000e+00 : f32
    %240 = vector.broadcast %cst_62 : f32 to vector<8x128xf32>
    %241 = arith.addf %240, %239 : vector<8x128xf32>
    %242 = arith.divf %240, %241 : vector<8x128xf32>
    %243 = vector.extract_strided_slice %226 {offsets = [0, 256], sizes = [8, 128], strides = [1, 1]} : vector<8x384xf32> to vector<8x128xf32>
    %244 = vector.extract_strided_slice %223 {offsets = [0, 256], sizes = [8, 128], strides = [1, 1]} : vector<8x384xf32> to vector<8x128xf32>
    %245 = arith.addf %244, %15 : vector<8x128xf32>
    %246 = arith.mulf %234, %245 : vector<8x128xf32>
    %247 = arith.addf %243, %246 : vector<8x128xf32>
    %248 = math.tanh %247 : vector<8x128xf32>
    %249 = arith.subf %217, %248 : vector<8x128xf32>
    %250 = arith.mulf %242, %249 : vector<8x128xf32>
    %251 = arith.addf %248, %250 : vector<8x128xf32>
    %252 = arith.index_cast %c6_i32 : i32 to index
    %c0_63 = arith.constant 0 : index
    %c0_64 = arith.constant 0 : index
    %253 = vector.load %arg13[%252, %c0_63, %c0_64] : memref<8x8x128xf32, #tpu.memory_space<vmem>>, vector<1x8x128xf32>
    %254 = vector.shape_cast %253 : vector<1x8x128xf32> to vector<8x128xf32>
    %255 = vector.shape_cast %251 : vector<8x128xf32> to vector<1x8x128xf32>
    tpu.vector_store %arg13[%252, %c0_63, %c0_64], %255 {strides = array<i32>} : memref<8x8x128xf32, #tpu.memory_space<vmem>>, vector<1x8x128xf32>,
    %c7_i32 = arith.constant 7 : i32
    %256 = arith.truncf %251 : vector<8x128xf32> to vector<8x128xbf16>
    %cst_65 = arith.constant dense<0.000000e+00> : vector<8x384xf32>
    %257 = tpu.matmul %256, %12, %cst_65 {dimension_numbers = #tpu.dot_dimension_numbers<[1], [0], [0], [1], [0, 0, 1, 1], [], []>} : vector<8x128xbf16>, vector<128x384xbf16>, vector<8x384xf32> -> vector<8x384xf32>
    %258 = arith.index_cast %c7_i32 : i32 to index
    %c0_66 = arith.constant 0 : index
    %c0_67 = arith.constant 0 : index
    %259 = vector.load %arg12[%258, %c0_66, %c0_67] : memref<8x8x384xf32, #tpu.memory_space<vmem>>, vector<1x8x384xf32>
    %260 = vector.shape_cast %259 : vector<1x8x384xf32> to vector<8x384xf32>
    %261 = vector.extract_strided_slice %260 {offsets = [0, 0], sizes = [8, 128], strides = [1, 1]} : vector<8x384xf32> to vector<8x128xf32>
    %262 = vector.extract_strided_slice %257 {offsets = [0, 0], sizes = [8, 128], strides = [1, 1]} : vector<8x384xf32> to vector<8x128xf32>
    %263 = arith.addf %261, %262 : vector<8x128xf32>
    %264 = arith.negf %263 : vector<8x128xf32>
    %265 = math.exp %264 : vector<8x128xf32>
    %cst_68 = arith.constant 1.000000e+00 : f32
    %266 = vector.broadcast %cst_68 : f32 to vector<8x128xf32>
    %267 = arith.addf %266, %265 : vector<8x128xf32>
    %268 = arith.divf %266, %267 : vector<8x128xf32>
    %269 = vector.extract_strided_slice %260 {offsets = [0, 128], sizes = [8, 128], strides = [1, 1]} : vector<8x384xf32> to vector<8x128xf32>
    %270 = vector.extract_strided_slice %257 {offsets = [0, 128], sizes = [8, 128], strides = [1, 1]} : vector<8x384xf32> to vector<8x128xf32>
    %271 = arith.addf %269, %270 : vector<8x128xf32>
    %272 = arith.negf %271 : vector<8x128xf32>
    %273 = math.exp %272 : vector<8x128xf32>
    %cst_69 = arith.constant 1.000000e+00 : f32
    %274 = vector.broadcast %cst_69 : f32 to vector<8x128xf32>
    %275 = arith.addf %274, %273 : vector<8x128xf32>
    %276 = arith.divf %274, %275 : vector<8x128xf32>
    %277 = vector.extract_strided_slice %260 {offsets = [0, 256], sizes = [8, 128], strides = [1, 1]} : vector<8x384xf32> to vector<8x128xf32>
    %278 = vector.extract_strided_slice %257 {offsets = [0, 256], sizes = [8, 128], strides = [1, 1]} : vector<8x384xf32> to vector<8x128xf32>
    %279 = arith.addf %278, %15 : vector<8x128xf32>
    %280 = arith.mulf %268, %279 : vector<8x128xf32>
    %281 = arith.addf %277, %280 : vector<8x128xf32>
    %282 = math.tanh %281 : vector<8x128xf32>
    %283 = arith.subf %251, %282 : vector<8x128xf32>
    %284 = arith.mulf %276, %283 : vector<8x128xf32>
    %285 = arith.addf %282, %284 : vector<8x128xf32>
    %286 = arith.index_cast %c7_i32 : i32 to index
    %c0_70 = arith.constant 0 : index
    %c0_71 = arith.constant 0 : index
    %287 = vector.load %arg13[%286, %c0_70, %c0_71] : memref<8x8x128xf32, #tpu.memory_space<vmem>>, vector<1x8x128xf32>
    %288 = vector.shape_cast %287 : vector<1x8x128xf32> to vector<8x128xf32>
    %289 = vector.shape_cast %285 : vector<8x128xf32> to vector<1x8x128xf32>
    tpu.vector_store %arg13[%286, %c0_70, %c0_71], %289 {strides = array<i32>} : memref<8x8x128xf32, #tpu.memory_space<vmem>>, vector<1x8x128xf32>,
    %c8_i32 = arith.constant 8 : i32
    %c0_72 = arith.constant 0 : index
    %c0_73 = arith.constant 0 : index
    %c0_74 = arith.constant 0 : index
    %290 = vector.load %arg14[%c0_72, %c0_73, %c0_74] : memref<2x8x128xf32, #tpu.memory_space<vmem>>, vector<1x8x128xf32>
    %291 = vector.shape_cast %290 : vector<1x8x128xf32> to vector<8x128xf32>
    %292 = vector.shape_cast %285 : vector<8x128xf32> to vector<1x8x128xf32>
    tpu.vector_store %arg14[%c0_72, %c0_73, %c0_74], %292 {strides = array<i32>} : memref<2x8x128xf32, #tpu.memory_space<vmem>>, vector<1x8x128xf32>,
    %c0_75 = arith.constant 0 : index
    %c0_76 = arith.constant 0 : index
    %c0_77 = arith.constant 0 : index
    %293 = vector.load %arg13[%c0_75, %c0_76, %c0_77] : memref<8x8x128xf32, #tpu.memory_space<vmem>>, vector<8x8x128xf32>
    %294 = vector.shape_cast %293 : vector<8x8x128xf32> to vector<64x128xf32>
    %295 = arith.truncf %294 : vector<64x128xf32> to vector<64x128xbf16>
    %c0_78 = arith.constant 0 : index
    %c0_79 = arith.constant 0 : index
    %296 = vector.load %arg6[%c0_78, %c0_79] : memref<128x384xbf16, #tpu.memory_space<vmem>>, vector<128x384xbf16>
    %cst_80 = arith.constant dense<0.000000e+00> : vector<64x384xf32>
    %297 = tpu.matmul %295, %296, %cst_80 {dimension_numbers = #tpu.dot_dimension_numbers<[1], [0], [0], [1], [0, 0, 1, 1], [], []>} : vector<64x128xbf16>, vector<128x384xbf16>, vector<64x384xf32> -> vector<64x384xf32>
    %c0_81 = arith.constant 0 : index
    %c0_82 = arith.constant 0 : index
    %298 = vector.load %arg8[%c0_81, %c0_82] : memref<2x384xf32, #tpu.memory_space<vmem>>, vector<1x384xf32>
    %299 = vector.broadcast %298 : vector<1x384xf32> to vector<64x384xf32>
    %300 = arith.addf %297, %299 : vector<64x384xf32>
    %301 = vector.shape_cast %300 : vector<64x384xf32> to vector<8x8x384xf32>
    %c0_83 = arith.constant 0 : index
    %c0_84 = arith.constant 0 : index
    %c0_85 = arith.constant 0 : index
    %302 = vector.load %arg12[%c0_83, %c0_84, %c0_85] : memref<8x8x384xf32, #tpu.memory_space<vmem>>, vector<8x8x384xf32>
    tpu.vector_store %arg12[%c0_83, %c0_84, %c0_85], %301 {strides = array<i32>} : memref<8x8x384xf32, #tpu.memory_space<vmem>>, vector<8x8x384xf32>,
    %c0_86 = arith.constant 0 : index
    %c0_87 = arith.constant 0 : index
    %303 = vector.load %arg7[%c0_86, %c0_87] : memref<128x384xbf16, #tpu.memory_space<vmem>>, vector<128x384xbf16>
    %c1_88 = arith.constant 1 : index
    %c256_89 = arith.constant 256 : index
    %304 = vector.load %arg8[%c1_88, %c256_89] : memref<2x384xf32, #tpu.memory_space<vmem>>, vector<1x128xf32>
    %305 = vector.shape_cast %304 : vector<1x128xf32> to vector<1x128xf32>
    %306 = vector.broadcast %305 : vector<1x128xf32> to vector<8x128xf32>
    %c1_90 = arith.constant 1 : index
    %c0_91 = arith.constant 0 : index
    %c0_92 = arith.constant 0 : index
    %307 = vector.load %arg14[%c1_90, %c0_91, %c0_92] : memref<2x8x128xf32, #tpu.memory_space<vmem>>, vector<1x8x128xf32>
    %308 = vector.shape_cast %307 : vector<1x8x128xf32> to vector<8x128xf32>
    %c0_i32_93 = arith.constant 0 : i32
    %309 = arith.truncf %308 : vector<8x128xf32> to vector<8x128xbf16>
    %cst_94 = arith.constant dense<0.000000e+00> : vector<8x384xf32>
    %310 = tpu.matmul %309, %303, %cst_94 {dimension_numbers = #tpu.dot_dimension_numbers<[1], [0], [0], [1], [0, 0, 1, 1], [], []>} : vector<8x128xbf16>, vector<128x384xbf16>, vector<8x384xf32> -> vector<8x384xf32>
    %311 = arith.index_cast %c0_i32_93 : i32 to index
    %c0_95 = arith.constant 0 : index
    %c0_96 = arith.constant 0 : index
    %312 = vector.load %arg12[%311, %c0_95, %c0_96] : memref<8x8x384xf32, #tpu.memory_space<vmem>>, vector<1x8x384xf32>
    %313 = vector.shape_cast %312 : vector<1x8x384xf32> to vector<8x384xf32>
    %314 = vector.extract_strided_slice %313 {offsets = [0, 0], sizes = [8, 128], strides = [1, 1]} : vector<8x384xf32> to vector<8x128xf32>
    %315 = vector.extract_strided_slice %310 {offsets = [0, 0], sizes = [8, 128], strides = [1, 1]} : vector<8x384xf32> to vector<8x128xf32>
    %316 = arith.addf %314, %315 : vector<8x128xf32>
    %317 = arith.negf %316 : vector<8x128xf32>
    %318 = math.exp %317 : vector<8x128xf32>
    %cst_97 = arith.constant 1.000000e+00 : f32
    %319 = vector.broadcast %cst_97 : f32 to vector<8x128xf32>
    %320 = arith.addf %319, %318 : vector<8x128xf32>
    %321 = arith.divf %319, %320 : vector<8x128xf32>
    %322 = vector.extract_strided_slice %313 {offsets = [0, 128], sizes = [8, 128], strides = [1, 1]} : vector<8x384xf32> to vector<8x128xf32>
    %323 = vector.extract_strided_slice %310 {offsets = [0, 128], sizes = [8, 128], strides = [1, 1]} : vector<8x384xf32> to vector<8x128xf32>
    %324 = arith.addf %322, %323 : vector<8x128xf32>
    %325 = arith.negf %324 : vector<8x128xf32>
    %326 = math.exp %325 : vector<8x128xf32>
    %cst_98 = arith.constant 1.000000e+00 : f32
    %327 = vector.broadcast %cst_98 : f32 to vector<8x128xf32>
    %328 = arith.addf %327, %326 : vector<8x128xf32>
    %329 = arith.divf %327, %328 : vector<8x128xf32>
    %330 = vector.extract_strided_slice %313 {offsets = [0, 256], sizes = [8, 128], strides = [1, 1]} : vector<8x384xf32> to vector<8x128xf32>
    %331 = vector.extract_strided_slice %310 {offsets = [0, 256], sizes = [8, 128], strides = [1, 1]} : vector<8x384xf32> to vector<8x128xf32>
    %332 = arith.addf %331, %306 : vector<8x128xf32>
    %333 = arith.mulf %321, %332 : vector<8x128xf32>
    %334 = arith.addf %330, %333 : vector<8x128xf32>
    %335 = math.tanh %334 : vector<8x128xf32>
    %336 = arith.subf %308, %335 : vector<8x128xf32>
    %337 = arith.mulf %329, %336 : vector<8x128xf32>
    %338 = arith.addf %335, %337 : vector<8x128xf32>
    %339 = arith.index_cast %c0_i32_93 : i32 to index
    %c0_99 = arith.constant 0 : index
    %c0_100 = arith.constant 0 : index
    %340 = vector.load %arg13[%339, %c0_99, %c0_100] : memref<8x8x128xf32, #tpu.memory_space<vmem>>, vector<1x8x128xf32>
    %341 = vector.shape_cast %340 : vector<1x8x128xf32> to vector<8x128xf32>
    %342 = vector.shape_cast %338 : vector<8x128xf32> to vector<1x8x128xf32>
    tpu.vector_store %arg13[%339, %c0_99, %c0_100], %342 {strides = array<i32>} : memref<8x8x128xf32, #tpu.memory_space<vmem>>, vector<1x8x128xf32>,
    %c1_i32_101 = arith.constant 1 : i32
    %343 = arith.truncf %338 : vector<8x128xf32> to vector<8x128xbf16>
    %cst_102 = arith.constant dense<0.000000e+00> : vector<8x384xf32>
    %344 = tpu.matmul %343, %303, %cst_102 {dimension_numbers = #tpu.dot_dimension_numbers<[1], [0], [0], [1], [0, 0, 1, 1], [], []>} : vector<8x128xbf16>, vector<128x384xbf16>, vector<8x384xf32> -> vector<8x384xf32>
    %345 = arith.index_cast %c1_i32_101 : i32 to index
    %c0_103 = arith.constant 0 : index
    %c0_104 = arith.constant 0 : index
    %346 = vector.load %arg12[%345, %c0_103, %c0_104] : memref<8x8x384xf32, #tpu.memory_space<vmem>>, vector<1x8x384xf32>
    %347 = vector.shape_cast %346 : vector<1x8x384xf32> to vector<8x384xf32>
    %348 = vector.extract_strided_slice %347 {offsets = [0, 0], sizes = [8, 128], strides = [1, 1]} : vector<8x384xf32> to vector<8x128xf32>
    %349 = vector.extract_strided_slice %344 {offsets = [0, 0], sizes = [8, 128], strides = [1, 1]} : vector<8x384xf32> to vector<8x128xf32>
    %350 = arith.addf %348, %349 : vector<8x128xf32>
    %351 = arith.negf %350 : vector<8x128xf32>
    %352 = math.exp %351 : vector<8x128xf32>
    %cst_105 = arith.constant 1.000000e+00 : f32
    %353 = vector.broadcast %cst_105 : f32 to vector<8x128xf32>
    %354 = arith.addf %353, %352 : vector<8x128xf32>
    %355 = arith.divf %353, %354 : vector<8x128xf32>
    %356 = vector.extract_strided_slice %347 {offsets = [0, 128], sizes = [8, 128], strides = [1, 1]} : vector<8x384xf32> to vector<8x128xf32>
    %357 = vector.extract_strided_slice %344 {offsets = [0, 128], sizes = [8, 128], strides = [1, 1]} : vector<8x384xf32> to vector<8x128xf32>
    %358 = arith.addf %356, %357 : vector<8x128xf32>
    %359 = arith.negf %358 : vector<8x128xf32>
    %360 = math.exp %359 : vector<8x128xf32>
    %cst_106 = arith.constant 1.000000e+00 : f32
    %361 = vector.broadcast %cst_106 : f32 to vector<8x128xf32>
    %362 = arith.addf %361, %360 : vector<8x128xf32>
    %363 = arith.divf %361, %362 : vector<8x128xf32>
    %364 = vector.extract_strided_slice %347 {offsets = [0, 256], sizes = [8, 128], strides = [1, 1]} : vector<8x384xf32> to vector<8x128xf32>
    %365 = vector.extract_strided_slice %344 {offsets = [0, 256], sizes = [8, 128], strides = [1, 1]} : vector<8x384xf32> to vector<8x128xf32>
    %366 = arith.addf %365, %306 : vector<8x128xf32>
    %367 = arith.mulf %355, %366 : vector<8x128xf32>
    %368 = arith.addf %364, %367 : vector<8x128xf32>
    %369 = math.tanh %368 : vector<8x128xf32>
    %370 = arith.subf %338, %369 : vector<8x128xf32>
    %371 = arith.mulf %363, %370 : vector<8x128xf32>
    %372 = arith.addf %369, %371 : vector<8x128xf32>
    %373 = arith.index_cast %c1_i32_101 : i32 to index
    %c0_107 = arith.constant 0 : index
    %c0_108 = arith.constant 0 : index
    %374 = vector.load %arg13[%373, %c0_107, %c0_108] : memref<8x8x128xf32, #tpu.memory_space<vmem>>, vector<1x8x128xf32>
    %375 = vector.shape_cast %374 : vector<1x8x128xf32> to vector<8x128xf32>
    %376 = vector.shape_cast %372 : vector<8x128xf32> to vector<1x8x128xf32>
    tpu.vector_store %arg13[%373, %c0_107, %c0_108], %376 {strides = array<i32>} : memref<8x8x128xf32, #tpu.memory_space<vmem>>, vector<1x8x128xf32>,
    %c2_i32_109 = arith.constant 2 : i32
    %377 = arith.truncf %372 : vector<8x128xf32> to vector<8x128xbf16>
    %cst_110 = arith.constant dense<0.000000e+00> : vector<8x384xf32>
    %378 = tpu.matmul %377, %303, %cst_110 {dimension_numbers = #tpu.dot_dimension_numbers<[1], [0], [0], [1], [0, 0, 1, 1], [], []>} : vector<8x128xbf16>, vector<128x384xbf16>, vector<8x384xf32> -> vector<8x384xf32>
    %379 = arith.index_cast %c2_i32_109 : i32 to index
    %c0_111 = arith.constant 0 : index
    %c0_112 = arith.constant 0 : index
    %380 = vector.load %arg12[%379, %c0_111, %c0_112] : memref<8x8x384xf32, #tpu.memory_space<vmem>>, vector<1x8x384xf32>
    %381 = vector.shape_cast %380 : vector<1x8x384xf32> to vector<8x384xf32>
    %382 = vector.extract_strided_slice %381 {offsets = [0, 0], sizes = [8, 128], strides = [1, 1]} : vector<8x384xf32> to vector<8x128xf32>
    %383 = vector.extract_strided_slice %378 {offsets = [0, 0], sizes = [8, 128], strides = [1, 1]} : vector<8x384xf32> to vector<8x128xf32>
    %384 = arith.addf %382, %383 : vector<8x128xf32>
    %385 = arith.negf %384 : vector<8x128xf32>
    %386 = math.exp %385 : vector<8x128xf32>
    %cst_113 = arith.constant 1.000000e+00 : f32
    %387 = vector.broadcast %cst_113 : f32 to vector<8x128xf32>
    %388 = arith.addf %387, %386 : vector<8x128xf32>
    %389 = arith.divf %387, %388 : vector<8x128xf32>
    %390 = vector.extract_strided_slice %381 {offsets = [0, 128], sizes = [8, 128], strides = [1, 1]} : vector<8x384xf32> to vector<8x128xf32>
    %391 = vector.extract_strided_slice %378 {offsets = [0, 128], sizes = [8, 128], strides = [1, 1]} : vector<8x384xf32> to vector<8x128xf32>
    %392 = arith.addf %390, %391 : vector<8x128xf32>
    %393 = arith.negf %392 : vector<8x128xf32>
    %394 = math.exp %393 : vector<8x128xf32>
    %cst_114 = arith.constant 1.000000e+00 : f32
    %395 = vector.broadcast %cst_114 : f32 to vector<8x128xf32>
    %396 = arith.addf %395, %394 : vector<8x128xf32>
    %397 = arith.divf %395, %396 : vector<8x128xf32>
    %398 = vector.extract_strided_slice %381 {offsets = [0, 256], sizes = [8, 128], strides = [1, 1]} : vector<8x384xf32> to vector<8x128xf32>
    %399 = vector.extract_strided_slice %378 {offsets = [0, 256], sizes = [8, 128], strides = [1, 1]} : vector<8x384xf32> to vector<8x128xf32>
    %400 = arith.addf %399, %306 : vector<8x128xf32>
    %401 = arith.mulf %389, %400 : vector<8x128xf32>
    %402 = arith.addf %398, %401 : vector<8x128xf32>
    %403 = math.tanh %402 : vector<8x128xf32>
    %404 = arith.subf %372, %403 : vector<8x128xf32>
    %405 = arith.mulf %397, %404 : vector<8x128xf32>
    %406 = arith.addf %403, %405 : vector<8x128xf32>
    %407 = arith.index_cast %c2_i32_109 : i32 to index
    %c0_115 = arith.constant 0 : index
    %c0_116 = arith.constant 0 : index
    %408 = vector.load %arg13[%407, %c0_115, %c0_116] : memref<8x8x128xf32, #tpu.memory_space<vmem>>, vector<1x8x128xf32>
    %409 = vector.shape_cast %408 : vector<1x8x128xf32> to vector<8x128xf32>
    %410 = vector.shape_cast %406 : vector<8x128xf32> to vector<1x8x128xf32>
    tpu.vector_store %arg13[%407, %c0_115, %c0_116], %410 {strides = array<i32>} : memref<8x8x128xf32, #tpu.memory_space<vmem>>, vector<1x8x128xf32>,
    %c3_i32_117 = arith.constant 3 : i32
    %411 = arith.truncf %406 : vector<8x128xf32> to vector<8x128xbf16>
    %cst_118 = arith.constant dense<0.000000e+00> : vector<8x384xf32>
    %412 = tpu.matmul %411, %303, %cst_118 {dimension_numbers = #tpu.dot_dimension_numbers<[1], [0], [0], [1], [0, 0, 1, 1], [], []>} : vector<8x128xbf16>, vector<128x384xbf16>, vector<8x384xf32> -> vector<8x384xf32>
    %413 = arith.index_cast %c3_i32_117 : i32 to index
    %c0_119 = arith.constant 0 : index
    %c0_120 = arith.constant 0 : index
    %414 = vector.load %arg12[%413, %c0_119, %c0_120] : memref<8x8x384xf32, #tpu.memory_space<vmem>>, vector<1x8x384xf32>
    %415 = vector.shape_cast %414 : vector<1x8x384xf32> to vector<8x384xf32>
    %416 = vector.extract_strided_slice %415 {offsets = [0, 0], sizes = [8, 128], strides = [1, 1]} : vector<8x384xf32> to vector<8x128xf32>
    %417 = vector.extract_strided_slice %412 {offsets = [0, 0], sizes = [8, 128], strides = [1, 1]} : vector<8x384xf32> to vector<8x128xf32>
    %418 = arith.addf %416, %417 : vector<8x128xf32>
    %419 = arith.negf %418 : vector<8x128xf32>
    %420 = math.exp %419 : vector<8x128xf32>
    %cst_121 = arith.constant 1.000000e+00 : f32
    %421 = vector.broadcast %cst_121 : f32 to vector<8x128xf32>
    %422 = arith.addf %421, %420 : vector<8x128xf32>
    %423 = arith.divf %421, %422 : vector<8x128xf32>
    %424 = vector.extract_strided_slice %415 {offsets = [0, 128], sizes = [8, 128], strides = [1, 1]} : vector<8x384xf32> to vector<8x128xf32>
    %425 = vector.extract_strided_slice %412 {offsets = [0, 128], sizes = [8, 128], strides = [1, 1]} : vector<8x384xf32> to vector<8x128xf32>
    %426 = arith.addf %424, %425 : vector<8x128xf32>
    %427 = arith.negf %426 : vector<8x128xf32>
    %428 = math.exp %427 : vector<8x128xf32>
    %cst_122 = arith.constant 1.000000e+00 : f32
    %429 = vector.broadcast %cst_122 : f32 to vector<8x128xf32>
    %430 = arith.addf %429, %428 : vector<8x128xf32>
    %431 = arith.divf %429, %430 : vector<8x128xf32>
    %432 = vector.extract_strided_slice %415 {offsets = [0, 256], sizes = [8, 128], strides = [1, 1]} : vector<8x384xf32> to vector<8x128xf32>
    %433 = vector.extract_strided_slice %412 {offsets = [0, 256], sizes = [8, 128], strides = [1, 1]} : vector<8x384xf32> to vector<8x128xf32>
    %434 = arith.addf %433, %306 : vector<8x128xf32>
    %435 = arith.mulf %423, %434 : vector<8x128xf32>
    %436 = arith.addf %432, %435 : vector<8x128xf32>
    %437 = math.tanh %436 : vector<8x128xf32>
    %438 = arith.subf %406, %437 : vector<8x128xf32>
    %439 = arith.mulf %431, %438 : vector<8x128xf32>
    %440 = arith.addf %437, %439 : vector<8x128xf32>
    %441 = arith.index_cast %c3_i32_117 : i32 to index
    %c0_123 = arith.constant 0 : index
    %c0_124 = arith.constant 0 : index
    %442 = vector.load %arg13[%441, %c0_123, %c0_124] : memref<8x8x128xf32, #tpu.memory_space<vmem>>, vector<1x8x128xf32>
    %443 = vector.shape_cast %442 : vector<1x8x128xf32> to vector<8x128xf32>
    %444 = vector.shape_cast %440 : vector<8x128xf32> to vector<1x8x128xf32>
    tpu.vector_store %arg13[%441, %c0_123, %c0_124], %444 {strides = array<i32>} : memref<8x8x128xf32, #tpu.memory_space<vmem>>, vector<1x8x128xf32>,
    %c4_i32_125 = arith.constant 4 : i32
    %445 = arith.truncf %440 : vector<8x128xf32> to vector<8x128xbf16>
    %cst_126 = arith.constant dense<0.000000e+00> : vector<8x384xf32>
    %446 = tpu.matmul %445, %303, %cst_126 {dimension_numbers = #tpu.dot_dimension_numbers<[1], [0], [0], [1], [0, 0, 1, 1], [], []>} : vector<8x128xbf16>, vector<128x384xbf16>, vector<8x384xf32> -> vector<8x384xf32>
    %447 = arith.index_cast %c4_i32_125 : i32 to index
    %c0_127 = arith.constant 0 : index
    %c0_128 = arith.constant 0 : index
    %448 = vector.load %arg12[%447, %c0_127, %c0_128] : memref<8x8x384xf32, #tpu.memory_space<vmem>>, vector<1x8x384xf32>
    %449 = vector.shape_cast %448 : vector<1x8x384xf32> to vector<8x384xf32>
    %450 = vector.extract_strided_slice %449 {offsets = [0, 0], sizes = [8, 128], strides = [1, 1]} : vector<8x384xf32> to vector<8x128xf32>
    %451 = vector.extract_strided_slice %446 {offsets = [0, 0], sizes = [8, 128], strides = [1, 1]} : vector<8x384xf32> to vector<8x128xf32>
    %452 = arith.addf %450, %451 : vector<8x128xf32>
    %453 = arith.negf %452 : vector<8x128xf32>
    %454 = math.exp %453 : vector<8x128xf32>
    %cst_129 = arith.constant 1.000000e+00 : f32
    %455 = vector.broadcast %cst_129 : f32 to vector<8x128xf32>
    %456 = arith.addf %455, %454 : vector<8x128xf32>
    %457 = arith.divf %455, %456 : vector<8x128xf32>
    %458 = vector.extract_strided_slice %449 {offsets = [0, 128], sizes = [8, 128], strides = [1, 1]} : vector<8x384xf32> to vector<8x128xf32>
    %459 = vector.extract_strided_slice %446 {offsets = [0, 128], sizes = [8, 128], strides = [1, 1]} : vector<8x384xf32> to vector<8x128xf32>
    %460 = arith.addf %458, %459 : vector<8x128xf32>
    %461 = arith.negf %460 : vector<8x128xf32>
    %462 = math.exp %461 : vector<8x128xf32>
    %cst_130 = arith.constant 1.000000e+00 : f32
    %463 = vector.broadcast %cst_130 : f32 to vector<8x128xf32>
    %464 = arith.addf %463, %462 : vector<8x128xf32>
    %465 = arith.divf %463, %464 : vector<8x128xf32>
    %466 = vector.extract_strided_slice %449 {offsets = [0, 256], sizes = [8, 128], strides = [1, 1]} : vector<8x384xf32> to vector<8x128xf32>
    %467 = vector.extract_strided_slice %446 {offsets = [0, 256], sizes = [8, 128], strides = [1, 1]} : vector<8x384xf32> to vector<8x128xf32>
    %468 = arith.addf %467, %306 : vector<8x128xf32>
    %469 = arith.mulf %457, %468 : vector<8x128xf32>
    %470 = arith.addf %466, %469 : vector<8x128xf32>
    %471 = math.tanh %470 : vector<8x128xf32>
    %472 = arith.subf %440, %471 : vector<8x128xf32>
    %473 = arith.mulf %465, %472 : vector<8x128xf32>
    %474 = arith.addf %471, %473 : vector<8x128xf32>
    %475 = arith.index_cast %c4_i32_125 : i32 to index
    %c0_131 = arith.constant 0 : index
    %c0_132 = arith.constant 0 : index
    %476 = vector.load %arg13[%475, %c0_131, %c0_132] : memref<8x8x128xf32, #tpu.memory_space<vmem>>, vector<1x8x128xf32>
    %477 = vector.shape_cast %476 : vector<1x8x128xf32> to vector<8x128xf32>
    %478 = vector.shape_cast %474 : vector<8x128xf32> to vector<1x8x128xf32>
    tpu.vector_store %arg13[%475, %c0_131, %c0_132], %478 {strides = array<i32>} : memref<8x8x128xf32, #tpu.memory_space<vmem>>, vector<1x8x128xf32>,
    %c5_i32_133 = arith.constant 5 : i32
    %479 = arith.truncf %474 : vector<8x128xf32> to vector<8x128xbf16>
    %cst_134 = arith.constant dense<0.000000e+00> : vector<8x384xf32>
    %480 = tpu.matmul %479, %303, %cst_134 {dimension_numbers = #tpu.dot_dimension_numbers<[1], [0], [0], [1], [0, 0, 1, 1], [], []>} : vector<8x128xbf16>, vector<128x384xbf16>, vector<8x384xf32> -> vector<8x384xf32>
    %481 = arith.index_cast %c5_i32_133 : i32 to index
    %c0_135 = arith.constant 0 : index
    %c0_136 = arith.constant 0 : index
    %482 = vector.load %arg12[%481, %c0_135, %c0_136] : memref<8x8x384xf32, #tpu.memory_space<vmem>>, vector<1x8x384xf32>
    %483 = vector.shape_cast %482 : vector<1x8x384xf32> to vector<8x384xf32>
    %484 = vector.extract_strided_slice %483 {offsets = [0, 0], sizes = [8, 128], strides = [1, 1]} : vector<8x384xf32> to vector<8x128xf32>
    %485 = vector.extract_strided_slice %480 {offsets = [0, 0], sizes = [8, 128], strides = [1, 1]} : vector<8x384xf32> to vector<8x128xf32>
    %486 = arith.addf %484, %485 : vector<8x128xf32>
    %487 = arith.negf %486 : vector<8x128xf32>
    %488 = math.exp %487 : vector<8x128xf32>
    %cst_137 = arith.constant 1.000000e+00 : f32
    %489 = vector.broadcast %cst_137 : f32 to vector<8x128xf32>
    %490 = arith.addf %489, %488 : vector<8x128xf32>
    %491 = arith.divf %489, %490 : vector<8x128xf32>
    %492 = vector.extract_strided_slice %483 {offsets = [0, 128], sizes = [8, 128], strides = [1, 1]} : vector<8x384xf32> to vector<8x128xf32>
    %493 = vector.extract_strided_slice %480 {offsets = [0, 128], sizes = [8, 128], strides = [1, 1]} : vector<8x384xf32> to vector<8x128xf32>
    %494 = arith.addf %492, %493 : vector<8x128xf32>
    %495 = arith.negf %494 : vector<8x128xf32>
    %496 = math.exp %495 : vector<8x128xf32>
    %cst_138 = arith.constant 1.000000e+00 : f32
    %497 = vector.broadcast %cst_138 : f32 to vector<8x128xf32>
    %498 = arith.addf %497, %496 : vector<8x128xf32>
    %499 = arith.divf %497, %498 : vector<8x128xf32>
    %500 = vector.extract_strided_slice %483 {offsets = [0, 256], sizes = [8, 128], strides = [1, 1]} : vector<8x384xf32> to vector<8x128xf32>
    %501 = vector.extract_strided_slice %480 {offsets = [0, 256], sizes = [8, 128], strides = [1, 1]} : vector<8x384xf32> to vector<8x128xf32>
    %502 = arith.addf %501, %306 : vector<8x128xf32>
    %503 = arith.mulf %491, %502 : vector<8x128xf32>
    %504 = arith.addf %500, %503 : vector<8x128xf32>
    %505 = math.tanh %504 : vector<8x128xf32>
    %506 = arith.subf %474, %505 : vector<8x128xf32>
    %507 = arith.mulf %499, %506 : vector<8x128xf32>
    %508 = arith.addf %505, %507 : vector<8x128xf32>
    %509 = arith.index_cast %c5_i32_133 : i32 to index
    %c0_139 = arith.constant 0 : index
    %c0_140 = arith.constant 0 : index
    %510 = vector.load %arg13[%509, %c0_139, %c0_140] : memref<8x8x128xf32, #tpu.memory_space<vmem>>, vector<1x8x128xf32>
    %511 = vector.shape_cast %510 : vector<1x8x128xf32> to vector<8x128xf32>
    %512 = vector.shape_cast %508 : vector<8x128xf32> to vector<1x8x128xf32>
    tpu.vector_store %arg13[%509, %c0_139, %c0_140], %512 {strides = array<i32>} : memref<8x8x128xf32, #tpu.memory_space<vmem>>, vector<1x8x128xf32>,
    %c6_i32_141 = arith.constant 6 : i32
    %513 = arith.truncf %508 : vector<8x128xf32> to vector<8x128xbf16>
    %cst_142 = arith.constant dense<0.000000e+00> : vector<8x384xf32>
    %514 = tpu.matmul %513, %303, %cst_142 {dimension_numbers = #tpu.dot_dimension_numbers<[1], [0], [0], [1], [0, 0, 1, 1], [], []>} : vector<8x128xbf16>, vector<128x384xbf16>, vector<8x384xf32> -> vector<8x384xf32>
    %515 = arith.index_cast %c6_i32_141 : i32 to index
    %c0_143 = arith.constant 0 : index
    %c0_144 = arith.constant 0 : index
    %516 = vector.load %arg12[%515, %c0_143, %c0_144] : memref<8x8x384xf32, #tpu.memory_space<vmem>>, vector<1x8x384xf32>
    %517 = vector.shape_cast %516 : vector<1x8x384xf32> to vector<8x384xf32>
    %518 = vector.extract_strided_slice %517 {offsets = [0, 0], sizes = [8, 128], strides = [1, 1]} : vector<8x384xf32> to vector<8x128xf32>
    %519 = vector.extract_strided_slice %514 {offsets = [0, 0], sizes = [8, 128], strides = [1, 1]} : vector<8x384xf32> to vector<8x128xf32>
    %520 = arith.addf %518, %519 : vector<8x128xf32>
    %521 = arith.negf %520 : vector<8x128xf32>
    %522 = math.exp %521 : vector<8x128xf32>
    %cst_145 = arith.constant 1.000000e+00 : f32
    %523 = vector.broadcast %cst_145 : f32 to vector<8x128xf32>
    %524 = arith.addf %523, %522 : vector<8x128xf32>
    %525 = arith.divf %523, %524 : vector<8x128xf32>
    %526 = vector.extract_strided_slice %517 {offsets = [0, 128], sizes = [8, 128], strides = [1, 1]} : vector<8x384xf32> to vector<8x128xf32>
    %527 = vector.extract_strided_slice %514 {offsets = [0, 128], sizes = [8, 128], strides = [1, 1]} : vector<8x384xf32> to vector<8x128xf32>
    %528 = arith.addf %526, %527 : vector<8x128xf32>
    %529 = arith.negf %528 : vector<8x128xf32>
    %530 = math.exp %529 : vector<8x128xf32>
    %cst_146 = arith.constant 1.000000e+00 : f32
    %531 = vector.broadcast %cst_146 : f32 to vector<8x128xf32>
    %532 = arith.addf %531, %530 : vector<8x128xf32>
    %533 = arith.divf %531, %532 : vector<8x128xf32>
    %534 = vector.extract_strided_slice %517 {offsets = [0, 256], sizes = [8, 128], strides = [1, 1]} : vector<8x384xf32> to vector<8x128xf32>
    %535 = vector.extract_strided_slice %514 {offsets = [0, 256], sizes = [8, 128], strides = [1, 1]} : vector<8x384xf32> to vector<8x128xf32>
    %536 = arith.addf %535, %306 : vector<8x128xf32>
    %537 = arith.mulf %525, %536 : vector<8x128xf32>
    %538 = arith.addf %534, %537 : vector<8x128xf32>
    %539 = math.tanh %538 : vector<8x128xf32>
    %540 = arith.subf %508, %539 : vector<8x128xf32>
    %541 = arith.mulf %533, %540 : vector<8x128xf32>
    %542 = arith.addf %539, %541 : vector<8x128xf32>
    %543 = arith.index_cast %c6_i32_141 : i32 to index
    %c0_147 = arith.constant 0 : index
    %c0_148 = arith.constant 0 : index
    %544 = vector.load %arg13[%543, %c0_147, %c0_148] : memref<8x8x128xf32, #tpu.memory_space<vmem>>, vector<1x8x128xf32>
    %545 = vector.shape_cast %544 : vector<1x8x128xf32> to vector<8x128xf32>
    %546 = vector.shape_cast %542 : vector<8x128xf32> to vector<1x8x128xf32>
    tpu.vector_store %arg13[%543, %c0_147, %c0_148], %546 {strides = array<i32>} : memref<8x8x128xf32, #tpu.memory_space<vmem>>, vector<1x8x128xf32>,
    %c7_i32_149 = arith.constant 7 : i32
    %547 = arith.truncf %542 : vector<8x128xf32> to vector<8x128xbf16>
    %cst_150 = arith.constant dense<0.000000e+00> : vector<8x384xf32>
    %548 = tpu.matmul %547, %303, %cst_150 {dimension_numbers = #tpu.dot_dimension_numbers<[1], [0], [0], [1], [0, 0, 1, 1], [], []>} : vector<8x128xbf16>, vector<128x384xbf16>, vector<8x384xf32> -> vector<8x384xf32>
    %549 = arith.index_cast %c7_i32_149 : i32 to index
    %c0_151 = arith.constant 0 : index
    %c0_152 = arith.constant 0 : index
    %550 = vector.load %arg12[%549, %c0_151, %c0_152] : memref<8x8x384xf32, #tpu.memory_space<vmem>>, vector<1x8x384xf32>
    %551 = vector.shape_cast %550 : vector<1x8x384xf32> to vector<8x384xf32>
    %552 = vector.extract_strided_slice %551 {offsets = [0, 0], sizes = [8, 128], strides = [1, 1]} : vector<8x384xf32> to vector<8x128xf32>
    %553 = vector.extract_strided_slice %548 {offsets = [0, 0], sizes = [8, 128], strides = [1, 1]} : vector<8x384xf32> to vector<8x128xf32>
    %554 = arith.addf %552, %553 : vector<8x128xf32>
    %555 = arith.negf %554 : vector<8x128xf32>
    %556 = math.exp %555 : vector<8x128xf32>
    %cst_153 = arith.constant 1.000000e+00 : f32
    %557 = vector.broadcast %cst_153 : f32 to vector<8x128xf32>
    %558 = arith.addf %557, %556 : vector<8x128xf32>
    %559 = arith.divf %557, %558 : vector<8x128xf32>
    %560 = vector.extract_strided_slice %551 {offsets = [0, 128], sizes = [8, 128], strides = [1, 1]} : vector<8x384xf32> to vector<8x128xf32>
    %561 = vector.extract_strided_slice %548 {offsets = [0, 128], sizes = [8, 128], strides = [1, 1]} : vector<8x384xf32> to vector<8x128xf32>
    %562 = arith.addf %560, %561 : vector<8x128xf32>
    %563 = arith.negf %562 : vector<8x128xf32>
    %564 = math.exp %563 : vector<8x128xf32>
    %cst_154 = arith.constant 1.000000e+00 : f32
    %565 = vector.broadcast %cst_154 : f32 to vector<8x128xf32>
    %566 = arith.addf %565, %564 : vector<8x128xf32>
    %567 = arith.divf %565, %566 : vector<8x128xf32>
    %568 = vector.extract_strided_slice %551 {offsets = [0, 256], sizes = [8, 128], strides = [1, 1]} : vector<8x384xf32> to vector<8x128xf32>
    %569 = vector.extract_strided_slice %548 {offsets = [0, 256], sizes = [8, 128], strides = [1, 1]} : vector<8x384xf32> to vector<8x128xf32>
    %570 = arith.addf %569, %306 : vector<8x128xf32>
    %571 = arith.mulf %559, %570 : vector<8x128xf32>
    %572 = arith.addf %568, %571 : vector<8x128xf32>
    %573 = math.tanh %572 : vector<8x128xf32>
    %574 = arith.subf %542, %573 : vector<8x128xf32>
    %575 = arith.mulf %567, %574 : vector<8x128xf32>
    %576 = arith.addf %573, %575 : vector<8x128xf32>
    %577 = arith.index_cast %c7_i32_149 : i32 to index
    %c0_155 = arith.constant 0 : index
    %c0_156 = arith.constant 0 : index
    %578 = vector.load %arg13[%577, %c0_155, %c0_156] : memref<8x8x128xf32, #tpu.memory_space<vmem>>, vector<1x8x128xf32>
    %579 = vector.shape_cast %578 : vector<1x8x128xf32> to vector<8x128xf32>
    %580 = vector.shape_cast %576 : vector<8x128xf32> to vector<1x8x128xf32>
    tpu.vector_store %arg13[%577, %c0_155, %c0_156], %580 {strides = array<i32>} : memref<8x8x128xf32, #tpu.memory_space<vmem>>, vector<1x8x128xf32>,
    %c8_i32_157 = arith.constant 8 : i32
    %c1_158 = arith.constant 1 : index
    %c0_159 = arith.constant 0 : index
    %c0_160 = arith.constant 0 : index
    %581 = vector.load %arg14[%c1_158, %c0_159, %c0_160] : memref<2x8x128xf32, #tpu.memory_space<vmem>>, vector<1x8x128xf32>
    %582 = vector.shape_cast %581 : vector<1x8x128xf32> to vector<8x128xf32>
    %583 = vector.shape_cast %576 : vector<8x128xf32> to vector<1x8x128xf32>
    tpu.vector_store %arg14[%c1_158, %c0_159, %c0_160], %583 {strides = array<i32>} : memref<2x8x128xf32, #tpu.memory_space<vmem>>, vector<1x8x128xf32>,
    %c0_161 = arith.constant 0 : index
    %c0_162 = arith.constant 0 : index
    %c0_163 = arith.constant 0 : index
    %584 = vector.load %arg13[%c0_161, %c0_162, %c0_163] : memref<8x8x128xf32, #tpu.memory_space<vmem>>, vector<8x8x128xf32>
    %585 = vector.shape_cast %584 : vector<8x8x128xf32> to vector<64x128xf32>
    %586 = arith.truncf %585 : vector<64x128xf32> to vector<64x128xbf16>
    %c0_164 = arith.constant 0 : index
    %c0_165 = arith.constant 0 : index
    %587 = vector.load %arg9[%c0_164, %c0_165] : memref<128x128xbf16, #tpu.memory_space<vmem>>, vector<128x128xbf16>
    %cst_166 = arith.constant dense<0.000000e+00> : vector<64x128xf32>
    %588 = tpu.matmul %586, %587, %cst_166 {dimension_numbers = #tpu.dot_dimension_numbers<[1], [0], [0], [1], [0, 0, 1, 1], [], []>} : vector<64x128xbf16>, vector<128x128xbf16>, vector<64x128xf32> -> vector<64x128xf32>
    %c0_167 = arith.constant 0 : index
    %c0_168 = arith.constant 0 : index
    %589 = vector.load %arg10[%c0_167, %c0_168] : memref<1x128xf32, #tpu.memory_space<vmem>>, vector<1x128xf32>
    %590 = vector.broadcast %589 : vector<1x128xf32> to vector<64x128xf32>
    %591 = arith.addf %588, %590 : vector<64x128xf32>
    %592 = vector.shape_cast %591 : vector<64x128xf32> to vector<8x8x128xf32>
    %593 = arith.truncf %592 : vector<8x8x128xf32> to vector<8x8x128xbf16>
    %c0_169 = arith.constant 0 : index
    %c0_170 = arith.constant 0 : index
    %c0_171 = arith.constant 0 : index
    %594 = vector.load %arg11[%c0_169, %c0_170, %c0_171] : memref<8x8x128xbf16, #tpu.memory_space<vmem>>, vector<8x8x128xbf16>
    tpu.vector_store %arg11[%c0_169, %c0_170, %c0_171], %593 {strides = array<i32>} : memref<8x8x128xbf16, #tpu.memory_space<vmem>>, vector<8x8x128xbf16>,
    return
  }
  func.func @transform_0(%arg0: i32, %arg1: i32) -> (i32, i32, i32) {
    %c0_i32 = arith.constant 0 : i32
    %c0_i32_0 = arith.constant 0 : i32
    return %arg1, %arg0, %c0_i32 : i32, i32, i32
  }
  func.func @transform_1(%arg0: i32, %arg1: i32) -> (i32, i32) {
    %c0_i32 = arith.constant 0 : i32
    %c0_i32_0 = arith.constant 0 : i32
    %c0_i32_1 = arith.constant 0 : i32
    return %c0_i32, %c0_i32_0 : i32, i32
  }
  func.func @transform_2(%arg0: i32, %arg1: i32) -> (i32, i32) {
    %c0_i32 = arith.constant 0 : i32
    %c0_i32_0 = arith.constant 0 : i32
    %c0_i32_1 = arith.constant 0 : i32
    return %c0_i32, %c0_i32_0 : i32, i32
  }
  func.func @transform_3(%arg0: i32, %arg1: i32) -> (i32, i32) {
    %c0_i32 = arith.constant 0 : i32
    %c0_i32_0 = arith.constant 0 : i32
    %c0_i32_1 = arith.constant 0 : i32
    return %c0_i32, %c0_i32_0 : i32, i32
  }
  func.func @transform_4(%arg0: i32, %arg1: i32) -> (i32, i32) {
    %c0_i32 = arith.constant 0 : i32
    %c0_i32_0 = arith.constant 0 : i32
    %c0_i32_1 = arith.constant 0 : i32
    return %c0_i32, %c0_i32_0 : i32, i32
  }
  func.func @transform_5(%arg0: i32, %arg1: i32) -> (i32, i32) {
    %c0_i32 = arith.constant 0 : i32
    %c0_i32_0 = arith.constant 0 : i32
    %c0_i32_1 = arith.constant 0 : i32
    return %c0_i32, %c0_i32_0 : i32, i32
  }
  func.func @transform_6(%arg0: i32, %arg1: i32) -> (i32, i32) {
    %c0_i32 = arith.constant 0 : i32
    %c0_i32_0 = arith.constant 0 : i32
    %c0_i32_1 = arith.constant 0 : i32
    return %c0_i32, %c0_i32_0 : i32, i32
  }
  func.func @transform_7(%arg0: i32, %arg1: i32) -> (i32, i32) {
    %c0_i32 = arith.constant 0 : i32
    %c0_i32_0 = arith.constant 0 : i32
    %c0_i32_1 = arith.constant 0 : i32
    return %c0_i32, %c0_i32_0 : i32, i32
  }
  func.func @transform_8(%arg0: i32, %arg1: i32) -> (i32, i32) {
    %c0_i32 = arith.constant 0 : i32
    %c0_i32_0 = arith.constant 0 : i32
    %c0_i32_1 = arith.constant 0 : i32
    return %c0_i32, %c0_i32_0 : i32, i32
  }
  func.func @transform_9(%arg0: i32, %arg1: i32) -> (i32, i32, i32) {
    %c0_i32 = arith.constant 0 : i32
    %c0_i32_0 = arith.constant 0 : i32
    return %arg1, %arg0, %c0_i32 : i32, i32, i32
  }
}

</mosaic_0001>

<bundles_post_ra>
// kernel: net_forward.1
= control target key start
LH: loop header
LB: loop body
LE: loop exit
PB: predicated region body
PF: predicated region fallthrough
CT: control target
= control target key end

     0   :  { %s4878_s1 = inlined_call_operand.vmem [shape: bf16[128,384], index: 1, kind: input, shape index: {}]   ;;  %s4879_s2 = inlined_call_operand.vmem [shape: bf16[128,384], index: 2, kind: input, shape index: {}]   ;;  %s4880_s0 = inlined_call_operand.vmem [shape: bf16[8,8,128], index: 0, kind: input, shape index: {}]   ;;  %s4881_s3 = inlined_call_operand.vmem [shape: f32[2,384], index: 3, kind: input, shape index: {}]   ;;  %s4882_s4 = inlined_call_operand.vmem [shape: bf16[128,384], index: 4, kind: input, shape index: {}]   ;;  %s4883_s6 = inlined_call_operand.vmem [shape: f32[2,384], index: 6, kind: input, shape index: {}]   ;;  %s4884_s5 = inlined_call_operand.vmem [shape: bf16[128,384], index: 5, kind: input, shape index: {}]   ;;  %s4885_s7 = inlined_call_operand.vmem [shape: bf16[128,128], index: 7, kind: input, shape index: {}]   ;;  %s4886_s8 = inlined_call_operand.vmem [shape: f32[1,128], index: 8, kind: input, shape index: {}]   ;;  %s4887_s9 = inlined_call_operand.vmem [shape: bf16[8,8,128], index: 9, kind: output, shape index: {}]  }
   0x1   :  { %v2670_v0 = vld [vmem:[%s4878_s1 + $0xa8] sm:$0xf]  ;;  %v3058_v1 = vld [vmem:[%s4878_s1 + $0xb0] sm:$0xf0]  ;;  %v2658_v5 = vld [vmem:[%s4878_s1 + $0x90] sm:$0xf] }
   0x2   :  { %v2766_v2 = vld [vmem:[%s4879_s2 + $0xa8] sm:$0xf]  ;;  %v2671_v3 = vor.u32 %v3058_v1, %v2670_v0  ;;  %v3082_v4 = vld [vmem:[%s4879_s2 + $0xb0] sm:$0xf0]  ;;  %v3055_v6 = vld [vmem:[%s4878_s1 + $0x98] sm:$0xf0] }
   0x3   :  { %v3406_v7 = vor.u32 %v3082_v4, %v2766_v2  ;;  %v2754_v8 = vld [vmem:[%s4879_s2 + $0x90] sm:$0xf]  ;;  %v3079_v9 = vld [vmem:[%s4879_s2 + $0x98] sm:$0xf0]  ;;  %v2659_v10 = vor.u32 %v3055_v6, %v2658_v5  ;;  %v2646_v12 = vld [vmem:[%s4878_s1 + $0x78] sm:$0xf] }
   0x4   :  { %238 = vmatpush.bf16.msra.mxu1 %v2671_v3  ;;  %3163 = vmatpush.bf16.msra.mxu2 %v2671_v3  ;;  %v3415_v11 = vor.u32 %v3079_v9, %v2754_v8  ;;  %v3052_v13 = vld [vmem:[%s4878_s1 + $0x80] sm:$0xf0]  ;;  %v2742_v14 = vld [vmem:[%s4879_s2 + $0x78] sm:$0xf]  ;;  %v2634_v18 = vld [vmem:[%s4878_s1 + $0x60] sm:$0xf] }
   0x5   :  { %513 = vmatpush.bf16.msra.mxu3 %v3406_v7  ;;  %v3076_v15 = vld [vmem:[%s4879_s2 + $0x80] sm:$0xf0]  ;;  %v2647_v16 = vor.u32 %v3052_v13, %v2646_v12  ;;  %v3049_v19 = vld [vmem:[%s4878_s1 + $0x68] sm:$0xf0]  ;;  %v2730_v20 = vld [vmem:[%s4879_s2 + $0x60] sm:$0xf] }
   0x6   :  { %v3430_v17 = vor.u32 %v3076_v15, %v2742_v14  ;;  %v3073_v21 = vld [vmem:[%s4879_s2 + $0x68] sm:$0xf0]  ;;  %v2635_v22 = vor.u32 %v3049_v19, %v2634_v18  ;;  %v2622_v24 = vld [vmem:[%s4878_s1 + $0x48] sm:$0xf]  ;;  %v3046_v25 = vld [vmem:[%s4878_s1 + $0x50] sm:$0xf0] }
   0x7   :  { %v3445_v23 = vor.u32 %v3073_v21, %v2730_v20  ;;  %v2718_v26 = vld [vmem:[%s4879_s2 + $0x48] sm:$0xf]  ;;  %v3070_v27 = vld [vmem:[%s4879_s2 + $0x50] sm:$0xf0]  ;;  %v2774_v28 = vld [vmem:[%s4879_s2 + $0xb0] sm:$0xf]  ;;  %v2623_v30 = vor.u32 %v3046_v25, %v2622_v24 }
   0x8   :  { %239 = vmatpush.bf16.msra.mxu1 %v2659_v10  ;;  %3164 = vmatpush.bf16.msra.mxu2 %v2659_v10  ;;  %v3083_v29 = vld [vmem:[%s4879_s2 + $0xb8] sm:$0xf0]  ;;  %v3468_v32 = vor.u32 %v3070_v27, %v2718_v26  ;;  %v2610_v33 = vld [vmem:[%s4878_s1 + $0x30] sm:$0xf]  ;;  %v2762_v35 = vld [vmem:[%s4879_s2 + $0x98] sm:$0xf] }
   0x9   :  { %514 = vmatpush.bf16.msra.mxu3 %v3415_v11  ;;  %v3465_v31 = vor.u32 %v3083_v29, %v2774_v28  ;;  %v3043_v34 = vld [vmem:[%s4878_s1 + $0x38] sm:$0xf0]  ;;  %v2706_v36 = vld [vmem:[%s4879_s2 + $0x30] sm:$0xf]  ;;  %v3080_v38 = vld [vmem:[%s4879_s2 + $0xa0] sm:$0xf0] }
   0xa   :  { %v3067_v37 = vld [vmem:[%s4879_s2 + $0x38] sm:$0xf0]  ;;  %v3489_v39 = vor.u32 %v3080_v38, %v2762_v35  ;;  %v2611_v40 = vor.u32 %v3043_v34, %v2610_v33  ;;  %v2750_v41 = vld [vmem:[%s4879_s2 + $0x80] sm:$0xf]  ;;  %v3077_v42 = vld [vmem:[%s4879_s2 + $0x88] sm:$0xf0] }
   0xb   :  { %539 = vmatpush.bf16.msra.mxu0 %v3465_v31  ;;  %v3498_v43 = vor.u32 %v3067_v37, %v2706_v36  ;;  %v2598_v44 = vld [vmem:[%s4878_s1 + $0x18] sm:$0xf]  ;;  %v3040_v45 = vld [vmem:[%s4878_s1 + $0x20] sm:$0xf0]  ;;  %v3513_v48 = vor.u32 %v3077_v42, %v2750_v41  ;;  %v2738_v49 = vld [vmem:[%s4879_s2 + $0x68] sm:$0xf] }
   0xc   :  { %240 = vmatpush.bf16.msra.mxu1 %v2647_v16  ;;  %3165 = vmatpush.bf16.msra.mxu2 %v2647_v16  ;;  %v2694_v46 = vld [vmem:[%s4879_s2 + $0x18] sm:$0xf]  ;;  %v3064_v47 = vld [vmem:[%s4879_s2 + $0x20] sm:$0xf0]  ;;  %v3074_v50 = vld [vmem:[%s4879_s2 + $0x70] sm:$0xf0]  ;;  %v2599_v51 = vor.u32 %v3040_v45, %v2598_v44 }
   0xd   :  { %515 = vmatpush.bf16.msra.mxu3 %v3430_v17  ;;  %v2586_v52 = vld [vmem:[%s4878_s1] sm:$0xf]  ;;  %v3525_v53 = vor.u32 %v3064_v47, %v2694_v46  ;;  %v3037_v54 = vld [vmem:[%s4878_s1 + $0x8] sm:$0xf0]  ;;  %v2672_v59 = vld [vmem:[%s4878_s1 + $0xb4] sm:$0xf0]  ;;  %v3546_v60 = vor.u32 %v3074_v50, %v2738_v49 }
   0xe   :  { %v2682_v55 = vld [vmem:[%s4879_s2] sm:$0xf]  ;;  %v3061_v56 = vld [vmem:[%s4879_s2 + $0x8] sm:$0xf0]  ;;  %v2768_v61 = vld [vmem:[%s4879_s2 + $0xb4] sm:$0xf0]  ;;  %v2587_v0 = vor.u32 %v3037_v54, %v2586_v52 }
   0xf   :  { %540 = vmatpush.bf16.msra.mxu0 %v3489_v39  ;;  %v3081_v57 = vld [vmem:[%s4879_s2 + $0xac] sm:$0xf]  ;;  %v2678_v62 = vld [vmem:[%s4878_s1 + $0xb0] sm:$0xf]  ;;  %v3059_v63 = vld [vmem:[%s4878_s1 + $0xb8] sm:$0xf0]  ;;  %v3558_v1 = vor.u32 %v3061_v56, %v2682_v55 }
  0x10   :  { %241 = vmatpush.bf16.msra.mxu1 %v2635_v22  ;;  %3166 = vmatpush.bf16.msra.mxu2 %v2635_v22  ;;  %v3057_v58 = vld [vmem:[%s4878_s1 + $0xac] sm:$0xf]  ;;  %v3563_v2 = vld [vmem:[%s4880_s0] sm:$0xff]  ;;  %v3568_v3 = vld [vmem:[%s4880_s0 + $0x10] sm:$0xff]  ;;  %v3576_v8 = vor.u32 %v3081_v57, %v2768_v61  ;;  %v2679_v9 = vor.u32 %v3059_v63, %v2678_v62  ;;  %v4888_v33 = vmov 0.0|0.0  }
  0x11   :  { %516 = vmatpush.bf16.msra.mxu3 %v3445_v23  ;;  %v2675_v4 = vor.u32 %v3057_v58, %v2672_v59  ;;  %v2726_v5 = vld [vmem:[%s4879_s2 + $0x50] sm:$0xf]  ;;  %v3071_v6 = vld [vmem:[%s4879_s2 + $0x58] sm:$0xf0]  ;;  %v3078_v10 = vld [vmem:[%s4879_s2 + $0x94] sm:$0xf] }
  0x12   :  { %v3054_v12 = vld [vmem:[%s4878_s1 + $0x94] sm:$0xf]  ;;  %v2660_v13 = vld [vmem:[%s4878_s1 + $0x9c] sm:$0xf0]  ;;  %v2666_v15 = vld [vmem:[%s4878_s1 + $0x98] sm:$0xf]  ;;  %v3597_v18 = vor.u32 %v3071_v6, %v2726_v5 }
  0x13   :  { %541 = vmatpush.bf16.msra.mxu0 %v3513_v48  ;;  %v2756_v14 = vld [vmem:[%s4879_s2 + $0x9c] sm:$0xf0]  ;;  %v3056_v16 = vld [vmem:[%s4878_s1 + $0xa0] sm:$0xf0]  ;;  %v2663_v19 = vor.u32 %v3054_v12, %v2660_v13  ;;  %v3075_v20 = vld [vmem:[%s4879_s2 + $0x7c] sm:$0xf] }
  0x14   :  { %242 = vmatpush.bf16.msra.mxu1 %v2623_v30  ;;  %3167 = vmatpush.bf16.msra.mxu2 %v2623_v30  ;;  %v2714_v21 = vld [vmem:[%s4879_s2 + $0x38] sm:$0xf]  ;;  %v3068_v22 = vld [vmem:[%s4879_s2 + $0x40] sm:$0xf0]  ;;  %v3610_v24 = vor.u32 %v3078_v10, %v2756_v14  ;;  %v2667_v25 = vor.u32 %v3056_v16, %v2666_v15  ;;  %v3051_v26 = vld [vmem:[%s4878_s1 + $0x7c] sm:$0xf] }
  0x15   :  { %517 = vmatpush.bf16.msra.mxu3 %v3468_v32  ;;  %v2648_v27 = vld [vmem:[%s4878_s1 + $0x84] sm:$0xf0]  ;;  %v2654_v29 = vld [vmem:[%s4878_s1 + $0x80] sm:$0xf]  ;;  %v3053_v30 = vld [vmem:[%s4878_s1 + $0x88] sm:$0xf0]  ;;  %v3631_v34 = vor.u32 %v3068_v22, %v2714_v21 }
  0x16   :  { %v2744_v28 = vld [vmem:[%s4879_s2 + $0x84] sm:$0xf0]  ;;  %v2651_v35 = vor.u32 %v3051_v26, %v2648_v27  ;;  %v2702_v36 = vld [vmem:[%s4879_s2 + $0x20] sm:$0xf]  ;;  %v3065_v37 = vld [vmem:[%s4879_s2 + $0x28] sm:$0xf0] }
  0x17   :  { %542 = vmatpush.bf16.msra.mxu0 %v3546_v60  ;;  %v3640_v38 = vor.u32 %v3075_v20, %v2744_v28  ;;  %v3072_v41 = vld [vmem:[%s4879_s2 + $0x64] sm:$0xf]  ;;  %v2636_v44 = vld [vmem:[%s4878_s1 + $0x6c] sm:$0xf0]  ;;  %v2642_v46 = vld [vmem:[%s4878_s1 + $0x68] sm:$0xf]  ;;  %v3661_v49 = vor.u32 %v3065_v37, %v2702_v36 }
  0x18   :  { %243 = vmatpush.bf16.msra.mxu1 %v2611_v40  ;;  %3168 = vmatpush.bf16.msra.mxu2 %v2611_v40  ;;  %v2655_v40 = vor.u32 %v3053_v30, %v2654_v29  ;;  %v3048_v42 = vld [vmem:[%s4878_s1 + $0x64] sm:$0xf]  ;;  %v2732_v45 = vld [vmem:[%s4879_s2 + $0x6c] sm:$0xf0]  ;;  %v3050_v47 = vld [vmem:[%s4878_s1 + $0x70] sm:$0xf0] }
  0x19   :  { %518 = vmatpush.bf16.msra.mxu3 %v3498_v43  ;;  %v2639_v50 = vor.u32 %v3048_v42, %v2636_v44  ;;  %v3062_v52 = vld [vmem:[%s4879_s2 + $0x10] sm:$0xf0]  ;;  %v3670_v54 = vor.u32 %v3072_v41, %v2732_v45  ;;  %v2643_v55 = vor.u32 %v3050_v47, %v2642_v46  ;;  %v3069_v56 = vld [vmem:[%s4879_s2 + $0x4c] sm:$0xf]  ;;  %v2624_v58 = vld [vmem:[%s4878_s1 + $0x54] sm:$0xf0] }
  0x1a   :  { %v3045_v57 = vld [vmem:[%s4878_s1 + $0x4c] sm:$0xf]  ;;  %v2720_v59 = vld [vmem:[%s4879_s2 + $0x54] sm:$0xf0]  ;;  %v2630_v61 = vld [vmem:[%s4878_s1 + $0x50] sm:$0xf] }
  0x1b   :  { %543 = vmatpush.bf16.msra.mxu0 %v3597_v18  ;;  %v3047_v62 = vld [vmem:[%s4878_s1 + $0x58] sm:$0xf0]  ;;  %v2627_v5 = vor.u32 %v3045_v57, %v2624_v58  ;;  %v3704_v6 = vor.u32 %v3069_v56, %v2720_v59  ;;  %v3066_v10 = vld [vmem:[%s4879_s2 + $0x34] sm:$0xf]  ;;  %v2612_v13 = vld [vmem:[%s4878_s1 + $0x3c] sm:$0xf0] }
  0x1c   :  { %244 = vmatpush.bf16.msra.mxu1 %v2599_v51  ;;  %3169 = vmatpush.bf16.msra.mxu2 %v2599_v51  ;;  %v2690_v51 = vld [vmem:[%s4879_s2 + $0x8] sm:$0xf]  ;;  %v3042_v12 = vld [vmem:[%s4878_s1 + $0x34] sm:$0xf]  ;;  %v2708_v14 = vld [vmem:[%s4879_s2 + $0x3c] sm:$0xf0] }
  0x1d   :  { %519 = vmatpush.bf16.msra.mxu3 %v3525_v53  ;;  %v3691_v63 = vor.u32 %v3062_v52, %v2690_v51  ;;  %v2618_v15 = vld [vmem:[%s4878_s1 + $0x38] sm:$0xf]  ;;  %v3044_v16 = vld [vmem:[%s4878_s1 + $0x40] sm:$0xf0]  ;;  %v3727_v20 = vor.u32 %v3066_v10, %v2708_v14  ;;  %v3063_v22 = vld [vmem:[%s4879_s2 + $0x1c] sm:$0xf] }
  0x1e   :  { %v2619_v21 = vor.u32 %v3044_v16, %v2618_v15  ;;  %v2600_v26 = vld [vmem:[%s4878_s1 + $0x24] sm:$0xf0]  ;;  %v2606_v28 = vld [vmem:[%s4878_s1 + $0x20] sm:$0xf]  ;;  %v3041_v29 = vld [vmem:[%s4878_s1 + $0x28] sm:$0xf0] }
  0x1f   :  { %544 = vmatpush.bf16.msra.mxu0 %v3631_v34  ;;  %v2696_v27 = vld [vmem:[%s4879_s2 + $0x24] sm:$0xf0]  ;;  %v2607_v36 = vor.u32 %v3041_v29, %v2606_v28  ;;  %v3060_v37 = vld [vmem:[%s4879_s2 + $0x4] sm:$0xf]  ;;  %v2588_v41 = vld [vmem:[%s4878_s1 + $0xc] sm:$0xf0] }
  0x20   :  { %245 = vmatpush.bf16.msra.mxu1 %v2587_v0  ;;  %3170 = vmatpush.bf16.msra.mxu2 %v2587_v0  ;;  %v3696_v0 = vld [vmem:[%s4880_s0 + $0x8] sm:$0xff]  ;;  %v2684_v42 = vld [vmem:[%s4879_s2 + $0xc] sm:$0xf0]  ;;  %v3038_v45 = vld [vmem:[%s4878_s1 + $0x10] sm:$0xf0] }
  0x21   :  { %520 = vmatpush.bf16.msra.mxu3 %v3558_v1  ;;  %v2594_v44 = vld [vmem:[%s4878_s1 + $0x8] sm:$0xf]  ;;  %v3774_v47 = vor.u32 %v3060_v37, %v2684_v42 }
  0x23   :  { %246 = vmatmul.bf16.vlgmr.msra.gmra.mxu1 %v3563_v2  ;;  %256 = vmatmul.bf16.vlgmr.msra.gmra.mxu2 %v3568_v3 }
  0x24   :  { %267 = vmatpush.bf16.msrb.mxu1 %v2675_v4  ;;  %296 = vmatpush.bf16.msrb.mxu2 %v2679_v9  ;;  %v3701_v4 = vld [vmem:[%s4880_s0 + $0x18] sm:$0xff]  ;;  %v2631_v9 = vor.u32 %v3047_v62, %v2630_v61 }
  0x25   :  { %526 = vmatpush.bf16.msrb.mxu3 %v3576_v8  ;;  %545 = vmatpush.bf16.msra.mxu0 %v3661_v49 }
  0x26   :  { %521 = vmatmul.bf16.vlgmr.msra.gmra.mxu3 %v4888_v33 }
  0x28   :  { %268 = vmatpush.bf16.msrb.mxu1 %v2663_v19  ;;  %297 = vmatpush.bf16.msrb.mxu2 %v2667_v25  ;;  %v2615_v19 = vor.u32 %v3042_v12, %v2612_v13  ;;  %v3039_v25 = vld [vmem:[%s4878_s1 + $0x1c] sm:$0xf] }
  0x29   :  { %527 = vmatpush.bf16.msrb.mxu3 %v3610_v24  ;;  %546 = vmatpush.bf16.msra.mxu0 %v3691_v63  ;;  %v2603_v30 = vor.u32 %v3039_v25, %v2600_v26 }
  0x2c   :  { %269 = vmatpush.bf16.msrb.mxu1 %v2651_v35  ;;  %298 = vmatpush.bf16.msrb.mxu2 %v2655_v40  ;;  %v3752_v35 = vor.u32 %v3063_v22, %v2696_v27  ;;  %v3036_v40 = vld [vmem:[%s4878_s1 + $0x4] sm:$0xf] }
  0x2d   :  { %528 = vmatpush.bf16.msrb.mxu3 %v3640_v38  ;;  %697 = vmatpush.bf16.msrb.mxu0 %v3406_v7  ;;  %v2591_v46 = vor.u32 %v3036_v40, %v2588_v41 }
  0x2e   :  { %547 = vmatmul.bf16.vlgmr.msra.gmra.mxu0 %v4888_v33 }
  0x30   :  { %270 = vmatpush.bf16.msrb.mxu1 %v2639_v50  ;;  %299 = vmatpush.bf16.msrb.mxu2 %v2643_v55  ;;  %v2595_v50 = vor.u32 %v3038_v45, %v2594_v44  ;;  %v3878_v45 = vld [vmem:[%s4881_s3 + $0x5] ss:$0 sm:$0xff] }
  0x31   :  { %529 = vmatpush.bf16.msrb.mxu3 %v3670_v54  ;;  %698 = vmatpush.bf16.msrb.mxu0 %v3415_v11 }
  0x33   :  { %251 = vmatmul.bf16.gmra.mxu1 %v3696_v0  ;;  %261 = vmatmul.bf16.gmra.mxu2 %v3701_v4 }
  0x34   :  { %271 = vmatpush.bf16.msrb.mxu1 %v2627_v5  ;;  %300 = vmatpush.bf16.msrb.mxu2 %v2631_v9 }
  0x35   :  { %530 = vmatpush.bf16.msrb.mxu3 %v3704_v6  ;;  %699 = vmatpush.bf16.msrb.mxu0 %v3430_v17 }
  0x38   :  { %272 = vmatpush.bf16.msrb.mxu1 %v2615_v19  ;;  %301 = vmatpush.bf16.msrb.mxu2 %v2619_v21 }
  0x39   :  { %531 = vmatpush.bf16.msrb.mxu3 %v3727_v20  ;;  %700 = vmatpush.bf16.msrb.mxu0 %v3445_v23 }
  0x3c   :  { %273 = vmatpush.bf16.msrb.mxu1 %v2603_v30  ;;  %302 = vmatpush.bf16.msrb.mxu2 %v2607_v36 }
  0x3d   :  { %532 = vmatpush.bf16.msrb.mxu3 %v3752_v35  ;;  %701 = vmatpush.bf16.msrb.mxu0 %v3468_v32 }
  0x40   :  { %274 = vmatpush.bf16.msrb.mxu1 %v2591_v46  ;;  %303 = vmatpush.bf16.msrb.mxu2 %v2595_v50 }
  0x41   :  { %533 = vmatpush.bf16.msrb.mxu3 %v3774_v47  ;;  %702 = vmatpush.bf16.msrb.mxu0 %v3498_v43 }
  0x43   :  { %275 = vmatmul.bf16.vlgmr.msrb.gmra.mxu1 %v3563_v2  ;;  %304 = vmatmul.bf16.vlgmr.msrb.gmra.mxu2 %v3563_v2  ;;  %v78_v2 = vld [vmem:[%s4881_s3] ss:$2 sm:$0x7] }
  0x44   :  { %604 = vmatpush.bf16.msra.mxu1 %v3406_v7  ;;  %617 = vmatpush.bf16.msra.mxu2 %v3576_v8  ;;  %v3850_v51 = vperm.slane %v78_v2, 0  ;;  %v3868_v22 = vperm.slane %v78_v2, 1 }
  0x45   :  { %630 = vmatpush.bf16.msra.mxu3 %v3465_v31  ;;  %703 = vmatpush.bf16.msrb.mxu0 %v3525_v53 }
  0x46   :  { %534 = vmatmul.bf16.vlgmr.msrb.gmra.mxu3 %v4888_v33 }
  0x48   :  { %605 = vmatpush.bf16.msra.mxu1 %v3415_v11  ;;  %618 = vmatpush.bf16.msra.mxu2 %v3610_v24 }
  0x49   :  { %631 = vmatpush.bf16.msra.mxu3 %v3489_v39  ;;  %704 = vmatpush.bf16.msrb.mxu0 %v3558_v1 }
  0x4c   :  { %606 = vmatpush.bf16.msra.mxu1 %v3430_v17  ;;  %619 = vmatpush.bf16.msra.mxu2 %v3640_v38 }
  0x4d   :  { %632 = vmatpush.bf16.msra.mxu3 %v3513_v48  ;;  %803 = vmatpush.bf16.msra.mxu0 %v3576_v8 }
  0x50   :  { %607 = vmatpush.bf16.msra.mxu1 %v3445_v23  ;;  %620 = vmatpush.bf16.msra.mxu2 %v3670_v54 }
  0x51   :  { %633 = vmatpush.bf16.msra.mxu3 %v3546_v60  ;;  %804 = vmatpush.bf16.msra.mxu0 %v3610_v24 }
  0x53   :  { %280 = vmatmul.bf16.gmra.mxu1 %v3696_v0  ;;  %309 = vmatmul.bf16.gmra.mxu2 %v3696_v0 }
  0x54   :  { %608 = vmatpush.bf16.msra.mxu1 %v3468_v32  ;;  %621 = vmatpush.bf16.msra.mxu2 %v3704_v6 }
  0x55   :  { %634 = vmatpush.bf16.msra.mxu3 %v3597_v18  ;;  %805 = vmatpush.bf16.msra.mxu0 %v3640_v38 }
  0x58   :  { %609 = vmatpush.bf16.msra.mxu1 %v3498_v43  ;;  %622 = vmatpush.bf16.msra.mxu2 %v3727_v20 }
  0x59   :  { %635 = vmatpush.bf16.msra.mxu3 %v3631_v34  ;;  %806 = vmatpush.bf16.msra.mxu0 %v3670_v54 }
  0x5c   :  { %610 = vmatpush.bf16.msra.mxu1 %v3525_v53  ;;  %623 = vmatpush.bf16.msra.mxu2 %v3752_v35 }
  0x5d   :  { %636 = vmatpush.bf16.msra.mxu3 %v3661_v49  ;;  %807 = vmatpush.bf16.msra.mxu0 %v3704_v6 }
  0x60   :  { %611 = vmatpush.bf16.msra.mxu1 %v3558_v1  ;;  %624 = vmatpush.bf16.msra.mxu2 %v3774_v47 }
  0x61   :  { %637 = vmatpush.bf16.msra.mxu3 %v3691_v63  ;;  %808 = vmatpush.bf16.msra.mxu0 %v3727_v20 }
  0x63   :  { %285 = vmatmul.bf16.gmra.mxu1 %v3568_v3  ;;  %314 = vmatmul.bf16.gmra.mxu2 %v3568_v3 }
  0x64   :  { %710 = vmatpush.bf16.msrb.mxu1 %v3576_v8  ;;  %723 = vmatpush.bf16.msrb.mxu2 %v3465_v31 }
  0x65   :  { %790 = vmatpush.bf16.msrb.mxu3 %v3406_v7  ;;  %809 = vmatpush.bf16.msra.mxu0 %v3752_v35 }
  0x68   :  { %711 = vmatpush.bf16.msrb.mxu1 %v3610_v24  ;;  %724 = vmatpush.bf16.msrb.mxu2 %v3489_v39 }
  0x69   :  { %791 = vmatpush.bf16.msrb.mxu3 %v3415_v11  ;;  %810 = vmatpush.bf16.msra.mxu0 %v3774_v47 }
  0x6c   :  { %712 = vmatpush.bf16.msrb.mxu1 %v3640_v38  ;;  %725 = vmatpush.bf16.msrb.mxu2 %v3513_v48 }
  0x6d   :  { %792 = vmatpush.bf16.msrb.mxu3 %v3430_v17 }
  0x70   :  { %713 = vmatpush.bf16.msrb.mxu1 %v3670_v54  ;;  %726 = vmatpush.bf16.msrb.mxu2 %v3546_v60 }
  0x71   :  { %793 = vmatpush.bf16.msrb.mxu3 %v3445_v23 }
  0x73   :  { %290 = vmatmul.bf16.gmra.mxu1 %v3701_v4  ;;  %319 = vmatmul.bf16.gmra.mxu2 %v3701_v4 }
  0x74   :  { %714 = vmatpush.bf16.msrb.mxu1 %v3704_v6  ;;  %727 = vmatpush.bf16.msrb.mxu2 %v3597_v18 }
  0x75   :  { %794 = vmatpush.bf16.msrb.mxu3 %v3468_v32 }
  0x78   :  { %715 = vmatpush.bf16.msrb.mxu1 %v3727_v20  ;;  %728 = vmatpush.bf16.msrb.mxu2 %v3631_v34 }
  0x79   :  { %795 = vmatpush.bf16.msrb.mxu3 %v3498_v43 }
  0x7c   :  { %716 = vmatpush.bf16.msrb.mxu1 %v3752_v35  ;;  %729 = vmatpush.bf16.msrb.mxu2 %v3661_v49 }
  0x7d   :  { %796 = vmatpush.bf16.msrb.mxu3 %v3525_v53 }
  0x80   :  { %717 = vmatpush.bf16.msrb.mxu1 %v3774_v47  ;;  %730 = vmatpush.bf16.msrb.mxu2 %v3691_v63 }
  0x81   :  { %797 = vmatpush.bf16.msrb.mxu3 %v3558_v1 }
  0xa0   :  { %v247_v3 = vpop.f32.mrf.mxu1 }
  0xa1   :  { %v248_v52 = vadd.f32 %v247_v3, %v3850_v51  ;;  %v3880_v3 = vperm.slane %v78_v2, 2 }
  0xa6   :  { %v257_v55 = vpop.f32.mrf.mxu2 }
  0xa7   :  { %v3854_v56 = vadd.f32 %v257_v55, %v3850_v51 }
  0xa8   :  { %v3856_v59 = vpop.f32.mrf.mxu1 }
  0xa9   :  { %v522_v57 = vpop.f32.mrf.mxu3 }
  0xaa   :  { %v555_v58 = vadd.f32 %v522_v57, %v248_v52 }
  0xab   :  { %v548_v9 = vpop.f32.mrf.mxu0 }
  0xac   :  { %v2776_v61 = vmul.f32 -1.442695, %v555_v58  ;;  %v595_v57 = vadd.f32 %v3878_v45, %v548_v9 }
  0xae   :  { %3175 = vpow2.f32 %v2776_v61  ;;  %v3858_v62 = vpop.f32.mrf.mxu2 }
  0xb0   :  { %v252_v4 = vpop.f32.mrf.mxu1 }
  0xb1   :  { %v524_v0 = vpop.f32.mrf.mxu3  ;;  %v3861_v5 = vadd.f32 %v252_v4, %v3850_v51 }
  0xb3   :  { %v550_v16 = vpop.f32.mrf.mxu0 }
  0xb4   :  { %v3176_v10 = vpop.eup %3175 }
  0xb5   :  { %v559_v12 = vadd.f32 1.0, %v3176_v10 }
  0xb6   :  { %v262_v13 = vpop.f32.mrf.mxu2 }
  0xb7   :  { %3177 = vrcp.f32 %v559_v12  ;;  %v3864_v14 = vadd.f32 %v262_v13, %v3850_v51  ;;  %v571_v44 = vand.u32 2147483648, %v559_v12  ;;  %vm565_vm1 = vweird.f32 %v559_v12 }
  0xb8   :  { %v3866_v15 = vpop.f32.mrf.mxu1  ;;  %v569_v46 = vand.u32 2147483647, %v559_v12 }
  0xb9   :  { %v572_v55 = vor.u32 1.1754944e-38, %v571_v44 }
  0xba   :  { %vm570_vm3 = vcmp.eq.f32.partialorder %v569_v46, 8.507059e+37 }
  0xbd   :  { %v3178_v19 = vpop.eup %3177 }
  0xbe   :  { %v561_v21 = vmul.f32 %v3178_v19, %v559_v12  ;;  %v3870_v25 = vpop.f32.mrf.mxu2  ;;  %vm566_vm0 = vweird.f32 %v3178_v19 }
  0xbf   :  { %4890 = vst [vmem:[#allocation5_spill] sm:$0xff] %v3870_v25  ;;  %vm567_vm2 = vmor %vm565_vm1, %vm566_vm0 }
  0xc0   :  { %v276_v26 = vpop.f32.mrf.mxu1  ;;  %v562_v27 = vsub.f32 1.0, %v561_v21 }
  0xc1   :  { %v277_v28 = vadd.f32 %v276_v26, %v3868_v22 }
  0xc2   :  { %v563_v29 = vmul.f32 %v3178_v19, %v562_v27 }
  0xc4   :  { %v564_v41 = vadd.f32 %v3178_v19, %v563_v29 }
  0xc6   :  { %v305_v37 = vpop.f32.mrf.mxu2  ;;  %v568_v50 = vsel %vm567_vm2, %v3178_v19, %v564_v41 }
  0xc7   :  { %v573_v0 = vsel %vm570_vm3, %v572_v55, %v568_v50  ;;  %v306_v10 = vadd.f32 %v305_v37, %v3880_v3 }
  0xc8   :  { %v3873_v42 = vpop.f32.mrf.mxu1  ;;  %v596_v12 = vmul.f32 %v595_v57, %v573_v0 }
  0xc9   :  { %v535_v30 = vpop.f32.mrf.mxu3 }
  0xca   :  { %v575_v36 = vadd.f32 %v535_v30, %v277_v28  ;;  %v597_v2 = vadd.f32 %v596_v12, %v306_v10 }
  0xcc   :  { %v2777_v40 = vmul.f32 -1.442695, %v575_v36 }
  0xce   :  { %3179 = vpow2.f32 %v2777_v40  ;;  %v3883_v58 = vpop.f32.mrf.mxu2 }
  0xd0   :  { %v281_v13 = vpop.f32.mrf.mxu1 }
  0xd1   :  { %v537_v52 = vpop.f32.mrf.mxu3  ;;  %v3887_v16 = vadd.f32 %v281_v13, %v3868_v22 }
  0xd4   :  { %v3180_v61 = vpop.eup %3179 }
  0xd5   :  { %v579_v4 = vadd.f32 1.0, %v3180_v61 }
  0xd6   :  { %v310_v19 = vpop.f32.mrf.mxu2 }
  0xd7   :  { %3181 = vrcp.f32 %v579_v4  ;;  %v3890_v21 = vadd.f32 %v310_v19, %v3880_v3  ;;  %v591_v29 = vand.u32 2147483648, %v579_v4  ;;  %v589_v36 = vand.u32 2147483647, %v579_v4 }
  0xd8   :  { %3183 = vtanh.f32 %v597_v2  ;;  %v3892_v9 = vpop.f32.mrf.mxu1  ;;  %vm585_vm5 = vweird.f32 %v579_v4 }
  0xd9   :  { %v592_v44 = vor.u32 1.1754944e-38, %v591_v29  ;;  %vm590_vm7 = vcmp.eq.f32.partialorder %v589_v36, 8.507059e+37  ;;  %v250_v36 = vadd.f32 %v3856_v59, %v3850_v51 }
  0xdd   :  { %v3182_v26 = vpop.eup %3181 }
  0xde   :  { %v581_v27 = vmul.f32 %v3182_v26, %v579_v4  ;;  %vm586_vm4 = vweird.f32 %v3182_v26  ;;  %v3184_v37 = vpop.eup %3183  ;;  %v3894_v40 = vpop.f32.mrf.mxu2 }
  0xdf   :  { %vm587_vm6 = vmor %vm585_vm5, %vm586_vm4  ;;  %v599_v52 = vsub.f32 0.0, %v3184_v37 }
  0xe0   :  { %v582_v28 = vsub.f32 1.0, %v581_v27  ;;  %v286_v46 = vpop.f32.mrf.mxu1 }
  0xe1   :  { %v3897_v55 = vadd.f32 %v286_v46, %v3868_v22  ;;  %v279_v46 = vadd.f32 %v3873_v42, %v3868_v22 }
  0xe2   :  { %v583_v30 = vmul.f32 %v3182_v26, %v582_v28 }
  0xe4   :  { %v584_v41 = vadd.f32 %v3182_v26, %v583_v30 }
  0xe6   :  { %v588_v50 = vsel %vm587_vm6, %v3182_v26, %v584_v41  ;;  %v315_v10 = vpop.f32.mrf.mxu2 }
  0xe7   :  { %v593_v57 = vsel %vm590_vm7, %v592_v44, %v588_v50  ;;  %v3904_v4 = vadd.f32 %v315_v10, %v3880_v3 }
  0xe8   :  { %v600_v61 = vmul.f32 %v599_v52, %v593_v57  ;;  %v3906_v12 = vpop.f32.mrf.mxu1 }
  0xea   :  { %v3899_v0 = vadd.f32 %v3184_v37, %v600_v61 }
  0xec   :  { %v603_v13 = vpack.c.bf16 %v3899_v0, %v3899_v0 }
  0xee   :  { %612 = vmatmul.bf16.vlgmr.msra.gmra.mxu1 %v603_v13  ;;  %625 = vmatmul.bf16.vlgmr.msra.gmra.mxu2 %v603_v13  ;;  %v3911_v2 = vpop.f32.mrf.mxu2 }
  0xef   :  { %638 = vmatmul.bf16.vlgmr.msra.gmra.mxu3 %v603_v13  ;;  %816 = vmatpush.bf16.msra.mxu1 %v3465_v31 }
  0xf0   :  { %883 = vmatpush.bf16.msra.mxu2 %v3406_v7  ;;  %896 = vmatpush.bf16.msra.mxu3 %v3576_v8  ;;  %v291_v19 = vpop.f32.mrf.mxu1 }
  0xf1   :  { %v3917_v26 = vadd.f32 %v291_v19, %v3868_v22 }
  0xf3   :  { %817 = vmatpush.bf16.msra.mxu1 %v3489_v39  ;;  %4891 = vst [vmem:[#allocation6_spill] sm:$0xff] %v3917_v26 }
  0xf4   :  { %884 = vmatpush.bf16.msra.mxu2 %v3415_v11  ;;  %897 = vmatpush.bf16.msra.mxu3 %v3610_v24 }
  0xf6   :  { %v320_v27 = vpop.f32.mrf.mxu2 }
  0xf7   :  { %818 = vmatpush.bf16.msra.mxu1 %v3513_v48  ;;  %v3924_v28 = vadd.f32 %v320_v27, %v3880_v3 }
  0xf8   :  { %885 = vmatpush.bf16.msra.mxu2 %v3430_v17  ;;  %898 = vmatpush.bf16.msra.mxu3 %v3640_v38  ;;  %v3940_v29 = vpop.f32.mrf.mxu1 }
  0xf9   :  { %4892 = vst [vmem:[#allocation7_spill] sm:$0xff] %v3924_v28 }
  0xfa   :  { %4893 = vst [vmem:[#allocation8_spill] sm:$0xff] %v3940_v29 }
  0xfb   :  { %819 = vmatpush.bf16.msra.mxu1 %v3546_v60 }
  0xfc   :  { %886 = vmatpush.bf16.msra.mxu2 %v3445_v23  ;;  %899 = vmatpush.bf16.msra.mxu3 %v3670_v54 }
  0xfe   :  { %v3942_v30 = vpop.f32.mrf.mxu2 }
  0xff   :  { %820 = vmatpush.bf16.msra.mxu1 %v3597_v18  ;;  %4894 = vst [vmem:[#allocation9_spill] sm:$0xff] %v3942_v30 }
 0x100   :  { %887 = vmatpush.bf16.msra.mxu2 %v3468_v32  ;;  %900 = vmatpush.bf16.msra.mxu3 %v3704_v6 }
 0x103   :  { %821 = vmatpush.bf16.msra.mxu1 %v3631_v34 }
 0x104   :  { %888 = vmatpush.bf16.msra.mxu2 %v3498_v43  ;;  %901 = vmatpush.bf16.msra.mxu3 %v3727_v20 }
 0x107   :  { %822 = vmatpush.bf16.msra.mxu1 %v3661_v49 }
 0x108   :  { %889 = vmatpush.bf16.msra.mxu2 %v3525_v53  ;;  %902 = vmatpush.bf16.msra.mxu3 %v3752_v35 }
 0x10b   :  { %823 = vmatpush.bf16.msra.mxu1 %v3691_v63 }
 0x10c   :  { %890 = vmatpush.bf16.msra.mxu2 %v3558_v1  ;;  %903 = vmatpush.bf16.msra.mxu3 %v3774_v47 }
 0x16b   :  { %v613_v37 = vpop.f32.mrf.mxu1 }
 0x16c   :  { %v647_v41 = vadd.f32 %v613_v37, %v250_v36 }
 0x16e   :  { %v2778_v44 = vmul.f32 -1.442695, %v647_v41 }
 0x170   :  { %3185 = vpow2.f32 %v2778_v44 }
 0x171   :  { %v626_v50 = vpop.f32.mrf.mxu2 }
 0x172   :  { %v667_v52 = vadd.f32 %v626_v50, %v279_v46  ;;  %v639_v57 = vpop.f32.mrf.mxu3 }
 0x173   :  { %v615_v61 = vpop.f32.mrf.mxu1 }
 0x174   :  { %v2779_v10 = vmul.f32 -1.442695, %v667_v52 }
 0x176   :  { %v3186_v13 = vpop.eup %3185  ;;  %3187 = vpow2.f32 %v2779_v10 }
 0x177   :  { %v651_v19 = vadd.f32 1.0, %v3186_v13 }
 0x179   :  { %3189 = vrcp.f32 %v651_v19  ;;  %v628_v27 = vpop.f32.mrf.mxu2  ;;  %v663_v41 = vand.u32 2147483648, %v651_v19  ;;  %v661_v44 = vand.u32 2147483647, %v651_v19  ;;  %vm657_vm9 = vweird.f32 %v651_v19 }
 0x17a   :  { %v641_v33 = vpop.f32.mrf.mxu3  ;;  %v308_v27 = vadd.f32 %v3883_v58, %v3880_v3 }
 0x17b   :  { %v664_v52 = vor.u32 1.1754944e-38, %v663_v41  ;;  %vm662_vm11 = vcmp.eq.f32.partialorder %v661_v44, 8.507059e+37  ;;  %v687_v33 = vadd.f32 %v3878_v45, %v639_v57 }
 0x17c   :  { %v3188_v30 = vpop.eup %3187 }
 0x17d   :  { %v671_v59 = vadd.f32 1.0, %v3188_v30 }
 0x17f   :  { %v3190_v25 = vpop.eup %3189  ;;  %3191 = vrcp.f32 %v671_v59  ;;  %v683_v26 = vand.u32 2147483648, %v671_v59  ;;  %vm677_vm13 = vweird.f32 %v671_v59 }
 0x180   :  { %v653_v36 = vmul.f32 %v3190_v25, %v651_v19  ;;  %vm658_vm8 = vweird.f32 %v3190_v25  ;;  %v681_v19 = vand.u32 2147483647, %v671_v59 }
 0x181   :  { %vm659_vm10 = vmor %vm657_vm9, %vm658_vm8 }
 0x182   :  { %v654_v37 = vsub.f32 1.0, %v653_v36  ;;  %vm682_vm15 = vcmp.eq.f32.partialorder %v681_v19, 8.507059e+37 }
 0x184   :  { %v655_v42 = vmul.f32 %v3190_v25, %v654_v37 }
 0x185   :  { %v3192_v46 = vpop.eup %3191 }
 0x186   :  { %v673_v50 = vmul.f32 %v3192_v46, %v671_v59  ;;  %v656_v61 = vadd.f32 %v3190_v25, %v655_v42  ;;  %vm678_vm12 = vweird.f32 %v3192_v46 }
 0x187   :  { %vm679_vm14 = vmor %vm677_vm13, %vm678_vm12 }
 0x188   :  { %v674_v10 = vsub.f32 1.0, %v673_v50  ;;  %v660_v13 = vsel %vm659_vm10, %v3190_v25, %v656_v61  ;;  %v684_v25 = vor.u32 1.1754944e-38, %v683_v26 }
 0x189   :  { %v665_v30 = vsel %vm662_vm11, %v664_v52, %v660_v13 }
 0x18a   :  { %v688_v36 = vmul.f32 %v687_v33, %v665_v30  ;;  %v675_v29 = vmul.f32 %v3192_v46, %v674_v10 }
 0x18c   :  { %v689_v37 = vadd.f32 %v688_v36, %v308_v27  ;;  %v676_v28 = vadd.f32 %v3192_v46, %v675_v29 }
 0x18e   :  { %3193 = vtanh.f32 %v689_v37  ;;  %v680_v41 = vsel %vm679_vm14, %v3192_v46, %v676_v28 }
 0x18f   :  { %v685_v57 = vsel %vm682_vm15, %v684_v25, %v680_v41 }
 0x194   :  { %v3194_v42 = vpop.eup %3193 }
 0x195   :  { %v691_v44 = vsub.f32 %v3899_v0, %v3194_v42 }
 0x197   :  { %v692_v50 = vmul.f32 %v691_v44, %v685_v57 }
 0x199   :  { %v3952_v61 = vadd.f32 %v3194_v42, %v692_v50 }
 0x19b   :  { %v696_v58 = vpack.c.bf16 %v3952_v61, %v3952_v61 }
 0x19d   :  { %705 = vmatmul.bf16.vlgmr.msrb.gmra.mxu0 %v696_v58  ;;  %718 = vmatmul.bf16.vlgmr.msrb.gmra.mxu1 %v696_v58 }
 0x19e   :  { %731 = vmatmul.bf16.vlgmr.msrb.gmra.mxu2 %v696_v58  ;;  %909 = vmatpush.bf16.msrb.mxu0 %v3465_v31 }
 0x19f   :  { %976 = vmatpush.bf16.msrb.mxu1 %v3406_v7  ;;  %989 = vmatpush.bf16.msrb.mxu2 %v3576_v8 }
 0x1a2   :  { %910 = vmatpush.bf16.msrb.mxu0 %v3489_v39 }
 0x1a3   :  { %977 = vmatpush.bf16.msrb.mxu1 %v3415_v11  ;;  %990 = vmatpush.bf16.msrb.mxu2 %v3610_v24 }
 0x1a6   :  { %911 = vmatpush.bf16.msrb.mxu0 %v3513_v48 }
 0x1a7   :  { %978 = vmatpush.bf16.msrb.mxu1 %v3430_v17  ;;  %991 = vmatpush.bf16.msrb.mxu2 %v3640_v38 }
 0x1aa   :  { %912 = vmatpush.bf16.msrb.mxu0 %v3546_v60 }
 0x1ab   :  { %979 = vmatpush.bf16.msrb.mxu1 %v3445_v23  ;;  %992 = vmatpush.bf16.msrb.mxu2 %v3670_v54 }
 0x1ae   :  { %913 = vmatpush.bf16.msrb.mxu0 %v3597_v18 }
 0x1af   :  { %980 = vmatpush.bf16.msrb.mxu1 %v3468_v32  ;;  %993 = vmatpush.bf16.msrb.mxu2 %v3704_v6 }
 0x1b2   :  { %914 = vmatpush.bf16.msrb.mxu0 %v3631_v34 }
 0x1b3   :  { %981 = vmatpush.bf16.msrb.mxu1 %v3498_v43  ;;  %994 = vmatpush.bf16.msrb.mxu2 %v3727_v20 }
 0x1b6   :  { %915 = vmatpush.bf16.msrb.mxu0 %v3661_v49 }
 0x1b7   :  { %982 = vmatpush.bf16.msrb.mxu1 %v3525_v53  ;;  %995 = vmatpush.bf16.msrb.mxu2 %v3752_v35 }
 0x1ba   :  { %916 = vmatpush.bf16.msrb.mxu0 %v3691_v63 }
 0x1bb   :  { %983 = vmatpush.bf16.msrb.mxu1 %v3558_v1  ;;  %996 = vmatpush.bf16.msrb.mxu2 %v3774_v47 }
 0x21a   :  { %v706_v26 = vpop.f32.mrf.mxu0  ;;  %v719_v28 = vpop.f32.mrf.mxu1 }
 0x21b   :  { %v740_v29 = vadd.f32 %v706_v26, %v3861_v5  ;;  %v760_v59 = vadd.f32 %v719_v28, %v3887_v16 }
 0x21d   :  { %v2780_v46 = vmul.f32 -1.442695, %v740_v29  ;;  %v2781_v52 = vmul.f32 -1.442695, %v760_v59 }
 0x21f   :  { %3195 = vpow2.f32 %v2780_v46 }
 0x220   :  { %3197 = vpow2.f32 %v2781_v52 }
 0x221   :  { %v732_v10 = vpop.f32.mrf.mxu2 }
 0x222   :  { %v708_v13 = vpop.f32.mrf.mxu0  ;;  %v721_v33 = vpop.f32.mrf.mxu1  ;;  %v780_v59 = vadd.f32 %v3878_v45, %v732_v10 }
 0x225   :  { %v3196_v30 = vpop.eup %3195 }
 0x226   :  { %v3198_v27 = vpop.eup %3197  ;;  %v744_v36 = vadd.f32 1.0, %v3196_v30 }
 0x227   :  { %v764_v37 = vadd.f32 1.0, %v3198_v27 }
 0x228   :  { %3199 = vrcp.f32 %v744_v36  ;;  %v756_v16 = vand.u32 2147483648, %v744_v36  ;;  %v754_v50 = vand.u32 2147483647, %v744_v36  ;;  %vm750_vm1 = vweird.f32 %v744_v36 }
 0x229   :  { %3201 = vrcp.f32 %v764_v37  ;;  %v734_v19 = vpop.f32.mrf.mxu2  ;;  %v776_v27 = vand.u32 2147483648, %v764_v37  ;;  %vm770_vm5 = vweird.f32 %v764_v37 }
 0x22a   :  { %v757_v28 = vor.u32 1.1754944e-38, %v756_v16  ;;  %vm755_vm3 = vcmp.eq.f32.partialorder %v754_v50, 8.507059e+37  ;;  %v774_v19 = vand.u32 2147483647, %v764_v37 }
 0x22c   :  { %vm775_vm7 = vcmp.eq.f32.partialorder %v774_v19, 8.507059e+37 }
 0x22e   :  { %v3200_v41 = vpop.eup %3199 }
 0x22f   :  { %v3202_v42 = vpop.eup %3201  ;;  %v746_v25 = vmul.f32 %v3200_v41, %v744_v36  ;;  %vm751_vm0 = vweird.f32 %v3200_v41 }
 0x230   :  { %v766_v44 = vmul.f32 %v3202_v42, %v764_v37  ;;  %vm752_vm2 = vmor %vm750_vm1, %vm751_vm0  ;;  %vm771_vm4 = vweird.f32 %v3202_v42  ;;  %v284_v37 = vadd.f32 %v3892_v9, %v3868_v22 }
 0x231   :  { %v747_v5 = vsub.f32 1.0, %v746_v25  ;;  %vm772_vm6 = vmor %vm770_vm5, %vm771_vm4 }
 0x232   :  { %v767_v26 = vsub.f32 1.0, %v766_v44 }
 0x233   :  { %v748_v57 = vmul.f32 %v3200_v41, %v747_v5  ;;  %v777_v5 = vor.u32 1.1754944e-38, %v776_v27 }
 0x234   :  { %v768_v13 = vmul.f32 %v3202_v42, %v767_v26  ;;  %v255_v26 = vadd.f32 %v3866_v15, %v3850_v51 }
 0x235   :  { %v749_v58 = vadd.f32 %v3200_v41, %v748_v57 }
 0x236   :  { %v769_v30 = vadd.f32 %v3202_v42, %v768_v13 }
 0x237   :  { %v753_v29 = vsel %vm752_vm2, %v3200_v41, %v749_v58 }
 0x238   :  { %v758_v46 = vsel %vm755_vm3, %v757_v28, %v753_v29  ;;  %v773_v36 = vsel %vm772_vm6, %v3202_v42, %v769_v30 }
 0x239   :  { %v781_v52 = vmul.f32 %v780_v59, %v758_v46  ;;  %v778_v44 = vsel %vm775_vm7, %v777_v5, %v773_v36 }
 0x23b   :  { %v782_v33 = vadd.f32 %v781_v52, %v3890_v21 }
 0x23d   :  { %3203 = vtanh.f32 %v782_v33 }
 0x243   :  { %v3204_v25 = vpop.eup %3203 }
 0x244   :  { %v784_v41 = vsub.f32 %v3952_v61, %v3204_v25 }
 0x246   :  { %v785_v10 = vmul.f32 %v784_v41, %v778_v44 }
 0x248   :  { %v3985_v16 = vadd.f32 %v3204_v25, %v785_v10 }
 0x24a   :  { %v789_v21 = vpack.c.bf16 %v3985_v16, %v3985_v16 }
 0x24c   :  { %798 = vmatmul.bf16.vlgmr.msrb.gmra.mxu3 %v789_v21  ;;  %811 = vmatmul.bf16.vlgmr.msra.gmra.mxu0 %v789_v21 }
 0x24d   :  { %824 = vmatmul.bf16.vlgmr.msra.gmra.mxu1 %v789_v21  ;;  %1002 = vmatpush.bf16.msrb.mxu3 %v3465_v31 }
 0x24e   :  { %1069 = vmatpush.bf16.msra.mxu0 %v3406_v7  ;;  %1082 = vmatpush.bf16.msra.mxu1 %v3576_v8 }
 0x251   :  { %1003 = vmatpush.bf16.msrb.mxu3 %v3489_v39 }
 0x252   :  { %1070 = vmatpush.bf16.msra.mxu0 %v3415_v11  ;;  %1083 = vmatpush.bf16.msra.mxu1 %v3610_v24 }
 0x255   :  { %1004 = vmatpush.bf16.msrb.mxu3 %v3513_v48 }
 0x256   :  { %1071 = vmatpush.bf16.msra.mxu0 %v3430_v17  ;;  %1084 = vmatpush.bf16.msra.mxu1 %v3640_v38 }
 0x259   :  { %1005 = vmatpush.bf16.msrb.mxu3 %v3546_v60 }
 0x25a   :  { %1072 = vmatpush.bf16.msra.mxu0 %v3445_v23  ;;  %1085 = vmatpush.bf16.msra.mxu1 %v3670_v54 }
 0x25d   :  { %1006 = vmatpush.bf16.msrb.mxu3 %v3597_v18 }
 0x25e   :  { %1073 = vmatpush.bf16.msra.mxu0 %v3468_v32  ;;  %1086 = vmatpush.bf16.msra.mxu1 %v3704_v6 }
 0x261   :  { %1007 = vmatpush.bf16.msrb.mxu3 %v3631_v34 }
 0x262   :  { %1074 = vmatpush.bf16.msra.mxu0 %v3498_v43  ;;  %1087 = vmatpush.bf16.msra.mxu1 %v3727_v20 }
 0x265   :  { %1008 = vmatpush.bf16.msrb.mxu3 %v3661_v49 }
 0x266   :  { %1075 = vmatpush.bf16.msra.mxu0 %v3525_v53  ;;  %1088 = vmatpush.bf16.msra.mxu1 %v3752_v35 }
 0x269   :  { %1009 = vmatpush.bf16.msrb.mxu3 %v3691_v63 }
 0x26a   :  { %1076 = vmatpush.bf16.msra.mxu0 %v3558_v1  ;;  %1089 = vmatpush.bf16.msra.mxu1 %v3774_v47 }
 0x2c9   :  { %v812_v42 = vpop.f32.mrf.mxu0 }
 0x2ca   :  { %v853_v57 = vadd.f32 %v812_v42, %v284_v37  ;;  %v825_v50 = vpop.f32.mrf.mxu1 }
 0x2cc   :  { %v2783_v58 = vmul.f32 -1.442695, %v853_v57  ;;  %v873_v57 = vadd.f32 %v3878_v45, %v825_v50 }
 0x2ce   :  { %3205 = vpow2.f32 %v2783_v58 }
 0x2cf   :  { %v799_v28 = vpop.f32.mrf.mxu3 }
 0x2d0   :  { %v833_v29 = vadd.f32 %v799_v28, %v255_v26  ;;  %v313_v28 = vadd.f32 %v3894_v40, %v3880_v3 }
 0x2d1   :  { %v814_v59 = vpop.f32.mrf.mxu0 }
 0x2d2   :  { %v2782_v46 = vmul.f32 -1.442695, %v833_v29  ;;  %v827_v52 = vpop.f32.mrf.mxu1 }
 0x2d4   :  { %3207 = vpow2.f32 %v2782_v46  ;;  %v3206_v13 = vpop.eup %3205 }
 0x2d5   :  { %v857_v27 = vadd.f32 1.0, %v3206_v13 }
 0x2d7   :  { %v801_v33 = vpop.f32.mrf.mxu3  ;;  %v869_v13 = vand.u32 2147483648, %v857_v27  ;;  %vm863_vm13 = vweird.f32 %v857_v27 }
 0x2d8   :  { %v867_v33 = vand.u32 2147483647, %v857_v27 }
 0x2da   :  { %v3208_v30 = vpop.eup %3207  ;;  %vm868_vm15 = vcmp.eq.f32.partialorder %v867_v33, 8.507059e+37 }
 0x2db   :  { %v837_v19 = vadd.f32 1.0, %v3208_v30 }
 0x2dd   :  { %3209 = vrcp.f32 %v837_v19  ;;  %v849_v15 = vand.u32 2147483648, %v837_v19  ;;  %v847_v10 = vand.u32 2147483647, %v837_v19  ;;  %vm843_vm9 = vweird.f32 %v837_v19 }
 0x2de   :  { %3211 = vrcp.f32 %v857_v27 }
 0x2df   :  { %v850_v42 = vor.u32 1.1754944e-38, %v849_v15  ;;  %vm848_vm11 = vcmp.eq.f32.partialorder %v847_v10, 8.507059e+37 }
 0x2e3   :  { %v3210_v9 = vpop.eup %3209 }
 0x2e4   :  { %v3212_v36 = vpop.eup %3211  ;;  %v839_v25 = vmul.f32 %v3210_v9, %v837_v19  ;;  %vm844_vm8 = vweird.f32 %v3210_v9 }
 0x2e5   :  { %v859_v41 = vmul.f32 %v3212_v36, %v857_v27  ;;  %vm845_vm10 = vmor %vm843_vm9, %vm844_vm8  ;;  %vm864_vm12 = vweird.f32 %v3212_v36 }
 0x2e6   :  { %v840_v5 = vsub.f32 1.0, %v839_v25  ;;  %vm865_vm14 = vmor %vm863_vm13, %vm864_vm12  ;;  %v870_v25 = vor.u32 1.1754944e-38, %v869_v13 }
 0x2e7   :  { %v860_v37 = vsub.f32 1.0, %v859_v41 }
 0x2e8   :  { %v841_v44 = vmul.f32 %v3210_v9, %v840_v5 }
 0x2e9   :  { %v861_v59 = vmul.f32 %v3212_v36, %v860_v37 }
 0x2ea   :  { %v842_v21 = vadd.f32 %v3210_v9, %v841_v44 }
 0x2eb   :  { %v862_v52 = vadd.f32 %v3212_v36, %v861_v59 }
 0x2ec   :  { %v846_v58 = vsel %vm845_vm10, %v3210_v9, %v842_v21 }
 0x2ed   :  { %v851_v26 = vsel %vm848_vm11, %v850_v42, %v846_v58  ;;  %v866_v30 = vsel %vm865_vm14, %v3212_v36, %v862_v52 }
 0x2ee   :  { %v874_v29 = vmul.f32 %v873_v57, %v851_v26  ;;  %v871_v9 = vsel %vm868_vm15, %v870_v25, %v866_v30 }
 0x2f0   :  { %v875_v46 = vadd.f32 %v874_v29, %v313_v28 }
 0x2f2   :  { %3213 = vtanh.f32 %v875_v46 }
 0x2f8   :  { %v3214_v19 = vpop.eup %3213 }
 0x2f9   :  { %v877_v50 = vsub.f32 %v3985_v16, %v3214_v19 }
 0x2fb   :  { %v878_v5 = vmul.f32 %v877_v50, %v871_v9 }
 0x2fd   :  { %v4021_v41 = vadd.f32 %v3214_v19, %v878_v5  ;;  %v260_v5 = vadd.f32 %v3858_v62, %v3850_v51 }
 0x2ff   :  { %v882_v40 = vpack.c.bf16 %v4021_v41, %v4021_v41 }
 0x301   :  { %891 = vmatmul.bf16.vlgmr.msra.gmra.mxu2 %v882_v40  ;;  %904 = vmatmul.bf16.vlgmr.msra.gmra.mxu3 %v882_v40 }
 0x302   :  { %917 = vmatmul.bf16.vlgmr.msrb.gmra.mxu0 %v882_v40  ;;  %1095 = vmatpush.bf16.msra.mxu2 %v3465_v31 }
 0x303   :  { %1162 = vmatpush.bf16.msra.mxu3 %v3406_v7  ;;  %1175 = vmatpush.bf16.msrb.mxu0 %v3576_v8 }
 0x306   :  { %1096 = vmatpush.bf16.msra.mxu2 %v3489_v39 }
 0x307   :  { %1163 = vmatpush.bf16.msra.mxu3 %v3415_v11  ;;  %1176 = vmatpush.bf16.msrb.mxu0 %v3610_v24 }
 0x30a   :  { %1097 = vmatpush.bf16.msra.mxu2 %v3513_v48 }
 0x30b   :  { %1164 = vmatpush.bf16.msra.mxu3 %v3430_v17  ;;  %1177 = vmatpush.bf16.msrb.mxu0 %v3640_v38 }
 0x30e   :  { %1098 = vmatpush.bf16.msra.mxu2 %v3546_v60 }
 0x30f   :  { %1165 = vmatpush.bf16.msra.mxu3 %v3445_v23  ;;  %1178 = vmatpush.bf16.msrb.mxu0 %v3670_v54 }
 0x312   :  { %1099 = vmatpush.bf16.msra.mxu2 %v3597_v18 }
 0x313   :  { %1166 = vmatpush.bf16.msra.mxu3 %v3468_v32  ;;  %1179 = vmatpush.bf16.msrb.mxu0 %v3704_v6 }
 0x316   :  { %1100 = vmatpush.bf16.msra.mxu2 %v3631_v34 }
 0x317   :  { %1167 = vmatpush.bf16.msra.mxu3 %v3498_v43  ;;  %1180 = vmatpush.bf16.msrb.mxu0 %v3727_v20 }
 0x31a   :  { %1101 = vmatpush.bf16.msra.mxu2 %v3661_v49 }
 0x31b   :  { %1168 = vmatpush.bf16.msra.mxu3 %v3525_v53  ;;  %1181 = vmatpush.bf16.msrb.mxu0 %v3752_v35 }
 0x31e   :  { %1102 = vmatpush.bf16.msra.mxu2 %v3691_v63 }
 0x31f   :  { %1169 = vmatpush.bf16.msra.mxu3 %v3558_v1  ;;  %1182 = vmatpush.bf16.msrb.mxu0 %v3774_v47 }
 0x37f   :  { %v918_v7 = vpop.f32.mrf.mxu0 }
 0x380   :  { %v966_v42 = vadd.f32 %v3878_v45, %v918_v7 }
 0x384   :  { %v892_v11 = vpop.f32.mrf.mxu2  ;;  %v905_v17 = vpop.f32.mrf.mxu3 }
 0x385   :  { %v926_v23 = vadd.f32 %v892_v11, %v3854_v56  ;;  %v946_v32 = vadd.f32 %v905_v17, %v3897_v55 }
 0x387   :  { %v2784_v43 = vmul.f32 -1.442695, %v926_v23  ;;  %v2785_v8 = vmul.f32 -1.442695, %v946_v32  ;;  %v920_v24 = vpop.f32.mrf.mxu0 }
 0x388   :  { %v2842_v24 = vld [vmem:[%s4882_s4 + $0x60] sm:$0xf] }
 0x389   :  { %3215 = vpow2.f32 %v2784_v43  ;;  %v3100_v43 = vld [vmem:[%s4882_s4 + $0x80] sm:$0xf0] }
 0x38a   :  { %3217 = vpow2.f32 %v2785_v8 }
 0x38c   :  { %v894_v53 = vpop.f32.mrf.mxu2  ;;  %v907_v38 = vpop.f32.mrf.mxu3 }
 0x38d   :  { %v3097_v53 = vld [vmem:[%s4882_s4 + $0x68] sm:$0xf0] }
 0x38f   :  { %v3216_v54 = vpop.eup %3215 }
 0x390   :  { %v3218_v6 = vpop.eup %3217  ;;  %v930_v20 = vadd.f32 1.0, %v3216_v54 }
 0x391   :  { %v950_v1 = vadd.f32 1.0, %v3218_v6  ;;  %v2843_v6 = vor.u32 %v3097_v53, %v2842_v24  ;;  %v3124_v24 = vld [vmem:[%s4884_s5 + $0x80] sm:$0xf0] }
 0x392   :  { %3219 = vrcp.f32 %v930_v20  ;;  %v942_v56 = vand.u32 2147483648, %v930_v20  ;;  %v940_v44 = vand.u32 2147483647, %v930_v20  ;;  %vm936_vm1 = vweird.f32 %v930_v20 }
 0x393   :  { %3221 = vrcp.f32 %v950_v1  ;;  %v962_v46 = vand.u32 2147483648, %v950_v1  ;;  %vm956_vm5 = vweird.f32 %v950_v1  ;;  %v960_v52 = vand.u32 2147483647, %v950_v1 }
 0x394   :  { %v943_v21 = vor.u32 1.1754944e-38, %v942_v56  ;;  %vm941_vm3 = vcmp.eq.f32.partialorder %v940_v44, 8.507059e+37 }
 0x395   :  { %v963_v30 = vor.u32 1.1754944e-38, %v962_v46  ;;  %vm961_vm7 = vcmp.eq.f32.partialorder %v960_v52, 8.507059e+37  ;;  %v3085_v46 = vld [vmem:[%s4882_s4 + $0x8] sm:$0xf0] }
 0x398   :  { %v3220_v35 = vpop.eup %3219 }
 0x399   :  { %v3222_v47 = vpop.eup %3221  ;;  %v932_v27 = vmul.f32 %v3220_v35, %v930_v20  ;;  %vm937_vm0 = vweird.f32 %v3220_v35 }
 0x39a   :  { %v952_v15 = vmul.f32 %v3222_v47, %v950_v1  ;;  %vm938_vm2 = vmor %vm936_vm1, %vm937_vm0  ;;  %vm957_vm4 = vweird.f32 %v3222_v47 }
 0x39b   :  { %v933_v36 = vsub.f32 1.0, %v932_v27  ;;  %vm958_vm6 = vmor %vm956_vm5, %vm957_vm4  ;;  %v3094_v27 = vld [vmem:[%s4882_s4 + $0x50] sm:$0xf0] }
 0x39c   :  { %v953_v37 = vsub.f32 1.0, %v952_v15  ;;  %v2818_v15 = vld [vmem:[%s4882_s4 + $0x30] sm:$0xf] }
 0x39d   :  { %v934_v55 = vmul.f32 %v3220_v35, %v933_v36 }
 0x39e   :  { %v954_v28 = vmul.f32 %v3222_v47, %v953_v37  ;;  %v2806_v37 = vld [vmem:[%s4882_s4 + $0x18] sm:$0xf] }
 0x39f   :  { %v935_v10 = vadd.f32 %v3220_v35, %v934_v55  ;;  %v3091_v55 = vld [vmem:[%s4882_s4 + $0x38] sm:$0xf0] }
 0x3a0   :  { %v955_v59 = vadd.f32 %v3222_v47, %v954_v28 }
 0x3a1   :  { %v939_v57 = vsel %vm938_vm2, %v3220_v35, %v935_v10 }
 0x3a2   :  { %v944_v58 = vsel %vm941_vm3, %v943_v21, %v939_v57  ;;  %v959_v13 = vsel %vm958_vm6, %v3222_v47, %v955_v59  ;;  %v2830_v47 = vld [vmem:[%s4882_s4 + $0x48] sm:$0xf]  ;;  %v2819_v21 = vor.u32 %v3091_v55, %v2818_v15  ;;  %v2794_v59 = vld [vmem:[%s4882_s4] sm:$0xf]  ;;  %v2886_v15 = vld [vmem:[%s4882_s4 + $0xb0] sm:$0xf] }
 0x3a3   :  { %v967_v26 = vmul.f32 %v966_v42, %v944_v58  ;;  %v964_v25 = vsel %vm961_vm7, %v963_v30, %v959_v13  ;;  %v2831_v56 = vor.u32 %v3094_v27, %v2830_v47  ;;  %v3088_v42 = vld [vmem:[%s4882_s4 + $0x20] sm:$0xf0] }
 0x3a5   :  { %v968_v29 = vadd.f32 %v967_v26, %v3904_v4  ;;  %v2807_v26 = vor.u32 %v3088_v42, %v2806_v37  ;;  %v2926_v37 = vld [vmem:[%s4884_s5 + $0x48] sm:$0xf]  ;;  %v3118_v42 = vld [vmem:[%s4884_s5 + $0x50] sm:$0xf0] }
 0x3a7   :  { %3223 = vtanh.f32 %v968_v29 }
 0x3ad   :  { %v3224_v33 = vpop.eup %3223 }
 0x3ae   :  { %v970_v19 = vsub.f32 %v4021_v41, %v3224_v33 }
 0x3b0   :  { %v971_v50 = vmul.f32 %v970_v19, %v964_v25  ;;  %v2795_v19 = vor.u32 %v3085_v46, %v2794_v59  ;;  %v3104_v59 = vld [vmem:[%s4882_s4 + $0xa0] sm:$0xf0] }
 0x3b2   :  { %v4054_v9 = vadd.f32 %v3224_v33, %v971_v50 }
 0x3b4   :  { %v975_v4 = vpack.c.bf16 %v4054_v9, %v4054_v9 }
 0x3b6   :  { %984 = vmatmul.bf16.vlgmr.msrb.gmra.mxu1 %v975_v4  ;;  %997 = vmatmul.bf16.vlgmr.msrb.gmra.mxu2 %v975_v4 }
 0x3b7   :  { %1010 = vmatmul.bf16.vlgmr.msrb.gmra.mxu3 %v975_v4  ;;  %1188 = vmatpush.bf16.msrb.mxu1 %v3465_v31  ;;  %v2878_v31 = vld [vmem:[%s4882_s4 + $0xa8] sm:$0xf] }
 0x3bb   :  { %1189 = vmatpush.bf16.msrb.mxu1 %v3489_v39  ;;  %v3106_v39 = vld [vmem:[%s4882_s4 + $0xb0] sm:$0xf0] }
 0x3bf   :  { %1190 = vmatpush.bf16.msrb.mxu1 %v3513_v48  ;;  %v2879_v48 = vor.u32 %v3106_v39, %v2878_v31 }
 0x3c1   :  { %1435 = vmatpush.bf16.msrb.mxu2 %v2879_v48 }
 0x3c3   :  { %1191 = vmatpush.bf16.msrb.mxu1 %v3546_v60 }
 0x3c7   :  { %1192 = vmatpush.bf16.msrb.mxu1 %v3597_v18  ;;  %v289_v18 = vadd.f32 %v3906_v12, %v3868_v22  ;;  %v2854_v12 = vld [vmem:[%s4882_s4 + $0x78] sm:$0xf] }
 0x3c8   :  { %v2855_v8 = vor.u32 %v3100_v43, %v2854_v12  ;;  %v2974_v43 = vld [vmem:[%s4884_s5 + $0xa8] sm:$0xf] }
 0x3cb   :  { %1193 = vmatpush.bf16.msrb.mxu1 %v3631_v34  ;;  %v2866_v34 = vld [vmem:[%s4882_s4 + $0x90] sm:$0xf] }
 0x3cf   :  { %1194 = vmatpush.bf16.msrb.mxu1 %v3661_v49  ;;  %v3103_v49 = vld [vmem:[%s4882_s4 + $0x98] sm:$0xf0] }
 0x3d0   :  { %v2867_v62 = vor.u32 %v3103_v49, %v2866_v34 }
 0x3d2   :  { %1436 = vmatpush.bf16.msrb.mxu2 %v2867_v62 }
 0x3d3   :  { %1195 = vmatpush.bf16.msrb.mxu1 %v3691_v63 }
 0x3d6   :  { %1437 = vmatpush.bf16.msrb.mxu2 %v2855_v8  ;;  %v2950_v8 = vld [vmem:[%s4884_s5 + $0x78] sm:$0xf] }
 0x3d7   :  { %v4165_v53 = vor.u32 %v3124_v24, %v2950_v8  ;;  %v3109_v8 = vld [vmem:[%s4884_s5 + $0x8] sm:$0xf0] }
 0x3da   :  { %1438 = vmatpush.bf16.msrb.mxu2 %v2843_v6  ;;  %v2938_v6 = vld [vmem:[%s4884_s5 + $0x60] sm:$0xf] }
 0x3de   :  { %1439 = vmatpush.bf16.msrb.mxu2 %v2831_v56  ;;  %v2880_v56 = vld [vmem:[%s4882_s4 + $0xb4] sm:$0xf0] }
 0x3e2   :  { %1440 = vmatpush.bf16.msrb.mxu2 %v2819_v21 }
 0x3e6   :  { %1441 = vmatpush.bf16.msrb.mxu2 %v2807_v26  ;;  %v2868_v26 = vld [vmem:[%s4882_s4 + $0x9c] sm:$0xf0] }
 0x3ea   :  { %1442 = vmatpush.bf16.msrb.mxu2 %v2795_v19  ;;  %v3115_v19 = vld [vmem:[%s4884_s5 + $0x38] sm:$0xf0] }
 0x433   :  { %v985_v40 = vpop.f32.mrf.mxu1 }
 0x434   :  { %v1019_v7 = vadd.f32 %v985_v40, %v260_v5  ;;  %v318_v40 = vadd.f32 %v3911_v2, %v3880_v3 }
 0x436   :  { %v2786_v60 = vmul.f32 -1.442695, %v1019_v7 }
 0x438   :  { %3225 = vpow2.f32 %v2786_v60 }
 0x439   :  { %v998_v63 = vpop.f32.mrf.mxu2 }
 0x43a   :  { %v1039_v11 = vadd.f32 %v998_v63, %v289_v18  ;;  %v1011_v17 = vpop.f32.mrf.mxu3 }
 0x43b   :  { %v987_v23 = vpop.f32.mrf.mxu1  ;;  %v1059_v4 = vadd.f32 %v3878_v45, %v1011_v17 }
 0x43c   :  { %v2787_v32 = vmul.f32 -1.442695, %v1039_v11  ;;  %v4128_v23 = vpack.c.bf16 %v3952_v61, %v3899_v0  ;;  %v3130_v0 = vld [vmem:[%s4884_s5 + $0xb0] sm:$0xf0] }
 0x43d   :  { %v4147_v61 = vor.u32 %v3130_v0, %v2974_v43  ;;  %v3098_v43 = vld [vmem:[%s4882_s4 + $0x70] sm:$0xf0] }
 0x43e   :  { %v3226_v38 = vpop.eup %3225  ;;  %3227 = vpow2.f32 %v2787_v32  ;;  %v4133_v32 = vpack.c.bf16 %v4021_v41, %v3985_v16  ;;  %v2962_v16 = vld [vmem:[%s4884_s5 + $0x90] sm:$0xf]  ;;  %v3127_v41 = vld [vmem:[%s4884_s5 + $0x98] sm:$0xf0] }
 0x43f   :  { %v1023_v54 = vadd.f32 1.0, %v3226_v38 }
 0x441   :  { %3229 = vrcp.f32 %v1023_v54  ;;  %v1000_v20 = vpop.f32.mrf.mxu2  ;;  %v1035_v58 = vand.u32 2147483648, %v1023_v54  ;;  %v1033_v29 = vand.u32 2147483647, %v1023_v54  ;;  %vm1029_vm9 = vweird.f32 %v1023_v54 }
 0x442   :  { %v1013_v1 = vpop.f32.mrf.mxu3  ;;  %v3121_v20 = vld [vmem:[%s4884_s5 + $0x68] sm:$0xf0] }
 0x443   :  { %v1036_v30 = vor.u32 1.1754944e-38, %v1035_v58  ;;  %vm1034_vm11 = vcmp.eq.f32.partialorder %v1033_v29, 8.507059e+37  ;;  %v4176_v27 = vor.u32 %v3121_v20, %v2938_v6  ;;  %v3102_v58 = vld [vmem:[%s4882_s4 + $0x94] sm:$0xf]  ;;  %v2838_v20 = vld [vmem:[%s4882_s4 + $0x50] sm:$0xf] }
 0x444   :  { %v3228_v35 = vpop.eup %3227  ;;  %v2871_v29 = vor.u32 %v3102_v58, %v2868_v26 }
 0x445   :  { %v1043_v36 = vadd.f32 1.0, %v3228_v35  ;;  %v4895_v35 = vld [vmem:[#allocation6_spill] sm:$0xff] }
 0x447   :  { %v3230_v44 = vpop.eup %3229  ;;  %3231 = vrcp.f32 %v1043_v36  ;;  %v1055_v60 = vand.u32 2147483648, %v1043_v36  ;;  %vm1049_vm13 = vweird.f32 %v1043_v36  ;;  %v1053_v18 = vand.u32 2147483647, %v1043_v36 }
 0x448   :  { %v1025_v10 = vmul.f32 %v3230_v44, %v1023_v54  ;;  %vm1030_vm8 = vweird.f32 %v3230_v44 }
 0x449   :  { %vm1031_vm10 = vmor %vm1029_vm9, %vm1030_vm8  ;;  %v1056_v63 = vor.u32 1.1754944e-38, %v1055_v60  ;;  %vm1054_vm15 = vcmp.eq.f32.partialorder %v1053_v18, 8.507059e+37  ;;  %v2902_v18 = vld [vmem:[%s4884_s5 + $0x18] sm:$0xf] }
 0x44a   :  { %v1026_v57 = vsub.f32 1.0, %v1025_v10 }
 0x44c   :  { %v1027_v28 = vmul.f32 %v3230_v44, %v1026_v57  ;;  %v4197_v57 = vor.u32 %v3118_v42, %v2926_v37 }
 0x44d   :  { %v3232_v52 = vpop.eup %3231 }
 0x44e   :  { %v1045_v13 = vmul.f32 %v3232_v52, %v1043_v36  ;;  %v1028_v33 = vadd.f32 %v3230_v44, %v1027_v28  ;;  %vm1050_vm12 = vweird.f32 %v3232_v52  ;;  %v3105_v36 = vld [vmem:[%s4882_s4 + $0xac] sm:$0xf]  ;;  %v2874_v28 = vld [vmem:[%s4882_s4 + $0x98] sm:$0xf] }
 0x44f   :  { %vm1051_vm14 = vmor %vm1049_vm13, %vm1050_vm12  ;;  %v2883_v55 = vor.u32 %v3105_v36, %v2880_v56 }
 0x450   :  { %v1046_v25 = vsub.f32 1.0, %v1045_v13  ;;  %v1032_v50 = vsel %vm1031_vm10, %v3230_v44, %v1028_v33 }
 0x451   :  { %v1037_v5 = vsel %vm1034_vm11, %v1036_v30, %v1032_v50  ;;  %1464 = vmatpush.bf16.msrb.mxu3 %v2883_v55  ;;  %v2914_v30 = vld [vmem:[%s4884_s5 + $0x30] sm:$0xf]  ;;  %v3099_v50 = vld [vmem:[%s4882_s4 + $0x7c] sm:$0xf]  ;;  %v2820_v55 = vld [vmem:[%s4882_s4 + $0x3c] sm:$0xf0] }
 0x452   :  { %v1060_v7 = vmul.f32 %v1059_v4, %v1037_v5  ;;  %v1047_v31 = vmul.f32 %v3232_v52, %v1046_v25  ;;  %v4220_v25 = vor.u32 %v3115_v19, %v2914_v30  ;;  %v2856_v4 = vld [vmem:[%s4882_s4 + $0x84] sm:$0xf0]  ;;  %v2862_v5 = vld [vmem:[%s4882_s4 + $0x80] sm:$0xf] }
 0x454   :  { %v1061_v39 = vadd.f32 %v1060_v7, %v318_v40  ;;  %v1048_v48 = vadd.f32 %v3232_v52, %v1047_v31  ;;  %v2859_v40 = vor.u32 %v3099_v50, %v2856_v4  ;;  %v3101_v7 = vld [vmem:[%s4882_s4 + $0x88] sm:$0xf0] }
 0x455   :  { %1465 = vmatpush.bf16.msrb.mxu3 %v2871_v29  ;;  %v2808_v29 = vld [vmem:[%s4882_s4 + $0x24] sm:$0xf0] }
 0x456   :  { %3233 = vtanh.f32 %v1061_v39  ;;  %v1052_v34 = vsel %vm1051_vm14, %v3232_v52, %v1048_v48  ;;  %v2875_v52 = vor.u32 %v3104_v59, %v2874_v28  ;;  %v2863_v39 = vor.u32 %v3101_v7, %v2862_v5  ;;  %v3087_v28 = vld [vmem:[%s4882_s4 + $0x1c] sm:$0xf] }
 0x457   :  { %v1057_v62 = vsel %vm1054_vm15, %v1056_v63, %v1052_v34  ;;  %v3112_v34 = vld [vmem:[%s4884_s5 + $0x20] sm:$0xf0] }
 0x458   :  { %v4243_v63 = vor.u32 %v3112_v34, %v2902_v18 }
 0x459   :  { %1466 = vmatpush.bf16.msrb.mxu3 %v2859_v40  ;;  %v4308_v40 = vld [vmem:[%s4881_s3 + $0x5] ss:$0 sm:$0xff] }
 0x45c   :  { %v3234_v49 = vpop.eup %3233 }
 0x45d   :  { %v1063_v45 = vsub.f32 %v4054_v9, %v3234_v49 }
 0x45f   :  { %v1064_v11 = vmul.f32 %v1063_v45, %v1057_v62  ;;  %v3096_v45 = vld [vmem:[%s4882_s4 + $0x64] sm:$0xf]  ;;  %v2844_v62 = vld [vmem:[%s4882_s4 + $0x6c] sm:$0xf0] }
 0x460   :  { %v2847_v0 = vor.u32 %v3096_v45, %v2844_v62 }
 0x461   :  { %v4122_v2 = vadd.f32 %v3234_v49, %v1064_v11  ;;  %v2850_v11 = vld [vmem:[%s4882_s4 + $0x68] sm:$0xf] }
 0x462   :  { %1467 = vmatpush.bf16.msrb.mxu3 %v2847_v0 }
 0x463   :  { %v1068_v17 = vpack.c.bf16 %v4122_v2, %v4122_v2  ;;  %v4138_v12 = vpack.c.bf16 %v4122_v2, %v4054_v9  ;;  %v4156_v9 = vor.u32 %v3127_v41, %v2962_v16  ;;  %v2851_v16 = vor.u32 %v3098_v43, %v2850_v11  ;;  %v2890_v41 = vld [vmem:[%s4884_s5] sm:$0xf]  ;;  %v4896_v11 = vld [vmem:[#allocation7_spill] sm:$0xff] }
 0x464   :  { %v4265_v24 = vor.u32 %v3109_v8, %v2890_v41 }
 0x465   :  { %1077 = vmatmul.bf16.vlgmr.msra.gmra.mxu0 %v1068_v17  ;;  %1090 = vmatmul.bf16.vlgmr.msra.gmra.mxu1 %v1068_v17 }
 0x466   :  { %1103 = vmatmul.bf16.vlgmr.msra.gmra.mxu2 %v1068_v17  ;;  %1711 = vmatpush.bf16.msra.mxu1 %v4147_v61 }
 0x46a   :  { %1712 = vmatpush.bf16.msra.mxu1 %v4156_v9 }
 0x46e   :  { %1713 = vmatpush.bf16.msra.mxu1 %v4165_v53 }
 0x472   :  { %1714 = vmatpush.bf16.msra.mxu1 %v4176_v27 }
 0x476   :  { %1443 = vmatmul.bf16.vlgmr.msrb.gmra.mxu2 %v4128_v23  ;;  %1715 = vmatpush.bf16.msra.mxu1 %v4197_v57 }
 0x47a   :  { %1716 = vmatpush.bf16.msra.mxu1 %v4220_v25 }
 0x47e   :  { %1717 = vmatpush.bf16.msra.mxu1 %v4243_v63 }
 0x482   :  { %1718 = vmatpush.bf16.msra.mxu1 %v4265_v24 }
 0x486   :  { %1448 = vmatmul.bf16.gmra.mxu2 %v4133_v32 }
 0x496   :  { %1453 = vmatmul.bf16.gmra.mxu2 %v4138_v12 }
 0x4e2   :  { %v1078_v38 = vpop.f32.mrf.mxu0  ;;  %v1091_v54 = vpop.f32.mrf.mxu1 }
 0x4e3   :  { %v1112_v1 = vadd.f32 %v1078_v38, %v3864_v14  ;;  %v1132_v47 = vadd.f32 %v1091_v54, %v4895_v35  ;;  %v3107_v14 = vld [vmem:[%s4882_s4 + $0xb8] sm:$0xf0]  ;;  %v3093_v38 = vld [vmem:[%s4882_s4 + $0x4c] sm:$0xf]  ;;  %v2832_v54 = vld [vmem:[%s4882_s4 + $0x54] sm:$0xf0] }
 0x4e4   :  { %v2887_v21 = vor.u32 %v3107_v14, %v2886_v15  ;;  %v2835_v6 = vor.u32 %v3093_v38, %v2832_v54  ;;  %v3090_v15 = vld [vmem:[%s4882_s4 + $0x34] sm:$0xf]  ;;  %v2826_v14 = vld [vmem:[%s4882_s4 + $0x38] sm:$0xf] }
 0x4e5   :  { %v2788_v44 = vmul.f32 -1.442695, %v1112_v1  ;;  %v2789_v10 = vmul.f32 -1.442695, %v1132_v47  ;;  %v3095_v1 = vld [vmem:[%s4882_s4 + $0x58] sm:$0xf0] }
 0x4e6   :  { %1493 = vmatpush.bf16.msra.mxu0 %v2887_v21  ;;  %v2839_v35 = vor.u32 %v3095_v1, %v2838_v20  ;;  %1468 = vmatpush.bf16.msrb.mxu3 %v2835_v6  ;;  %v3129_v1 = vld [vmem:[%s4884_s5 + $0xac] sm:$0xf] }
 0x4e7   :  { %3235 = vpow2.f32 %v2788_v44  ;;  %v2823_v44 = vor.u32 %v3090_v15, %v2820_v55  ;;  %v3123_v55 = vld [vmem:[%s4884_s5 + $0x7c] sm:$0xf] }
 0x4e8   :  { %3237 = vpow2.f32 %v2789_v10  ;;  %v3092_v10 = vld [vmem:[%s4882_s4 + $0x40] sm:$0xf0] }
 0x4e9   :  { %v4211_v46 = vpop.f32.mrf.mxu2  ;;  %v2827_v42 = vor.u32 %v3092_v10, %v2826_v14  ;;  %v2952_v14 = vld [vmem:[%s4884_s5 + $0x84] sm:$0xf0]  ;;  %v3120_v10 = vld [vmem:[%s4884_s5 + $0x64] sm:$0xf] }
 0x4ea   :  { %v1080_v13 = vpop.f32.mrf.mxu0  ;;  %v1093_v33 = vpop.f32.mrf.mxu1  ;;  %1494 = vmatpush.bf16.msra.mxu0 %v2875_v52  ;;  %v2814_v52 = vld [vmem:[%s4882_s4 + $0x20] sm:$0xf]  ;;  %1469 = vmatpush.bf16.msrb.mxu3 %v2823_v44  ;;  %v1152_v7 = vadd.f32 %v4308_v40, %v4211_v46  ;;  %v3086_v46 = vld [vmem:[%s4882_s4 + $0x10] sm:$0xf0]  ;;  %v4360_v44 = vor.u32 %v3123_v55, %v2952_v14  ;;  %v3119_v55 = vld [vmem:[%s4884_s5 + $0x58] sm:$0xf0] }
 0x4eb   :  { %v3089_v13 = vld [vmem:[%s4882_s4 + $0x28] sm:$0xf0]  ;;  %v2811_v33 = vor.u32 %v3087_v28, %v2808_v29  ;;  %v3114_v28 = vld [vmem:[%s4884_s5 + $0x34] sm:$0xf]  ;;  %v2916_v29 = vld [vmem:[%s4884_s5 + $0x3c] sm:$0xf0] }
 0x4ec   :  { %v2815_v30 = vor.u32 %v3089_v13, %v2814_v52  ;;  %v4396_v52 = vor.u32 %v3114_v28, %v2916_v29  ;;  %v3111_v13 = vld [vmem:[%s4884_s5 + $0x1c] sm:$0xf]  ;;  %v2922_v28 = vld [vmem:[%s4884_s5 + $0x38] sm:$0xf]  ;;  %v3116_v29 = vld [vmem:[%s4884_s5 + $0x40] sm:$0xf0] }
 0x4ed   :  { %v3236_v31 = vpop.eup %3235 }
 0x4ee   :  { %v3238_v48 = vpop.eup %3237  ;;  %v1116_v60 = vadd.f32 1.0, %v3236_v31  ;;  %1495 = vmatpush.bf16.msra.mxu0 %v2863_v39  ;;  %v3084_v31 = vld [vmem:[%s4882_s4 + $0x4] sm:$0xf]  ;;  %v2796_v39 = vld [vmem:[%s4882_s4 + $0xc] sm:$0xf0]  ;;  %1470 = vmatpush.bf16.msrb.mxu3 %v2811_v33 }
 0x4ef   :  { %v4241_v49 = vadd.f32 1.0, %v3238_v48  ;;  %v2802_v48 = vld [vmem:[%s4882_s4 + $0x8] sm:$0xf]  ;;  %v2799_v18 = vor.u32 %v3084_v31, %v2796_v39  ;;  %v2982_v39 = vld [vmem:[%s4884_s5 + $0xb0] sm:$0xf] }
 0x4f0   :  { %3239 = vrcp.f32 %v1116_v60  ;;  %v1126_v37 = vand.u32 2147483647, %v1116_v60  ;;  %v1128_v26 = vand.u32 2147483648, %v1116_v60  ;;  %vm1122_vm1 = vweird.f32 %v1116_v60  ;;  %v2904_v33 = vld [vmem:[%s4884_s5 + $0x24] sm:$0xf0] }
 0x4f1   :  { %3241 = vrcp.f32 %v4241_v49  ;;  %v1106_v17 = vpop.f32.mrf.mxu2  ;;  %v2803_v45 = vor.u32 %v3086_v46, %v2802_v48  ;;  %v1148_v0 = vand.u32 2147483648, %v4241_v49  ;;  %vm1142_vm5 = vweird.f32 %v4241_v49  ;;  %v2970_v48 = vld [vmem:[%s4884_s5 + $0x98] sm:$0xf] }
 0x4f2   :  { %1496 = vmatpush.bf16.msra.mxu0 %v2851_v16  ;;  %vm1127_vm3 = vcmp.eq.f32.partialorder %v1126_v37, 8.507059e+37  ;;  %v1129_v4 = vor.u32 1.1754944e-38, %v1128_v26  ;;  %1471 = vmatpush.bf16.msrb.mxu3 %v2799_v18  ;;  %v1146_v16 = vand.u32 2147483647, %v4241_v49 }
 0x4f3   :  { %v1149_v38 = vor.u32 1.1754944e-38, %v1148_v0 }
 0x4f4   :  { %vm1147_vm7 = vcmp.eq.f32.partialorder %v1146_v16, 8.507059e+37 }
 0x4f6   :  { %v3240_v47 = vpop.eup %3239  ;;  %1497 = vmatpush.bf16.msra.mxu0 %v2839_v35  ;;  %v2976_v35 = vld [vmem:[%s4884_s5 + $0xb4] sm:$0xf0] }
 0x4f7   :  { %v3242_v36 = vpop.eup %3241  ;;  %v1118_v56 = vmul.f32 %v3240_v47, %v1116_v60  ;;  %vm1123_vm0 = vweird.f32 %v3240_v47 }
 0x4f8   :  { %v1138_v58 = vmul.f32 %v3242_v36, %v4241_v49  ;;  %vm1124_vm2 = vmor %vm1122_vm1, %vm1123_vm0  ;;  %vm1143_vm4 = vweird.f32 %v3242_v36 }
 0x4f9   :  { %v1119_v21 = vsub.f32 1.0, %v1118_v56  ;;  %vm1144_vm6 = vmor %vm1142_vm5, %vm1143_vm4  ;;  %v2964_v56 = vld [vmem:[%s4884_s5 + $0x9c] sm:$0xf0] }
 0x4fa   :  { %1498 = vmatpush.bf16.msra.mxu0 %v2827_v42  ;;  %v1139_v50 = vsub.f32 1.0, %v1138_v58  ;;  %v3117_v42 = vld [vmem:[%s4884_s5 + $0x4c] sm:$0xf]  ;;  %v2928_v58 = vld [vmem:[%s4884_s5 + $0x54] sm:$0xf0] }
 0x4fb   :  { %v1120_v59 = vmul.f32 %v3240_v47, %v1119_v21  ;;  %v2940_v21 = vld [vmem:[%s4884_s5 + $0x6c] sm:$0xf0]  ;;  %v4382_v26 = vor.u32 %v3117_v42, %v2928_v58 }
 0x4fc   :  { %v1140_v62 = vmul.f32 %v3242_v36, %v1139_v50  ;;  %v4371_v37 = vor.u32 %v3120_v10, %v2940_v21 }
 0x4fd   :  { %v1121_v19 = vadd.f32 %v3240_v47, %v1120_v59  ;;  %v4897_v59 = vmov 0.0|0.0  }
 0x4fe   :  { %1499 = vmatpush.bf16.msra.mxu0 %v2815_v30  ;;  %v1141_v43 = vadd.f32 %v3242_v36, %v1140_v62  ;;  %v3108_v30 = vld [vmem:[%s4884_s5 + $0x4] sm:$0xf]  ;;  %v2958_v62 = vld [vmem:[%s4884_s5 + $0x80] sm:$0xf] }
 0x4ff   :  { %v1125_v5 = vsel %vm1124_vm2, %v3240_v47, %v1121_v19  ;;  %v2892_v19 = vld [vmem:[%s4884_s5 + $0xc] sm:$0xf0] }
 0x500   :  { %v1130_v60 = vsel %vm1127_vm3, %v1129_v4, %v1125_v5  ;;  %v1145_v41 = vsel %vm1144_vm6, %v3242_v36, %v1141_v43  ;;  %v4339_v36 = vor.u32 %v3129_v1, %v2976_v35  ;;  %v4418_v50 = vor.u32 %v3108_v30, %v2892_v19  ;;  %v2946_v35 = vld [vmem:[%s4884_s5 + $0x68] sm:$0xf]  ;;  %v2910_v30 = vld [vmem:[%s4884_s5 + $0x20] sm:$0xf]  ;;  %v3113_v19 = vld [vmem:[%s4884_s5 + $0x28] sm:$0xf0] }
 0x501   :  { %v1153_v34 = vmul.f32 %v1152_v7, %v1130_v60  ;;  %v1150_v6 = vsel %vm1147_vm7, %v1149_v38, %v1145_v41 }
 0x502   :  { %1500 = vmatpush.bf16.msra.mxu0 %v2803_v45 }
 0x503   :  { %v1154_v17 = vadd.f32 %v1153_v34, %v4896_v11  ;;  %v4899_v34 = vld [vmem:[#allocation5_spill] sm:$0xff]  ;;  %v3125_v11 = vld [vmem:[%s4884_s5 + $0x88] sm:$0xf0] }
 0x504   :  { %v265_v45 = vadd.f32 %v4899_v34, %v3850_v51  ;;  %v4469_v16 = vor.u32 %v3125_v11, %v2958_v62 }
 0x505   :  { %3243 = vtanh.f32 %v1154_v17 }
 0x50b   :  { %v3244_v8 = vpop.eup %3243 }
 0x50c   :  { %v1156_v54 = vsub.f32 %v4122_v2, %v3244_v8  ;;  %v3126_v2 = vld [vmem:[%s4884_s5 + $0x94] sm:$0xf] }
 0x50d   :  { %v4349_v15 = vor.u32 %v3126_v2, %v2964_v56  ;;  %v2934_v56 = vld [vmem:[%s4884_s5 + $0x50] sm:$0xf] }
 0x50e   :  { %v1157_v20 = vmul.f32 %v1156_v54, %v1150_v6  ;;  %v4497_v10 = vor.u32 %v3119_v55, %v2934_v56 }
 0x510   :  { %v4335_v47 = vadd.f32 %v3244_v8, %v1157_v20 }
 0x512   :  { %v1161_v49 = vpack.c.bf16 %v4335_v47, %v4335_v47 }
 0x514   :  { %1170 = vmatmul.bf16.vlgmr.msra.gmra.mxu3 %v1161_v49  ;;  %1183 = vmatmul.bf16.vlgmr.msrb.gmra.mxu0 %v1161_v49 }
 0x515   :  { %1196 = vmatmul.bf16.vlgmr.msrb.gmra.mxu1 %v1161_v49  ;;  %1802 = vmatpush.bf16.msra.mxu3 %v4147_v61  ;;  %v3122_v49 = vld [vmem:[%s4884_s5 + $0x70] sm:$0xf0] }
 0x516   :  { %1724 = vmatpush.bf16.msrb.mxu1 %v4339_v36  ;;  %1815 = vmatpush.bf16.msrb.mxu0 %v4339_v36  ;;  %v4487_v2 = vor.u32 %v3122_v49, %v2946_v35 }
 0x519   :  { %1803 = vmatpush.bf16.msra.mxu3 %v4156_v9 }
 0x51a   :  { %1725 = vmatpush.bf16.msrb.mxu1 %v4349_v15  ;;  %1816 = vmatpush.bf16.msrb.mxu0 %v4349_v15 }
 0x51d   :  { %1804 = vmatpush.bf16.msra.mxu3 %v4165_v53 }
 0x51e   :  { %1726 = vmatpush.bf16.msrb.mxu1 %v4360_v44  ;;  %1817 = vmatpush.bf16.msrb.mxu0 %v4360_v44 }
 0x521   :  { %1805 = vmatpush.bf16.msra.mxu3 %v4176_v27 }
 0x522   :  { %1727 = vmatpush.bf16.msrb.mxu1 %v4371_v37  ;;  %1818 = vmatpush.bf16.msrb.mxu0 %v4371_v37 }
 0x524   :  { %1472 = vmatmul.bf16.vlgmr.msrb.gmra.mxu3 %v4128_v23  ;;  %1501 = vmatmul.bf16.vlgmr.msra.gmra.mxu0 %v4128_v23  ;;  %v4407_v23 = vor.u32 %v3111_v13, %v2904_v33  ;;  %v4508_v33 = vor.u32 %v3116_v29, %v2922_v28 }
 0x525   :  { %1719 = vmatmul.bf16.vlgmr.msra.gmra.mxu1 %v4897_v59  ;;  %1806 = vmatpush.bf16.msra.mxu3 %v4197_v57 }
 0x526   :  { %1728 = vmatpush.bf16.msrb.mxu1 %v4382_v26  ;;  %1819 = vmatpush.bf16.msrb.mxu0 %v4382_v26 }
 0x529   :  { %1807 = vmatpush.bf16.msra.mxu3 %v4220_v25 }
 0x52a   :  { %1729 = vmatpush.bf16.msrb.mxu1 %v4396_v52  ;;  %1820 = vmatpush.bf16.msrb.mxu0 %v4396_v52 }
 0x52d   :  { %1808 = vmatpush.bf16.msra.mxu3 %v4243_v63 }
 0x52e   :  { %1730 = vmatpush.bf16.msrb.mxu1 %v4407_v23  ;;  %1821 = vmatpush.bf16.msrb.mxu0 %v4407_v23 }
 0x531   :  { %1809 = vmatpush.bf16.msra.mxu3 %v4265_v24 }
 0x532   :  { %1731 = vmatpush.bf16.msrb.mxu1 %v4418_v50  ;;  %1822 = vmatpush.bf16.msrb.mxu0 %v4418_v50 }
 0x534   :  { %1477 = vmatmul.bf16.gmra.mxu3 %v4133_v32  ;;  %1506 = vmatmul.bf16.gmra.mxu0 %v4133_v32  ;;  %v4898_v32 = vld [vmem:[#allocation8_spill] sm:$0xff] }
 0x535   :  { %1906 = vmatpush.bf16.msrb.mxu3 %v4339_v36  ;;  %1732 = vmatmul.bf16.vlgmr.msrb.gmra.mxu1 %v4897_v59  ;;  %v294_v4 = vadd.f32 %v4898_v32, %v3868_v22  ;;  %v3128_v22 = vld [vmem:[%s4884_s5 + $0xa0] sm:$0xf0] }
 0x536   :  { %v4456_v46 = vor.u32 %v3128_v22, %v2970_v48  ;;  %v2898_v22 = vld [vmem:[%s4884_s5 + $0x8] sm:$0xf] }
 0x539   :  { %1907 = vmatpush.bf16.msrb.mxu3 %v4349_v15 }
 0x53d   :  { %1908 = vmatpush.bf16.msrb.mxu3 %v4360_v44 }
 0x541   :  { %1909 = vmatpush.bf16.msrb.mxu3 %v4371_v37 }
 0x544   :  { %1482 = vmatmul.bf16.gmra.mxu3 %v4138_v12  ;;  %1511 = vmatmul.bf16.gmra.mxu0 %v4138_v12  ;;  %v3131_v12 = vld [vmem:[%s4884_s5 + $0xb8] sm:$0xf0] }
 0x545   :  { %1910 = vmatpush.bf16.msrb.mxu3 %v4382_v26  ;;  %v4450_v60 = vor.u32 %v3131_v12, %v2982_v39  ;;  %v4519_v39 = vor.u32 %v3113_v19, %v2910_v30 }
 0x547   :  { %1737 = vmatpush.bf16.msra.mxu2 %v4450_v60  ;;  %1828 = vmatpush.bf16.msra.mxu1 %v4450_v60 }
 0x548   :  { %1919 = vmatpush.bf16.msra.mxu0 %v4450_v60 }
 0x549   :  { %1911 = vmatpush.bf16.msrb.mxu3 %v4396_v52 }
 0x54b   :  { %1738 = vmatpush.bf16.msra.mxu2 %v4456_v46  ;;  %1829 = vmatpush.bf16.msra.mxu1 %v4456_v46 }
 0x54c   :  { %1920 = vmatpush.bf16.msra.mxu0 %v4456_v46 }
 0x54d   :  { %1912 = vmatpush.bf16.msrb.mxu3 %v4407_v23 }
 0x54f   :  { %1739 = vmatpush.bf16.msra.mxu2 %v4469_v16  ;;  %1830 = vmatpush.bf16.msra.mxu1 %v4469_v16 }
 0x550   :  { %1921 = vmatpush.bf16.msra.mxu0 %v4469_v16 }
 0x551   :  { %1913 = vmatpush.bf16.msrb.mxu3 %v4418_v50 }
 0x553   :  { %1740 = vmatpush.bf16.msra.mxu2 %v4487_v2  ;;  %1831 = vmatpush.bf16.msra.mxu1 %v4487_v2 }
 0x554   :  { %1922 = vmatpush.bf16.msra.mxu0 %v4487_v2 }
 0x557   :  { %1741 = vmatpush.bf16.msra.mxu2 %v4497_v10  ;;  %1832 = vmatpush.bf16.msra.mxu1 %v4497_v10 }
 0x558   :  { %1923 = vmatpush.bf16.msra.mxu0 %v4497_v10 }
 0x55b   :  { %1742 = vmatpush.bf16.msra.mxu2 %v4508_v33  ;;  %1833 = vmatpush.bf16.msra.mxu1 %v4508_v33 }
 0x55c   :  { %1924 = vmatpush.bf16.msra.mxu0 %v4508_v33 }
 0x55f   :  { %1743 = vmatpush.bf16.msra.mxu2 %v4519_v39  ;;  %1834 = vmatpush.bf16.msra.mxu1 %v4519_v39 }
 0x560   :  { %1925 = vmatpush.bf16.msra.mxu0 %v4519_v39 }
 0x591   :  { %v1184_v5 = vpop.f32.mrf.mxu0 }
 0x592   :  { %v1225_v7 = vadd.f32 %v1184_v5, %v294_v4  ;;  %v4439_v31 = vpop.f32.mrf.mxu1 }
 0x593   :  { %v1245_v62 = vadd.f32 %v4308_v40, %v4439_v31 }
 0x594   :  { %v2791_v18 = vmul.f32 -1.442695, %v1225_v7 }
 0x596   :  { %3245 = vpow2.f32 %v2791_v18  ;;  %v3110_v18 = vld [vmem:[%s4884_s5 + $0x10] sm:$0xf0] }
 0x597   :  { %v1171_v17 = vpop.f32.mrf.mxu3 }
 0x598   :  { %v1205_v43 = vadd.f32 %v1171_v17, %v265_v45 }
 0x599   :  { %v1186_v0 = vpop.f32.mrf.mxu0 }
 0x59a   :  { %v2790_v51 = vmul.f32 -1.442695, %v1205_v43  ;;  %v1199_v41 = vpop.f32.mrf.mxu1  ;;  %v4534_v43 = vor.u32 %v3110_v18, %v2898_v22  ;;  %v4900_v0 = vld [vmem:[#allocation9_spill] sm:$0xff] }
 0x59c   :  { %3247 = vpow2.f32 %v2790_v51  ;;  %v3246_v8 = vpop.eup %3245  ;;  %v323_v51 = vadd.f32 %v4900_v0, %v3880_v3  ;;  %1744 = vmatpush.bf16.msra.mxu2 %v4534_v43  ;;  %1835 = vmatpush.bf16.msra.mxu1 %v4534_v43 }
 0x59d   :  { %v4476_v6 = vadd.f32 1.0, %v3246_v8  ;;  %1926 = vmatpush.bf16.msra.mxu0 %v4534_v43 }
 0x59f   :  { %v1173_v38 = vpop.f32.mrf.mxu3  ;;  %v1241_v3 = vand.u32 2147483648, %v4476_v6  ;;  %vm1235_vm13 = vweird.f32 %v4476_v6 }
 0x5a0   :  { %1893 = vmatpush.bf16.msrb.mxu2 %v4147_v61  ;;  %1984 = vmatpush.bf16.msrb.mxu1 %v4147_v61 }
 0x5a1   :  { %v1242_v49 = vor.u32 1.1754944e-38, %v1241_v3  ;;  %v4601_v3 = vld [vmem:[%s4883_s6 + $0x5] ss:$0 sm:$0xff] }
 0x5a2   :  { %v3248_v54 = vpop.eup %3247  ;;  %v4478_v20 = vpop.f32.mrf.mxu1 }
 0x5a3   :  { %v1209_v1 = vadd.f32 1.0, %v3248_v54  ;;  %v1239_v54 = vand.u32 2147483647, %v4476_v6 }
 0x5a4   :  { %1894 = vmatpush.bf16.msrb.mxu2 %v4156_v9  ;;  %1985 = vmatpush.bf16.msrb.mxu1 %v4156_v9 }
 0x5a5   :  { %3249 = vrcp.f32 %v1209_v1  ;;  %v1221_v4 = vand.u32 2147483648, %v1209_v1  ;;  %v1219_v7 = vand.u32 2147483647, %v1209_v1  ;;  %vm1215_vm9 = vweird.f32 %v1209_v1 }
 0x5a6   :  { %3251 = vrcp.f32 %v4476_v6  ;;  %vm1240_vm15 = vcmp.eq.f32.partialorder %v1239_v54, 8.507059e+37 }
 0x5a7   :  { %v1222_v45 = vor.u32 1.1754944e-38, %v1221_v4  ;;  %vm1220_vm11 = vcmp.eq.f32.partialorder %v1219_v7, 8.507059e+37  ;;  %v1473_v4 = vpop.f32.mrf.mxu3 }
 0x5a8   :  { %1895 = vmatpush.bf16.msrb.mxu2 %v4165_v53  ;;  %1986 = vmatpush.bf16.msrb.mxu1 %v4165_v53 }
 0x5aa   :  { %v1722_v14 = vpop.f32.mrf.mxu1 }
 0x5ab   :  { %v3250_v21 = vpop.eup %3249 }
 0x5ac   :  { %v3252_v42 = vpop.eup %3251  ;;  %v1211_v58 = vmul.f32 %v3250_v21, %v1209_v1  ;;  %vm1216_vm8 = vweird.f32 %v3250_v21  ;;  %1896 = vmatpush.bf16.msrb.mxu2 %v4176_v27  ;;  %1987 = vmatpush.bf16.msrb.mxu1 %v4176_v27 }
 0x5ad   :  { %v1231_v32 = vmul.f32 %v3252_v42, %v4476_v6  ;;  %vm1217_vm10 = vmor %vm1215_vm9, %vm1216_vm8  ;;  %vm1236_vm12 = vweird.f32 %v3252_v42 }
 0x5ae   :  { %v1212_v13 = vsub.f32 1.0, %v1211_v58  ;;  %vm1237_vm14 = vmor %vm1235_vm13, %vm1236_vm12 }
 0x5af   :  { %v1232_v34 = vsub.f32 1.0, %v1231_v32 }
 0x5b0   :  { %v1213_v5 = vmul.f32 %v3250_v21, %v1212_v13  ;;  %1897 = vmatpush.bf16.msrb.mxu2 %v4197_v57  ;;  %1988 = vmatpush.bf16.msrb.mxu1 %v4197_v57 }
 0x5b1   :  { %v1233_v8 = vmul.f32 %v3252_v42, %v1232_v34 }
 0x5b2   :  { %v1214_v12 = vadd.f32 %v3250_v21, %v1213_v5  ;;  %v4522_v48 = vpop.f32.mrf.mxu1 }
 0x5b3   :  { %v1234_v31 = vadd.f32 %v3252_v42, %v1233_v8 }
 0x5b4   :  { %v1218_v11 = vsel %vm1217_vm10, %v3250_v21, %v1214_v12  ;;  %1898 = vmatpush.bf16.msrb.mxu2 %v4220_v25  ;;  %1989 = vmatpush.bf16.msrb.mxu1 %v4220_v25 }
 0x5b5   :  { %v1223_v17 = vsel %vm1220_vm11, %v1222_v45, %v1218_v11  ;;  %v1238_v1 = vsel %vm1237_vm14, %v3252_v42, %v1234_v31 }
 0x5b6   :  { %v1246_v41 = vmul.f32 %v1245_v62, %v1223_v17  ;;  %v1243_v55 = vsel %vm1240_vm15, %v1242_v49, %v1238_v1  ;;  %v1502_v49 = vpop.f32.mrf.mxu0 }
 0x5b8   :  { %v1247_v38 = vadd.f32 %v1246_v41, %v323_v51  ;;  %1899 = vmatpush.bf16.msrb.mxu2 %v4243_v63  ;;  %1990 = vmatpush.bf16.msrb.mxu1 %v4243_v63 }
 0x5ba   :  { %3253 = vtanh.f32 %v1247_v38  ;;  %v1735_v40 = vpop.f32.mrf.mxu1 }
 0x5bc   :  { %1900 = vmatpush.bf16.msrb.mxu2 %v4265_v24  ;;  %1991 = vmatpush.bf16.msrb.mxu1 %v4265_v24 }
 0x5c0   :  { %v3254_v35 = vpop.eup %3253 }
 0x5c1   :  { %v1249_v56 = vsub.f32 %v4335_v47, %v3254_v35 }
 0x5c3   :  { %v1250_v14 = vmul.f32 %v1249_v56, %v1243_v55 }
 0x5c5   :  { %v1251_v21 = vadd.f32 %v3254_v35, %v1250_v14 }
 0x5c7   :  { %v1266_v6 = vpack.c.bf16 %v1251_v21, %v4335_v47  ;;  %v1444_v47 = vpop.f32.mrf.mxu2 }
 0x5c9   :  { %1458 = vmatmul.bf16.gmra.mxu2 %v1266_v6  ;;  %1487 = vmatmul.bf16.gmra.mxu3 %v1266_v6 }
 0x5ca   :  { %1516 = vmatmul.bf16.gmra.mxu0 %v1266_v6 }
 0x5cf   :  { %v4573_v42 = vpop.f32.mrf.mxu2 }
 0x5d7   :  { %v4580_v28 = vpop.f32.mrf.mxu2 }
 0x5d9   :  { %1745 = vmatmul.bf16.vlgmr.msra.gmra.mxu2 %v4897_v59  ;;  %v1299_v59 = vld [vmem:[%s4883_s6] ss:$2 sm:$0x7] }
 0x5da   :  { %1997 = vmatpush.bf16.msra.mxu2 %v4339_v36  ;;  %v4578_v58 = vperm.slane %v1299_v59, 0  ;;  %v4586_v32 = vperm.slane %v1299_v59, 1  ;;  %v4603_v1 = vperm.slane %v1299_v59, 2 }
 0x5dc   :  { %v1445_v29 = vadd.f32 %v1444_v47, %v4578_v58  ;;  %v1474_v5 = vadd.f32 %v1473_v4, %v4586_v32  ;;  %v1503_v47 = vadd.f32 %v1502_v49, %v4603_v1 }
 0x5de   :  { %1998 = vmatpush.bf16.msra.mxu2 %v4349_v15  ;;  %v1753_v13 = vadd.f32 %v4478_v20, %v1445_v29  ;;  %v1773_v22 = vadd.f32 %v4522_v48, %v1474_v5 }
 0x5df   :  { %v4584_v30 = vpop.f32.mrf.mxu2 }
 0x5e0   :  { %v2984_v19 = vmul.f32 -1.442695, %v1753_v13  ;;  %v2985_v34 = vmul.f32 -1.442695, %v1773_v22 }
 0x5e2   :  { %1999 = vmatpush.bf16.msra.mxu2 %v4360_v44  ;;  %3255 = vpow2.f32 %v2984_v19 }
 0x5e6   :  { %2000 = vmatpush.bf16.msra.mxu2 %v4371_v37 }
 0x5e7   :  { %v4589_v12 = vpop.f32.mrf.mxu2 }
 0x5e8   :  { %v3256_v7 = vpop.eup %3255 }
 0x5e9   :  { %v1757_v18 = vadd.f32 1.0, %v3256_v7 }
 0x5ea   :  { %2001 = vmatpush.bf16.msra.mxu2 %v4382_v26 }
 0x5eb   :  { %3257 = vrcp.f32 %v1757_v18  ;;  %v1769_v31 = vand.u32 2147483648, %v1757_v18  ;;  %vm1763_vm1 = vweird.f32 %v1757_v18  ;;  %v1767_v54 = vand.u32 2147483647, %v1757_v18 }
 0x5ec   :  { %3259 = vpow2.f32 %v2985_v34 }
 0x5ed   :  { %v1770_v14 = vor.u32 1.1754944e-38, %v1769_v31  ;;  %vm1768_vm3 = vcmp.eq.f32.partialorder %v1767_v54, 8.507059e+37 }
 0x5ee   :  { %2002 = vmatpush.bf16.msra.mxu2 %v4396_v52 }
 0x5ef   :  { %v4592_v45 = vpop.f32.mrf.mxu2 }
 0x5f1   :  { %v3258_v20 = vpop.eup %3257 }
 0x5f2   :  { %2003 = vmatpush.bf16.msra.mxu2 %v4407_v23  ;;  %v3260_v62 = vpop.eup %3259  ;;  %v1759_v17 = vmul.f32 %v3258_v20, %v1757_v18  ;;  %vm1764_vm0 = vweird.f32 %v3258_v20 }
 0x5f3   :  { %v1777_v11 = vadd.f32 1.0, %v3260_v62  ;;  %vm1765_vm2 = vmor %vm1763_vm1, %vm1764_vm0 }
 0x5f4   :  { %v1760_v51 = vsub.f32 1.0, %v1759_v17 }
 0x5f5   :  { %3261 = vrcp.f32 %v1777_v11  ;;  %v1789_v59 = vand.u32 2147483648, %v1777_v11  ;;  %vm1783_vm5 = vweird.f32 %v1777_v11  ;;  %v1787_v7 = vand.u32 2147483647, %v1777_v11 }
 0x5f6   :  { %2004 = vmatpush.bf16.msra.mxu2 %v4418_v50  ;;  %v1761_v41 = vmul.f32 %v3258_v20, %v1760_v51 }
 0x5f7   :  { %v1790_v34 = vor.u32 1.1754944e-38, %v1789_v59  ;;  %vm1788_vm7 = vcmp.eq.f32.partialorder %v1787_v7, 8.507059e+37  ;;  %v1447_v59 = vadd.f32 %v4573_v42, %v4578_v58 }
 0x5f8   :  { %v1762_v40 = vadd.f32 %v3258_v20, %v1761_v41 }
 0x5fa   :  { %v1766_v35 = vsel %vm1765_vm2, %v3258_v20, %v1762_v40 }
 0x5fb   :  { %v3262_v38 = vpop.eup %3261  ;;  %v1771_v6 = vsel %vm1768_vm3, %v1770_v14, %v1766_v35 }
 0x5fc   :  { %v1779_v48 = vmul.f32 %v3262_v38, %v1777_v11  ;;  %vm1784_vm4 = vweird.f32 %v3262_v38  ;;  %v1504_v11 = vpop.f32.mrf.mxu0 }
 0x5fd   :  { %vm1785_vm6 = vmor %vm1783_vm5, %vm1784_vm4 }
 0x5fe   :  { %v1780_v56 = vsub.f32 1.0, %v1779_v48 }
 0x600   :  { %v1781_v13 = vmul.f32 %v3262_v38, %v1780_v56 }
 0x602   :  { %v1782_v4 = vadd.f32 %v3262_v38, %v1781_v13 }
 0x604   :  { %v1786_v22 = vsel %vm1785_vm6, %v3262_v38, %v1782_v4  ;;  %v1475_v38 = vpop.f32.mrf.mxu3  ;;  %v4635_v40 = vpop.f32.mrf.mxu0 }
 0x605   :  { %v1791_v62 = vsel %vm1788_vm7, %v1790_v34, %v1786_v22 }
 0x60c   :  { %v4637_v48 = vpop.f32.mrf.mxu3  ;;  %v4639_v31 = vpop.f32.mrf.mxu0 }
 0x614   :  { %v4641_v54 = vpop.f32.mrf.mxu3  ;;  %v4643_v35 = vpop.f32.mrf.mxu0 }
 0x61c   :  { %v4645_v49 = vpop.f32.mrf.mxu3  ;;  %v4647_v56 = vpop.f32.mrf.mxu0 }
 0x647   :  { %v4651_v14 = vpop.f32.mrf.mxu0 }
 0x648   :  { %4902 = vst [vmem:[#allocation7_spill] sm:$0xff] %v4651_v14 }
 0x64c   :  { %v4594_v0 = vpop.f32.mrf.mxu2 }
 0x654   :  { %v4596_v8 = vpop.f32.mrf.mxu2 }
 0x655   :  { %4901 = vst [vmem:[#allocation6_spill] sm:$0xff] %v4596_v8 }
 0x65c   :  { %v1746_v55 = vpop.f32.mrf.mxu2 }
 0x65d   :  { %v1793_v21 = vadd.f32 %v4601_v3, %v1746_v55  ;;  %v4649_v55 = vpop.f32.mrf.mxu3 }
 0x65f   :  { %v1794_v29 = vmul.f32 %v1793_v21, %v1771_v6  ;;  %v4655_v6 = vpop.f32.mrf.mxu0 }
 0x660   :  { %4904 = vst [vmem:[#allocation5_spill] sm:$0xff] %v4655_v6 }
 0x661   :  { %v1795_v19 = vadd.f32 %v1794_v29, %v1503_v47  ;;  %v1476_v29 = vadd.f32 %v1475_v38, %v4586_v32 }
 0x663   :  { %3263 = vtanh.f32 %v1795_v19 }
 0x664   :  { %v1748_v5 = vpop.f32.mrf.mxu2 }
 0x665   :  { %v4653_v21 = vpop.f32.mrf.mxu3 }
 0x666   :  { %4903 = vst [vmem:[#allocation8_spill] sm:$0xff] %v4653_v21 }
 0x669   :  { %v3264_v18 = vpop.eup %3263 }
 0x66a   :  { %v1797_v20 = vsub.f32 0.0, %v3264_v18 }
 0x66c   :  { %v1798_v17 = vmul.f32 %v1797_v20, %v1791_v62 }
 0x66d   :  { %v4657_v47 = vpop.f32.mrf.mxu3 }
 0x66e   :  { %v4607_v51 = vadd.f32 %v3264_v18, %v1798_v17  ;;  %4905 = vst [vmem:[#allocation9_spill] sm:$0xff] %v4657_v47 }
 0x670   :  { %v1801_v41 = vpack.c.bf16 %v4607_v51, %v4607_v51 }
 0x672   :  { %1810 = vmatmul.bf16.vlgmr.msra.gmra.mxu3 %v1801_v41  ;;  %1823 = vmatmul.bf16.vlgmr.msrb.gmra.mxu0 %v1801_v41 }
 0x673   :  { %1836 = vmatmul.bf16.vlgmr.msra.gmra.mxu1 %v1801_v41  ;;  %2010 = vmatpush.bf16.msra.mxu3 %v4450_v60 }
 0x674   :  { %2075 = vmatpush.bf16.msrb.mxu0 %v4147_v61  ;;  %2088 = vmatpush.bf16.msra.mxu1 %v4339_v36 }
 0x677   :  { %2011 = vmatpush.bf16.msra.mxu3 %v4456_v46 }
 0x678   :  { %2076 = vmatpush.bf16.msrb.mxu0 %v4156_v9  ;;  %2089 = vmatpush.bf16.msra.mxu1 %v4349_v15 }
 0x67b   :  { %2012 = vmatpush.bf16.msra.mxu3 %v4469_v16 }
 0x67c   :  { %2077 = vmatpush.bf16.msrb.mxu0 %v4165_v53  ;;  %2090 = vmatpush.bf16.msra.mxu1 %v4360_v44 }
 0x67f   :  { %2013 = vmatpush.bf16.msra.mxu3 %v4487_v2 }
 0x680   :  { %2078 = vmatpush.bf16.msrb.mxu0 %v4176_v27  ;;  %2091 = vmatpush.bf16.msra.mxu1 %v4371_v37 }
 0x683   :  { %2014 = vmatpush.bf16.msra.mxu3 %v4497_v10 }
 0x684   :  { %2079 = vmatpush.bf16.msrb.mxu0 %v4197_v57  ;;  %2092 = vmatpush.bf16.msra.mxu1 %v4382_v26 }
 0x687   :  { %2015 = vmatpush.bf16.msra.mxu3 %v4508_v33 }
 0x688   :  { %2080 = vmatpush.bf16.msrb.mxu0 %v4220_v25  ;;  %2093 = vmatpush.bf16.msra.mxu1 %v4396_v52 }
 0x68b   :  { %2016 = vmatpush.bf16.msra.mxu3 %v4519_v39 }
 0x68c   :  { %2081 = vmatpush.bf16.msrb.mxu0 %v4243_v63  ;;  %2094 = vmatpush.bf16.msra.mxu1 %v4407_v23 }
 0x68f   :  { %2017 = vmatpush.bf16.msra.mxu3 %v4534_v43 }
 0x690   :  { %2082 = vmatpush.bf16.msrb.mxu0 %v4265_v24  ;;  %2095 = vmatpush.bf16.msra.mxu1 %v4418_v50 }
 0x6ef   :  { %v1824_v13 = vpop.f32.mrf.mxu0 }
 0x6f0   :  { %v1864_v19 = vadd.f32 %v1824_v13, %v1476_v29  ;;  %v1837_v4 = vpop.f32.mrf.mxu1 }
 0x6f2   :  { %v2987_v5 = vmul.f32 -1.442695, %v1864_v19 }
 0x6f4   :  { %3265 = vpow2.f32 %v2987_v5 }
 0x6f5   :  { %v1811_v7 = vpop.f32.mrf.mxu3 }
 0x6f6   :  { %v1844_v22 = vadd.f32 %v1811_v7, %v1447_v59 }
 0x6f7   :  { %v1826_v18 = vpop.f32.mrf.mxu0 }
 0x6f8   :  { %v2986_v34 = vmul.f32 -1.442695, %v1844_v22  ;;  %v1839_v20 = vpop.f32.mrf.mxu1  ;;  %v1884_v18 = vadd.f32 %v4601_v3, %v1837_v4 }
 0x6fa   :  { %3267 = vpow2.f32 %v2986_v34  ;;  %v3266_v62 = vpop.eup %3265 }
 0x6fb   :  { %v1868_v6 = vadd.f32 1.0, %v3266_v62  ;;  %v1505_v62 = vadd.f32 %v1504_v11, %v4603_v1 }
 0x6fd   :  { %v1813_v17 = vpop.f32.mrf.mxu3  ;;  %vm1874_vm13 = vweird.f32 %v1868_v6 }
 0x700   :  { %v3268_v41 = vpop.eup %3267 }
 0x701   :  { %v1848_v47 = vadd.f32 1.0, %v3268_v41 }
 0x703   :  { %3269 = vrcp.f32 %v1848_v47  ;;  %v1860_v42 = vand.u32 2147483648, %v1848_v47  ;;  %v1858_v5 = vand.u32 2147483647, %v1848_v47  ;;  %vm1854_vm9 = vweird.f32 %v1848_v47 }
 0x704   :  { %3271 = vrcp.f32 %v1868_v6 }
 0x705   :  { %v1861_v22 = vor.u32 1.1754944e-38, %v1860_v42  ;;  %vm1859_vm11 = vcmp.eq.f32.partialorder %v1858_v5, 8.507059e+37 }
 0x709   :  { %v3270_v38 = vpop.eup %3269 }
 0x70a   :  { %v3272_v29 = vpop.eup %3271  ;;  %v1850_v13 = vmul.f32 %v3270_v38, %v1848_v47  ;;  %vm1855_vm8 = vweird.f32 %v3270_v38 }
 0x70b   :  { %v1870_v8 = vmul.f32 %v3272_v29, %v1868_v6  ;;  %vm1856_vm10 = vmor %vm1854_vm9, %vm1855_vm8  ;;  %vm1875_vm12 = vweird.f32 %v3272_v29 }
 0x70c   :  { %v1851_v19 = vsub.f32 1.0, %v1850_v13  ;;  %vm1876_vm14 = vmor %vm1874_vm13, %vm1875_vm12 }
 0x70d   :  { %v1871_v7 = vsub.f32 1.0, %v1870_v8 }
 0x70e   :  { %v1852_v14 = vmul.f32 %v3270_v38, %v1851_v19  ;;  %v1880_v19 = vand.u32 2147483648, %v1868_v6 }
 0x70f   :  { %v1872_v41 = vmul.f32 %v3272_v29, %v1871_v7 }
 0x710   :  { %v1853_v59 = vadd.f32 %v3270_v38, %v1852_v14  ;;  %v1878_v14 = vand.u32 2147483647, %v1868_v6  ;;  %v1881_v42 = vor.u32 1.1754944e-38, %v1880_v19  ;;  %v1450_v6 = vadd.f32 %v4580_v28, %v4578_v58 }
 0x711   :  { %v1873_v21 = vadd.f32 %v3272_v29, %v1872_v41 }
 0x712   :  { %v1857_v34 = vsel %vm1856_vm10, %v3270_v38, %v1853_v59  ;;  %vm1879_vm15 = vcmp.eq.f32.partialorder %v1878_v14, 8.507059e+37 }
 0x713   :  { %v1862_v20 = vsel %vm1859_vm11, %v1861_v22, %v1857_v34  ;;  %v1877_v8 = vsel %vm1876_vm14, %v3272_v29, %v1873_v21  ;;  %v1479_v29 = vadd.f32 %v4637_v48, %v4586_v32 }
 0x714   :  { %v1885_v17 = vmul.f32 %v1884_v18, %v1862_v20  ;;  %v1882_v38 = vsel %vm1879_vm15, %v1881_v42, %v1877_v8 }
 0x716   :  { %v1886_v13 = vadd.f32 %v1885_v17, %v1505_v62 }
 0x718   :  { %3273 = vtanh.f32 %v1886_v13 }
 0x71e   :  { %v3274_v47 = vpop.eup %3273 }
 0x71f   :  { %v1888_v4 = vsub.f32 %v4607_v51, %v3274_v47 }
 0x721   :  { %v1889_v5 = vmul.f32 %v1888_v4, %v1882_v38 }
 0x723   :  { %v4665_v59 = vadd.f32 %v3274_v47, %v1889_v5 }
 0x725   :  { %v1892_v11 = vpack.c.bf16 %v4665_v59, %v4665_v59 }
 0x727   :  { %1901 = vmatmul.bf16.vlgmr.msrb.gmra.mxu2 %v1892_v11  ;;  %1914 = vmatmul.bf16.vlgmr.msrb.gmra.mxu3 %v1892_v11 }
 0x728   :  { %1927 = vmatmul.bf16.vlgmr.msra.gmra.mxu0 %v1892_v11  ;;  %2101 = vmatpush.bf16.msrb.mxu2 %v4450_v60 }
 0x729   :  { %2166 = vmatpush.bf16.msrb.mxu3 %v4147_v61  ;;  %2179 = vmatpush.bf16.msra.mxu0 %v4339_v36 }
 0x72c   :  { %2102 = vmatpush.bf16.msrb.mxu2 %v4456_v46 }
 0x72d   :  { %2167 = vmatpush.bf16.msrb.mxu3 %v4156_v9  ;;  %2180 = vmatpush.bf16.msra.mxu0 %v4349_v15 }
 0x730   :  { %2103 = vmatpush.bf16.msrb.mxu2 %v4469_v16 }
 0x731   :  { %2168 = vmatpush.bf16.msrb.mxu3 %v4165_v53  ;;  %2181 = vmatpush.bf16.msra.mxu0 %v4360_v44 }
 0x734   :  { %2104 = vmatpush.bf16.msrb.mxu2 %v4487_v2 }
 0x735   :  { %2169 = vmatpush.bf16.msrb.mxu3 %v4176_v27  ;;  %2182 = vmatpush.bf16.msra.mxu0 %v4371_v37 }
 0x738   :  { %2105 = vmatpush.bf16.msrb.mxu2 %v4497_v10 }
 0x739   :  { %2170 = vmatpush.bf16.msrb.mxu3 %v4197_v57  ;;  %2183 = vmatpush.bf16.msra.mxu0 %v4382_v26 }
 0x73c   :  { %2106 = vmatpush.bf16.msrb.mxu2 %v4508_v33 }
 0x73d   :  { %2171 = vmatpush.bf16.msrb.mxu3 %v4220_v25  ;;  %2184 = vmatpush.bf16.msra.mxu0 %v4396_v52 }
 0x740   :  { %2107 = vmatpush.bf16.msrb.mxu2 %v4519_v39 }
 0x741   :  { %2172 = vmatpush.bf16.msrb.mxu3 %v4243_v63  ;;  %2185 = vmatpush.bf16.msra.mxu0 %v4407_v23 }
 0x744   :  { %2108 = vmatpush.bf16.msrb.mxu2 %v4534_v43 }
 0x745   :  { %2173 = vmatpush.bf16.msrb.mxu3 %v4265_v24  ;;  %2186 = vmatpush.bf16.msra.mxu0 %v4418_v50 }
 0x7a5   :  { %v1928_v21 = vpop.f32.mrf.mxu0 }
 0x7aa   :  { %v1902_v7 = vpop.f32.mrf.mxu2  ;;  %v1915_v22 = vpop.f32.mrf.mxu3 }
 0x7ab   :  { %v1935_v18 = vadd.f32 %v1902_v7, %v1450_v6  ;;  %v1955_v34 = vadd.f32 %v1915_v22, %v1479_v29 }
 0x7ad   :  { %v2988_v20 = vmul.f32 -1.442695, %v1935_v18  ;;  %v2989_v62 = vmul.f32 -1.442695, %v1955_v34  ;;  %v1930_v17 = vpop.f32.mrf.mxu0  ;;  %v1975_v18 = vadd.f32 %v4601_v3, %v1928_v21 }
 0x7af   :  { %3275 = vpow2.f32 %v2988_v20 }
 0x7b0   :  { %3277 = vpow2.f32 %v2989_v62  ;;  %v1508_v62 = vadd.f32 %v4635_v40, %v4603_v1 }
 0x7b2   :  { %v1904_v41 = vpop.f32.mrf.mxu2  ;;  %v1917_v13 = vpop.f32.mrf.mxu3 }
 0x7b5   :  { %v3276_v19 = vpop.eup %3275 }
 0x7b6   :  { %v3278_v14 = vpop.eup %3277  ;;  %v1939_v8 = vadd.f32 1.0, %v3276_v19 }
 0x7b7   :  { %v1959_v47 = vadd.f32 1.0, %v3278_v14 }
 0x7b8   :  { %3279 = vrcp.f32 %v1939_v8  ;;  %v1951_v38 = vand.u32 2147483648, %v1939_v8  ;;  %v1949_v6 = vand.u32 2147483647, %v1939_v8  ;;  %vm1945_vm1 = vweird.f32 %v1939_v8 }
 0x7b9   :  { %3281 = vrcp.f32 %v1959_v47  ;;  %v1971_v14 = vand.u32 2147483648, %v1959_v47  ;;  %vm1965_vm5 = vweird.f32 %v1959_v47 }
 0x7ba   :  { %v1952_v7 = vor.u32 1.1754944e-38, %v1951_v38  ;;  %vm1950_vm3 = vcmp.eq.f32.partialorder %v1949_v6, 8.507059e+37 }
 0x7bb   :  { %v1972_v38 = vor.u32 1.1754944e-38, %v1971_v14 }
 0x7be   :  { %v3280_v28 = vpop.eup %3279 }
 0x7bf   :  { %v3282_v42 = vpop.eup %3281  ;;  %v1941_v48 = vmul.f32 %v3280_v28, %v1939_v8  ;;  %vm1946_vm0 = vweird.f32 %v3280_v28  ;;  %v1969_v8 = vand.u32 2147483647, %v1959_v47 }
 0x7c0   :  { %v1961_v5 = vmul.f32 %v3282_v42, %v1959_v47  ;;  %vm1947_vm2 = vmor %vm1945_vm1, %vm1946_vm0  ;;  %vm1966_vm4 = vweird.f32 %v3282_v42  ;;  %v1452_v47 = vadd.f32 %v4584_v30, %v4578_v58 }
 0x7c1   :  { %v1942_v4 = vsub.f32 1.0, %v1941_v48  ;;  %vm1967_vm6 = vmor %vm1965_vm5, %vm1966_vm4  ;;  %vm1970_vm7 = vcmp.eq.f32.partialorder %v1969_v8, 8.507059e+37 }
 0x7c2   :  { %v1962_v22 = vsub.f32 1.0, %v1961_v5 }
 0x7c3   :  { %v1943_v11 = vmul.f32 %v3280_v28, %v1942_v4 }
 0x7c4   :  { %v1963_v41 = vmul.f32 %v3282_v42, %v1962_v22 }
 0x7c5   :  { %v1944_v29 = vadd.f32 %v3280_v28, %v1943_v11 }
 0x7c6   :  { %v1964_v19 = vadd.f32 %v3282_v42, %v1963_v41 }
 0x7c7   :  { %v1948_v34 = vsel %vm1947_vm2, %v3280_v28, %v1944_v29 }
 0x7c8   :  { %v1953_v20 = vsel %vm1950_vm3, %v1952_v7, %v1948_v34  ;;  %v1968_v48 = vsel %vm1967_vm6, %v3282_v42, %v1964_v19  ;;  %v1481_v7 = vadd.f32 %v4641_v54, %v4586_v32 }
 0x7c9   :  { %v1976_v17 = vmul.f32 %v1975_v18, %v1953_v20  ;;  %v1973_v28 = vsel %vm1970_vm7, %v1972_v38, %v1968_v48 }
 0x7cb   :  { %v1977_v13 = vadd.f32 %v1976_v17, %v1508_v62 }
 0x7cd   :  { %3283 = vtanh.f32 %v1977_v13 }
 0x7d3   :  { %v3284_v4 = vpop.eup %3283 }
 0x7d4   :  { %v1979_v21 = vsub.f32 %v4665_v59, %v3284_v4 }
 0x7d6   :  { %v1980_v5 = vmul.f32 %v1979_v21, %v1973_v28 }
 0x7d8   :  { %v4701_v11 = vadd.f32 %v3284_v4, %v1980_v5 }
 0x7da   :  { %v1983_v40 = vpack.c.bf16 %v4701_v11, %v4701_v11 }
 0x7dc   :  { %1992 = vmatmul.bf16.vlgmr.msrb.gmra.mxu1 %v1983_v40  ;;  %2005 = vmatmul.bf16.vlgmr.msra.gmra.mxu2 %v1983_v40 }
 0x7dd   :  { %2018 = vmatmul.bf16.vlgmr.msra.gmra.mxu3 %v1983_v40  ;;  %2192 = vmatpush.bf16.msrb.mxu1 %v4450_v60 }
 0x7de   :  { %2257 = vmatpush.bf16.msra.mxu2 %v4147_v61  ;;  %2270 = vmatpush.bf16.msra.mxu3 %v4339_v36 }
 0x7e1   :  { %2193 = vmatpush.bf16.msrb.mxu1 %v4456_v46 }
 0x7e2   :  { %2258 = vmatpush.bf16.msra.mxu2 %v4156_v9  ;;  %2271 = vmatpush.bf16.msra.mxu3 %v4349_v15 }
 0x7e5   :  { %2194 = vmatpush.bf16.msrb.mxu1 %v4469_v16 }
 0x7e6   :  { %2259 = vmatpush.bf16.msra.mxu2 %v4165_v53  ;;  %2272 = vmatpush.bf16.msra.mxu3 %v4360_v44 }
 0x7e9   :  { %2195 = vmatpush.bf16.msrb.mxu1 %v4487_v2 }
 0x7ea   :  { %2260 = vmatpush.bf16.msra.mxu2 %v4176_v27  ;;  %2273 = vmatpush.bf16.msra.mxu3 %v4371_v37 }
 0x7ed   :  { %2196 = vmatpush.bf16.msrb.mxu1 %v4497_v10 }
 0x7ee   :  { %2261 = vmatpush.bf16.msra.mxu2 %v4197_v57  ;;  %2274 = vmatpush.bf16.msra.mxu3 %v4382_v26 }
 0x7f1   :  { %2197 = vmatpush.bf16.msrb.mxu1 %v4508_v33 }
 0x7f2   :  { %2262 = vmatpush.bf16.msra.mxu2 %v4220_v25  ;;  %2275 = vmatpush.bf16.msra.mxu3 %v4396_v52 }
 0x7f5   :  { %2198 = vmatpush.bf16.msrb.mxu1 %v4519_v39 }
 0x7f6   :  { %2263 = vmatpush.bf16.msra.mxu2 %v4243_v63  ;;  %2276 = vmatpush.bf16.msra.mxu3 %v4407_v23 }
 0x7f9   :  { %2199 = vmatpush.bf16.msrb.mxu1 %v4534_v43 }
 0x7fa   :  { %2264 = vmatpush.bf16.msra.mxu2 %v4265_v24  ;;  %2277 = vmatpush.bf16.msra.mxu3 %v4418_v50 }
 0x859   :  { %v1993_v42 = vpop.f32.mrf.mxu1 }
 0x85a   :  { %v2026_v6 = vadd.f32 %v1993_v42, %v1452_v47 }
 0x85c   :  { %v2990_v29 = vmul.f32 -1.442695, %v2026_v6 }
 0x85e   :  { %3285 = vpow2.f32 %v2990_v29 }
 0x85f   :  { %v2006_v22 = vpop.f32.mrf.mxu2 }
 0x860   :  { %v2046_v18 = vadd.f32 %v2006_v22, %v1481_v7  ;;  %v2019_v34 = vpop.f32.mrf.mxu3  ;;  %v1510_v22 = vadd.f32 %v4639_v31, %v4603_v1 }
 0x861   :  { %v1995_v20 = vpop.f32.mrf.mxu1  ;;  %v2066_v29 = vadd.f32 %v4601_v3, %v2019_v34 }
 0x862   :  { %v2991_v62 = vmul.f32 -1.442695, %v2046_v18 }
 0x864   :  { %v3286_v17 = vpop.eup %3285  ;;  %3287 = vpow2.f32 %v2991_v62 }
 0x865   :  { %v2030_v41 = vadd.f32 1.0, %v3286_v17 }
 0x867   :  { %3289 = vrcp.f32 %v2030_v41  ;;  %v2008_v13 = vpop.f32.mrf.mxu2  ;;  %v2042_v38 = vand.u32 2147483648, %v2030_v41  ;;  %v2040_v21 = vand.u32 2147483647, %v2030_v41  ;;  %vm2036_vm9 = vweird.f32 %v2030_v41 }
 0x868   :  { %v2021_v19 = vpop.f32.mrf.mxu3 }
 0x869   :  { %v2043_v47 = vor.u32 1.1754944e-38, %v2042_v38  ;;  %vm2041_vm11 = vcmp.eq.f32.partialorder %v2040_v21, 8.507059e+37 }
 0x86a   :  { %v3288_v14 = vpop.eup %3287 }
 0x86b   :  { %v2050_v30 = vadd.f32 1.0, %v3288_v14 }
 0x86d   :  { %v3290_v8 = vpop.eup %3289  ;;  %3291 = vrcp.f32 %v2050_v30  ;;  %v2062_v13 = vand.u32 2147483648, %v2050_v30  ;;  %vm2056_vm13 = vweird.f32 %v2050_v30 }
 0x86e   :  { %v2032_v48 = vmul.f32 %v3290_v8, %v2030_v41  ;;  %vm2037_vm8 = vweird.f32 %v3290_v8  ;;  %v2060_v41 = vand.u32 2147483647, %v2050_v30 }
 0x86f   :  { %vm2038_vm10 = vmor %vm2036_vm9, %vm2037_vm8 }
 0x870   :  { %v2033_v4 = vsub.f32 1.0, %v2032_v48  ;;  %vm2061_vm15 = vcmp.eq.f32.partialorder %v2060_v41, 8.507059e+37 }
 0x872   :  { %v2034_v54 = vmul.f32 %v3290_v8, %v2033_v4 }
 0x873   :  { %v3292_v28 = vpop.eup %3291 }
 0x874   :  { %v2052_v5 = vmul.f32 %v3292_v28, %v2050_v30  ;;  %v2035_v40 = vadd.f32 %v3290_v8, %v2034_v54  ;;  %vm2057_vm12 = vweird.f32 %v3292_v28 }
 0x875   :  { %vm2058_vm14 = vmor %vm2056_vm13, %vm2057_vm12 }
 0x876   :  { %v2053_v42 = vsub.f32 1.0, %v2052_v5  ;;  %v2039_v6 = vsel %vm2038_vm10, %v3290_v8, %v2035_v40  ;;  %v2063_v8 = vor.u32 1.1754944e-38, %v2062_v13 }
 0x877   :  { %v2044_v7 = vsel %vm2041_vm11, %v2043_v47, %v2039_v6 }
 0x878   :  { %v2067_v18 = vmul.f32 %v2066_v29, %v2044_v7  ;;  %v2054_v20 = vmul.f32 %v3292_v28, %v2053_v42 }
 0x87a   :  { %v2068_v62 = vadd.f32 %v2067_v18, %v1510_v22  ;;  %v2055_v17 = vadd.f32 %v3292_v28, %v2054_v20  ;;  %v1513_v18 = vadd.f32 %v4643_v35, %v4603_v1 }
 0x87c   :  { %3293 = vtanh.f32 %v2068_v62  ;;  %v2059_v19 = vsel %vm2058_vm14, %v3292_v28, %v2055_v17 }
 0x87d   :  { %v2064_v48 = vsel %vm2061_vm15, %v2063_v8, %v2059_v19 }
 0x882   :  { %v3294_v14 = vpop.eup %3293 }
 0x883   :  { %v2070_v34 = vsub.f32 %v4701_v11, %v3294_v14 }
 0x885   :  { %v2071_v4 = vmul.f32 %v2070_v34, %v2064_v48 }
 0x887   :  { %v4737_v38 = vadd.f32 %v3294_v14, %v2071_v4 }
 0x889   :  { %v2074_v31 = vpack.c.bf16 %v4737_v38, %v4737_v38 }
 0x88b   :  { %2083 = vmatmul.bf16.vlgmr.msrb.gmra.mxu0 %v2074_v31  ;;  %2096 = vmatmul.bf16.vlgmr.msra.gmra.mxu1 %v2074_v31 }
 0x88c   :  { %2109 = vmatmul.bf16.vlgmr.msrb.gmra.mxu2 %v2074_v31  ;;  %2283 = vmatpush.bf16.msrb.mxu0 %v4450_v60 }
 0x88d   :  { %2348 = vmatpush.bf16.msra.mxu1 %v4147_v61  ;;  %2361 = vmatpush.bf16.msrb.mxu2 %v4339_v36  ;;  %v1455_v61 = vadd.f32 %v4589_v12, %v4578_v58 }
 0x890   :  { %2284 = vmatpush.bf16.msrb.mxu0 %v4456_v46 }
 0x891   :  { %2349 = vmatpush.bf16.msra.mxu1 %v4156_v9  ;;  %2362 = vmatpush.bf16.msrb.mxu2 %v4349_v15  ;;  %v1484_v9 = vadd.f32 %v4645_v49, %v4586_v32 }
 0x894   :  { %2285 = vmatpush.bf16.msrb.mxu0 %v4469_v16 }
 0x895   :  { %2350 = vmatpush.bf16.msra.mxu1 %v4165_v53  ;;  %2363 = vmatpush.bf16.msrb.mxu2 %v4360_v44 }
 0x898   :  { %2286 = vmatpush.bf16.msrb.mxu0 %v4487_v2 }
 0x899   :  { %2351 = vmatpush.bf16.msra.mxu1 %v4176_v27  ;;  %2364 = vmatpush.bf16.msrb.mxu2 %v4371_v37 }
 0x89c   :  { %2287 = vmatpush.bf16.msrb.mxu0 %v4497_v10 }
 0x89d   :  { %2352 = vmatpush.bf16.msra.mxu1 %v4197_v57  ;;  %2365 = vmatpush.bf16.msrb.mxu2 %v4382_v26 }
 0x8a0   :  { %2288 = vmatpush.bf16.msrb.mxu0 %v4508_v33 }
 0x8a1   :  { %2353 = vmatpush.bf16.msra.mxu1 %v4220_v25  ;;  %2366 = vmatpush.bf16.msrb.mxu2 %v4396_v52 }
 0x8a4   :  { %2289 = vmatpush.bf16.msrb.mxu0 %v4519_v39 }
 0x8a5   :  { %2354 = vmatpush.bf16.msra.mxu1 %v4243_v63  ;;  %2367 = vmatpush.bf16.msrb.mxu2 %v4407_v23 }
 0x8a8   :  { %2290 = vmatpush.bf16.msrb.mxu0 %v4534_v43 }
 0x8a9   :  { %2355 = vmatpush.bf16.msra.mxu1 %v4265_v24  ;;  %2368 = vmatpush.bf16.msrb.mxu2 %v4418_v50 }
 0x908   :  { %v2084_v53 = vpop.f32.mrf.mxu0  ;;  %v2097_v27 = vpop.f32.mrf.mxu1 }
 0x909   :  { %v2117_v57 = vadd.f32 %v2084_v53, %v1455_v61  ;;  %v2137_v25 = vadd.f32 %v2097_v27, %v1484_v9  ;;  %v1486_v9 = vadd.f32 %v4649_v55, %v4586_v32 }
 0x90b   :  { %v2992_v36 = vmul.f32 -1.442695, %v2117_v57  ;;  %v2993_v63 = vmul.f32 -1.442695, %v2137_v25 }
 0x90d   :  { %3295 = vpow2.f32 %v2992_v36 }
 0x90e   :  { %3297 = vpow2.f32 %v2993_v63 }
 0x90f   :  { %v2110_v15 = vpop.f32.mrf.mxu2 }
 0x910   :  { %v2086_v44 = vpop.f32.mrf.mxu0  ;;  %v2099_v37 = vpop.f32.mrf.mxu1  ;;  %v2157_v7 = vadd.f32 %v4601_v3, %v2110_v15 }
 0x911   :  { %v3136_v37 = vld [vmem:[%s4885_s7 + $0x20] sm:$0xff] }
 0x913   :  { %v3296_v24 = vpop.eup %3295 }
 0x914   :  { %v3298_v26 = vpop.eup %3297  ;;  %v2121_v52 = vadd.f32 1.0, %v3296_v24  ;;  %v3135_v24 = vld [vmem:[%s4885_s7 + $0x18] sm:$0xff] }
 0x915   :  { %v2141_v23 = vadd.f32 1.0, %v3298_v26 }
 0x916   :  { %3299 = vrcp.f32 %v2121_v52  ;;  %v2133_v28 = vand.u32 2147483648, %v2121_v52  ;;  %v2131_v40 = vand.u32 2147483647, %v2121_v52  ;;  %vm2127_vm1 = vweird.f32 %v2121_v52 }
 0x917   :  { %3301 = vrcp.f32 %v2141_v23  ;;  %v2112_v50 = vpop.f32.mrf.mxu2  ;;  %v2153_v41 = vand.u32 2147483648, %v2141_v23  ;;  %vm2147_vm5 = vweird.f32 %v2141_v23  ;;  %v2151_v19 = vand.u32 2147483647, %v2141_v23 }
 0x918   :  { %v2134_v6 = vor.u32 1.1754944e-38, %v2133_v28  ;;  %vm2132_vm3 = vcmp.eq.f32.partialorder %v2131_v40, 8.507059e+37  ;;  %v3134_v50 = vld [vmem:[%s4885_s7 + $0x10] sm:$0xff]  ;;  %v3133_v28 = vld [vmem:[%s4885_s7 + $0x8] sm:$0xff] }
 0x919   :  { %v2154_v34 = vor.u32 1.1754944e-38, %v2153_v41  ;;  %vm2152_vm7 = vcmp.eq.f32.partialorder %v2151_v19, 8.507059e+37 }
 0x91c   :  { %v3300_v12 = vpop.eup %3299 }
 0x91d   :  { %v3302_v49 = vpop.eup %3301  ;;  %v2123_v30 = vmul.f32 %v3300_v12, %v2121_v52  ;;  %vm2128_vm0 = vweird.f32 %v3300_v12 }
 0x91e   :  { %v2143_v21 = vmul.f32 %v3302_v49, %v2141_v23  ;;  %vm2129_vm2 = vmor %vm2127_vm1, %vm2128_vm0  ;;  %vm2148_vm4 = vweird.f32 %v3302_v49 }
 0x91f   :  { %v2124_v54 = vsub.f32 1.0, %v2123_v30  ;;  %vm2149_vm6 = vmor %vm2147_vm5, %vm2148_vm4 }
 0x920   :  { %v2144_v42 = vsub.f32 1.0, %v2143_v21 }
 0x921   :  { %v2125_v5 = vmul.f32 %v3300_v12, %v2124_v54 }
 0x922   :  { %v2145_v62 = vmul.f32 %v3302_v49, %v2144_v42 }
 0x923   :  { %v2126_v47 = vadd.f32 %v3300_v12, %v2125_v5 }
 0x924   :  { %v2146_v13 = vadd.f32 %v3302_v49, %v2145_v62 }
 0x925   :  { %v2130_v29 = vsel %vm2129_vm2, %v3300_v12, %v2126_v47 }
 0x926   :  { %v2135_v22 = vsel %vm2132_vm3, %v2134_v6, %v2130_v29  ;;  %v2150_v14 = vsel %vm2149_vm6, %v3302_v49, %v2146_v13  ;;  %v3132_v29 = vld [vmem:[%s4885_s7] sm:$0xff] }
 0x927   :  { %v2158_v20 = vmul.f32 %v2157_v7, %v2135_v22  ;;  %v2155_v4 = vsel %vm2152_vm7, %v2154_v34, %v2150_v14  ;;  %v1515_v22 = vadd.f32 %v4647_v56, %v4603_v1 }
 0x929   :  { %v2159_v17 = vadd.f32 %v2158_v20, %v1513_v18 }
 0x92b   :  { %3303 = vtanh.f32 %v2159_v17 }
 0x931   :  { %v3304_v8 = vpop.eup %3303 }
 0x932   :  { %v2161_v48 = vsub.f32 %v4737_v38, %v3304_v8 }
 0x934   :  { %v2162_v31 = vmul.f32 %v2161_v48, %v2155_v4 }
 0x936   :  { %v4773_v61 = vadd.f32 %v3304_v8, %v2162_v31  ;;  %v2447_v31 = vpack.c.bf16 %v4665_v59, %v4607_v51 }
 0x938   :  { %v2165_v35 = vpack.c.bf16 %v4773_v61, %v4773_v61 }
 0x93a   :  { %2174 = vmatmul.bf16.vlgmr.msrb.gmra.mxu3 %v2165_v35  ;;  %2187 = vmatmul.bf16.vlgmr.msra.gmra.mxu0 %v2165_v35 }
 0x93b   :  { %2200 = vmatmul.bf16.vlgmr.msrb.gmra.mxu1 %v2165_v35  ;;  %2374 = vmatpush.bf16.msrb.mxu3 %v4450_v60  ;;  %v2448_v35 = vpack.c.bf16 %v4737_v38, %v4701_v11 }
 0x93f   :  { %2375 = vmatpush.bf16.msrb.mxu3 %v4456_v46  ;;  %v1457_v46 = vadd.f32 %v4592_v45, %v4578_v58  ;;  %v3137_v45 = vld [vmem:[%s4885_s7 + $0x28] sm:$0xff] }
 0x943   :  { %2376 = vmatpush.bf16.msrb.mxu3 %v4469_v16 }
 0x947   :  { %2377 = vmatpush.bf16.msrb.mxu3 %v4487_v2 }
 0x94b   :  { %2378 = vmatpush.bf16.msrb.mxu3 %v4497_v10 }
 0x94f   :  { %2379 = vmatpush.bf16.msrb.mxu3 %v4508_v33 }
 0x953   :  { %2380 = vmatpush.bf16.msrb.mxu3 %v4519_v39  ;;  %v3139_v39 = vld [vmem:[%s4885_s7 + $0x38] sm:$0xff] }
 0x954   :  { %2519 = vmatpush.bf16.msra.mxu0 %v3139_v39 }
 0x957   :  { %2381 = vmatpush.bf16.msrb.mxu3 %v4534_v43  ;;  %v3138_v43 = vld [vmem:[%s4885_s7 + $0x30] sm:$0xff] }
 0x958   :  { %2520 = vmatpush.bf16.msra.mxu0 %v3138_v43 }
 0x95c   :  { %2521 = vmatpush.bf16.msra.mxu0 %v3137_v45 }
 0x960   :  { %2522 = vmatpush.bf16.msra.mxu0 %v3136_v37 }
 0x964   :  { %2523 = vmatpush.bf16.msra.mxu0 %v3135_v24 }
 0x968   :  { %2524 = vmatpush.bf16.msra.mxu0 %v3134_v50 }
 0x96c   :  { %2525 = vmatpush.bf16.msra.mxu0 %v3133_v28  ;;  %v4844_v28 = vld [vmem:[%s4883_s6 + $0x5] ss:$0 sm:$0xff] }
 0x970   :  { %2526 = vmatpush.bf16.msra.mxu0 %v3132_v29 }
 0x9b7   :  { %v2188_v53 = vpop.f32.mrf.mxu0 }
 0x9b8   :  { %v2228_v27 = vadd.f32 %v2188_v53, %v1486_v9  ;;  %v2201_v60 = vpop.f32.mrf.mxu1 }
 0x9b9   :  { %v2248_v42 = vadd.f32 %v4601_v3, %v2201_v60  ;;  %v4906_v60 = vld [vmem:[#allocation8_spill] sm:$0xff] }
 0x9ba   :  { %v2995_v57 = vmul.f32 -1.442695, %v2228_v27  ;;  %v1460_v27 = vadd.f32 %v4594_v0, %v4578_v58  ;;  %v4834_v0 = vld [vmem:[%s4886_s8] ss:$0 sm:$0xff] }
 0x9bc   :  { %3305 = vpow2.f32 %v2995_v57  ;;  %v1489_v57 = vadd.f32 %v4906_v60, %v4586_v32 }
 0x9bd   :  { %v2175_v16 = vpop.f32.mrf.mxu3 }
 0x9be   :  { %v2208_v2 = vadd.f32 %v2175_v16, %v1457_v46 }
 0x9bf   :  { %v2190_v10 = vpop.f32.mrf.mxu0 }
 0x9c0   :  { %v2994_v25 = vmul.f32 -1.442695, %v2208_v2  ;;  %v2203_v33 = vpop.f32.mrf.mxu1 }
 0x9c2   :  { %3307 = vpow2.f32 %v2994_v25  ;;  %v3306_v55 = vpop.eup %3305 }
 0x9c3   :  { %v2232_v15 = vadd.f32 1.0, %v3306_v55 }
 0x9c5   :  { %v2177_v36 = vpop.f32.mrf.mxu3  ;;  %v2244_v13 = vand.u32 2147483648, %v2232_v15  ;;  %vm2238_vm13 = vweird.f32 %v2232_v15  ;;  %v2242_v3 = vand.u32 2147483647, %v2232_v15 }
 0x9c7   :  { %v2245_v14 = vor.u32 1.1754944e-38, %v2244_v13  ;;  %vm2243_vm15 = vcmp.eq.f32.partialorder %v2242_v3, 8.507059e+37 }
 0x9c8   :  { %v3308_v63 = vpop.eup %3307 }
 0x9c9   :  { %v2212_v44 = vadd.f32 1.0, %v3308_v63 }
 0x9cb   :  { %3309 = vrcp.f32 %v2212_v44  ;;  %v2224_v30 = vand.u32 2147483648, %v2212_v44  ;;  %v2222_v21 = vand.u32 2147483647, %v2212_v44  ;;  %vm2218_vm9 = vweird.f32 %v2212_v44 }
 0x9cc   :  { %3311 = vrcp.f32 %v2232_v15 }
 0x9cd   :  { %v2225_v47 = vor.u32 1.1754944e-38, %v2224_v30  ;;  %vm2223_vm11 = vcmp.eq.f32.partialorder %v2222_v21, 8.507059e+37 }
 0x9d1   :  { %v3310_v26 = vpop.eup %3309 }
 0x9d2   :  { %v3312_v52 = vpop.eup %3311  ;;  %v2214_v23 = vmul.f32 %v3310_v26, %v2212_v44  ;;  %vm2219_vm8 = vweird.f32 %v3310_v26 }
 0x9d3   :  { %v2234_v49 = vmul.f32 %v3312_v52, %v2232_v15  ;;  %vm2220_vm10 = vmor %vm2218_vm9, %vm2219_vm8  ;;  %vm2239_vm12 = vweird.f32 %v3312_v52 }
 0x9d4   :  { %v2215_v12 = vsub.f32 1.0, %v2214_v23  ;;  %vm2240_vm14 = vmor %vm2238_vm13, %vm2239_vm12 }
 0x9d5   :  { %v2235_v40 = vsub.f32 1.0, %v2234_v49 }
 0x9d6   :  { %v2216_v54 = vmul.f32 %v3310_v26, %v2215_v12 }
 0x9d7   :  { %v2236_v20 = vmul.f32 %v3312_v52, %v2235_v40 }
 0x9d8   :  { %v2217_v5 = vadd.f32 %v3310_v26, %v2216_v54 }
 0x9d9   :  { %v2237_v17 = vadd.f32 %v3312_v52, %v2236_v20 }
 0x9da   :  { %v2221_v6 = vsel %vm2220_vm10, %v3310_v26, %v2217_v5 }
 0x9db   :  { %v2226_v7 = vsel %vm2223_vm11, %v2225_v47, %v2221_v6  ;;  %v2241_v41 = vsel %vm2240_vm14, %v3312_v52, %v2237_v17 }
 0x9dc   :  { %v2249_v18 = vmul.f32 %v2248_v42, %v2226_v7  ;;  %v2246_v34 = vsel %vm2243_vm15, %v2245_v14, %v2241_v41  ;;  %v4907_v42 = vld [vmem:[#allocation7_spill] sm:$0xff] }
 0x9dd   :  { %v1518_v6 = vadd.f32 %v4907_v42, %v4603_v1 }
 0x9de   :  { %v2250_v62 = vadd.f32 %v2249_v18, %v1515_v22 }
 0x9e0   :  { %3313 = vtanh.f32 %v2250_v62 }
 0x9e6   :  { %v3314_v19 = vpop.eup %3313 }
 0x9e7   :  { %v2252_v8 = vsub.f32 %v4773_v61, %v3314_v19 }
 0x9e9   :  { %v2253_v48 = vmul.f32 %v2252_v8, %v2246_v34 }
 0x9eb   :  { %v4817_v56 = vadd.f32 %v3314_v19, %v2253_v48 }
 0x9ed   :  { %v2256_v4 = vpack.c.bf16 %v4817_v56, %v4817_v56  ;;  %v2449_v9 = vpack.c.bf16 %v4817_v56, %v4773_v61 }
 0x9ef   :  { %2265 = vmatmul.bf16.vlgmr.msra.gmra.mxu2 %v2256_v4  ;;  %2278 = vmatmul.bf16.vlgmr.msra.gmra.mxu3 %v2256_v4 }
 0x9f0   :  { %2291 = vmatmul.bf16.vlgmr.msrb.gmra.mxu0 %v2256_v4 }
 0xa00   :  { %2527 = vmatmul.bf16.vlgmr.msra.gmra.mxu0 %v2447_v31 }
 0xa10   :  { %2532 = vmatmul.bf16.gmra.mxu0 %v2448_v35 }
 0xa20   :  { %2537 = vmatmul.bf16.gmra.mxu0 %v2449_v9 }
 0xa6d   :  { %v2292_v53 = vpop.f32.mrf.mxu0 }
 0xa6e   :  { %v2339_v5 = vadd.f32 %v4844_v28, %v2292_v53 }
 0xa72   :  { %v2266_v46 = vpop.f32.mrf.mxu2  ;;  %v2279_v16 = vpop.f32.mrf.mxu3 }
 0xa73   :  { %v2299_v2 = vadd.f32 %v2266_v46, %v1460_v27  ;;  %v2319_v51 = vadd.f32 %v2279_v16, %v1489_v57 }
 0xa75   :  { %v2996_v59 = vmul.f32 -1.442695, %v2299_v2  ;;  %v2997_v10 = vmul.f32 -1.442695, %v2319_v51  ;;  %v2294_v25 = vpop.f32.mrf.mxu0 }
 0xa77   :  { %3315 = vpow2.f32 %v2996_v59  ;;  %v4909_v59 = vld [vmem:[#allocation9_spill] sm:$0xff] }
 0xa78   :  { %3317 = vpow2.f32 %v2997_v10  ;;  %v1491_v10 = vadd.f32 %v4909_v59, %v4586_v32 }
 0xa7a   :  { %v2268_v11 = vpop.f32.mrf.mxu2  ;;  %v2281_v38 = vpop.f32.mrf.mxu3 }
 0xa7d   :  { %v3316_v61 = vpop.eup %3315  ;;  %v2528_v33 = vpop.f32.mrf.mxu0 }
 0xa7e   :  { %v3318_v39 = vpop.eup %3317  ;;  %v2303_v43 = vadd.f32 1.0, %v3316_v61  ;;  %v2529_v63 = vadd.f32 %v4834_v0, %v2528_v33 }
 0xa7f   :  { %v2323_v55 = vadd.f32 1.0, %v3318_v39 }
 0xa80   :  { %3319 = vrcp.f32 %v2303_v43  ;;  %v2315_v52 = vand.u32 2147483648, %v2303_v43  ;;  %v2313_v12 = vand.u32 2147483647, %v2303_v43  ;;  %vm2309_vm1 = vweird.f32 %v2303_v43 }
 0xa81   :  { %3321 = vrcp.f32 %v2323_v55  ;;  %v2335_v13 = vand.u32 2147483648, %v2323_v55  ;;  %vm2329_vm5 = vweird.f32 %v2323_v55  ;;  %v2333_v3 = vand.u32 2147483647, %v2323_v55 }
 0xa82   :  { %v2316_v54 = vor.u32 1.1754944e-38, %v2315_v52  ;;  %vm2314_vm3 = vcmp.eq.f32.partialorder %v2313_v12, 8.507059e+37 }
 0xa83   :  { %v2336_v8 = vor.u32 1.1754944e-38, %v2335_v13  ;;  %vm2334_vm7 = vcmp.eq.f32.partialorder %v2333_v3, 8.507059e+37 }
 0xa85   :  { %v2530_v36 = vpop.f32.mrf.mxu0 }
 0xa86   :  { %v3320_v45 = vpop.eup %3319  ;;  %v2531_v15 = vadd.f32 %v4834_v0, %v2530_v36 }
 0xa87   :  { %v3322_v44 = vpop.eup %3321  ;;  %v2305_v37 = vmul.f32 %v3320_v45, %v2303_v43  ;;  %vm2310_vm0 = vweird.f32 %v3320_v45 }
 0xa88   :  { %v3143_v24 = vpack.c.bf16 %v2531_v15, %v2529_v63  ;;  %v2325_v23 = vmul.f32 %v3322_v44, %v2323_v55  ;;  %vm2311_vm2 = vmor %vm2309_vm1, %vm2310_vm0  ;;  %vm2330_vm4 = vweird.f32 %v3322_v44 }
 0xa89   :  { %v2306_v26 = vsub.f32 1.0, %v2305_v37  ;;  %vm2331_vm6 = vmor %vm2329_vm5, %vm2330_vm4 }
 0xa8a   :  { %3144 = vst [vmem:[%s4887_s9] sm:$0xff] %v3143_v24   ;;  %v2326_v21 = vsub.f32 1.0, %v2325_v23 }
 0xa8b   :  { %v2307_v50 = vmul.f32 %v3320_v45, %v2306_v26 }
 0xa8c   :  { %v2327_v7 = vmul.f32 %v3322_v44, %v2326_v21  ;;  %v4910_v21 = vld [vmem:[#allocation5_spill] sm:$0xff] }
 0xa8d   :  { %v2308_v49 = vadd.f32 %v3320_v45, %v2307_v50  ;;  %v2533_v30 = vpop.f32.mrf.mxu0 }
 0xa8e   :  { %v2328_v20 = vadd.f32 %v3322_v44, %v2327_v7  ;;  %v2534_v62 = vadd.f32 %v4834_v0, %v2533_v30 }
 0xa8f   :  { %v2312_v40 = vsel %vm2311_vm2, %v3320_v45, %v2308_v49 }
 0xa90   :  { %v2317_v47 = vsel %vm2314_vm3, %v2316_v54, %v2312_v40  ;;  %v2332_v19 = vsel %vm2331_vm6, %v3322_v44, %v2328_v20 }
 0xa91   :  { %v2340_v29 = vmul.f32 %v2339_v5, %v2317_v47  ;;  %v2337_v48 = vsel %vm2334_vm7, %v2336_v8, %v2332_v19  ;;  %v1520_v5 = vadd.f32 %v4910_v21, %v4603_v1 }
 0xa93   :  { %v2341_v22 = vadd.f32 %v2340_v29, %v1518_v6 }
 0xa95   :  { %3323 = vtanh.f32 %v2341_v22  ;;  %v2535_v18 = vpop.f32.mrf.mxu0 }
 0xa96   :  { %v2536_v17 = vadd.f32 %v4834_v0, %v2535_v18 }
 0xa98   :  { %v3148_v41 = vpack.c.bf16 %v2536_v17, %v2534_v62 }
 0xa9a   :  { %3160 = vst [vmem:[%s4887_s9 + $0x8] sm:$0xff] %v3148_v41  }
 0xa9b   :  { %v3324_v14 = vpop.eup %3323 }
 0xa9c   :  { %v2343_v34 = vsub.f32 %v4817_v56, %v3324_v14  ;;  %v4908_v56 = vld [vmem:[#allocation6_spill] sm:$0xff] }
 0xa9d   :  { %v2538_v4 = vpop.f32.mrf.mxu0  ;;  %v1462_v46 = vadd.f32 %v4908_v56, %v4578_v58 }
 0xa9e   :  { %v2344_v31 = vmul.f32 %v2343_v34, %v2337_v48  ;;  %v2539_v27 = vadd.f32 %v4834_v0, %v2538_v4 }
 0xaa0   :  { %v4855_v35 = vadd.f32 %v3324_v14, %v2344_v31 }
 0xaa2   :  { %v2347_v9 = vpack.c.bf16 %v4855_v35, %v4855_v35 }
 0xaa4   :  { %2356 = vmatmul.bf16.vlgmr.msra.gmra.mxu1 %v2347_v9  ;;  %2369 = vmatmul.bf16.vlgmr.msrb.gmra.mxu2 %v2347_v9 }
 0xaa5   :  { %2382 = vmatmul.bf16.vlgmr.msrb.gmra.mxu3 %v2347_v9  ;;  %v2540_v53 = vpop.f32.mrf.mxu0 }
 0xaa6   :  { %v2541_v60 = vadd.f32 %v4834_v0, %v2540_v53 }
 0xaa8   :  { %v3153_v57 = vpack.c.bf16 %v2541_v60, %v2539_v27 }
 0xaaa   :  { %3161 = vst [vmem:[%s4887_s9 + $0x10] sm:$0xff] %v3153_v57  }
 0xb21   :  { %v2357_v16 = vpop.f32.mrf.mxu1 }
 0xb22   :  { %v2390_v2 = vadd.f32 %v2357_v16, %v1462_v46 }
 0xb24   :  { %v2998_v51 = vmul.f32 -1.442695, %v2390_v2 }
 0xb26   :  { %3325 = vpow2.f32 %v2998_v51 }
 0xb27   :  { %v2370_v25 = vpop.f32.mrf.mxu2 }
 0xb28   :  { %v2410_v11 = vadd.f32 %v2370_v25, %v1491_v10  ;;  %v2383_v38 = vpop.f32.mrf.mxu3 }
 0xb29   :  { %v2359_v61 = vpop.f32.mrf.mxu1  ;;  %v2430_v30 = vadd.f32 %v4844_v28, %v2383_v38 }
 0xb2a   :  { %v2999_v33 = vmul.f32 -1.442695, %v2410_v11 }
 0xb2c   :  { %v3326_v39 = vpop.eup %3325  ;;  %3327 = vpow2.f32 %v2999_v33 }
 0xb2d   :  { %v2394_v43 = vadd.f32 1.0, %v3326_v39 }
 0xb2f   :  { %3329 = vrcp.f32 %v2394_v43  ;;  %v2372_v55 = vpop.f32.mrf.mxu2  ;;  %v2406_v37 = vand.u32 2147483648, %v2394_v43  ;;  %v2404_v24 = vand.u32 2147483647, %v2394_v43  ;;  %vm2400_vm9 = vweird.f32 %v2394_v43 }
 0xb30   :  { %v2385_v36 = vpop.f32.mrf.mxu3 }
 0xb31   :  { %v2407_v50 = vor.u32 1.1754944e-38, %v2406_v37  ;;  %vm2405_vm11 = vcmp.eq.f32.partialorder %v2404_v24, 8.507059e+37 }
 0xb32   :  { %v3328_v45 = vpop.eup %3327 }
 0xb33   :  { %v2414_v58 = vadd.f32 1.0, %v3328_v45 }
 0xb35   :  { %v3330_v63 = vpop.eup %3329  ;;  %3331 = vrcp.f32 %v2414_v58  ;;  %v2426_v29 = vand.u32 2147483648, %v2414_v58  ;;  %vm2420_vm13 = vweird.f32 %v2414_v58  ;;  %v2424_v7 = vand.u32 2147483647, %v2414_v58 }
 0xb36   :  { %v2396_v15 = vmul.f32 %v3330_v63, %v2394_v43  ;;  %vm2401_vm8 = vweird.f32 %v3330_v63 }
 0xb37   :  { %vm2402_vm10 = vmor %vm2400_vm9, %vm2401_vm8  ;;  %v2427_v20 = vor.u32 1.1754944e-38, %v2426_v29  ;;  %vm2425_vm15 = vcmp.eq.f32.partialorder %v2424_v7, 8.507059e+37 }
 0xb38   :  { %v2397_v44 = vsub.f32 1.0, %v2396_v15 }
 0xb3a   :  { %v2398_v32 = vmul.f32 %v3330_v63, %v2397_v44 }
 0xb3b   :  { %v3332_v26 = vpop.eup %3331 }
 0xb3c   :  { %v2416_v52 = vmul.f32 %v3332_v26, %v2414_v58  ;;  %v2399_v23 = vadd.f32 %v3330_v63, %v2398_v32  ;;  %vm2421_vm12 = vweird.f32 %v3332_v26 }
 0xb3d   :  { %vm2422_vm14 = vmor %vm2420_vm13, %vm2421_vm12 }
 0xb3e   :  { %v2417_v12 = vsub.f32 1.0, %v2416_v52  ;;  %v2403_v49 = vsel %vm2402_vm10, %v3330_v63, %v2399_v23 }
 0xb3f   :  { %v2408_v54 = vsel %vm2405_vm11, %v2407_v50, %v2403_v49 }
 0xb40   :  { %v2431_v40 = vmul.f32 %v2430_v30, %v2408_v54  ;;  %v2418_v47 = vmul.f32 %v3332_v26, %v2417_v12 }
 0xb42   :  { %v2432_v42 = vadd.f32 %v2431_v40, %v1520_v5  ;;  %v2419_v6 = vadd.f32 %v3332_v26, %v2418_v47 }
 0xb44   :  { %3333 = vtanh.f32 %v2432_v42  ;;  %v2423_v22 = vsel %vm2422_vm14, %v3332_v26, %v2419_v6 }
 0xb45   :  { %v2428_v62 = vsel %vm2425_vm15, %v2427_v20, %v2423_v22 }
 0xb4a   :  { %v3334_v18 = vpop.eup %3333 }
 0xb4b   :  { %v2434_v28 = vsub.f32 %v4855_v35, %v3334_v18 }
 0xb4d   :  { %v2435_v17 = vmul.f32 %v2434_v28, %v2428_v62 }
 0xb4f   :  { %v2436_v13 = vadd.f32 %v3334_v18, %v2435_v17 }
 0xb51   :  { %v2450_v1 = vpack.c.bf16 %v2436_v13, %v4855_v35 }
 0xb53   :  { %2542 = vmatmul.bf16.gmra.mxu0 %v2450_v1 }
 0xbd0   :  { %v2543_v3 = vpop.f32.mrf.mxu0 }
 0xbd1   :  { %v2544_v19 = vadd.f32 %v4834_v0, %v2543_v3 }
 0xbd8   :  { %v2545_v41 = vpop.f32.mrf.mxu0 }
 0xbd9   :  { %v2546_v14 = vadd.f32 %v4834_v0, %v2545_v41 }
 0xbdb   :  { %v3158_v8 = vpack.c.bf16 %v2546_v14, %v2544_v19 }
 0xbdd   :  { %3162 = vst [vmem:[%s4887_s9 + $0x18] sm:$0xff] %v3158_v8  }

</bundles_post_ra>
